<compile_context>
chip_gen: v7x
topology: tpu7x:2x2x1
jax: 0.10.0
libtpu: 0.0.40
codegen_flags: <defaults>
</compile_context>

<pallas_src>
import functools

import jax
import jax.numpy as jnp
from jax.experimental import pallas as pl
from jax.experimental.pallas import tpu as pltpu

PAD = 128          # unified node / feature padding (lane & MXU dense)
_SLOPE = 0.2       # LeakyReLU negative_slope in the reference

_VMEM = pltpu.MemorySpace.VMEM
_SMEM = pltpu.MemorySpace.SMEM


def _round_up(x, m):
    return ((x + m - 1) // m) * m


def _pad2(x, rows=PAD, cols=PAD, row_off=0, col_off=0):
    """Zero [rows, cols] array with x placed at (row_off, col_off)."""
    x = jnp.asarray(x, jnp.float32)
    out = jnp.zeros((rows, cols), jnp.float32)
    return out.at[row_off:row_off + x.shape[0],
                  col_off:col_off + x.shape[1]].set(x)


# --------------------------------------------------------------------------
# Single fused forward kernel
# --------------------------------------------------------------------------
def _fused_forward_kernel(
        idx_ref,                                    # SMEM i32 [P_pad]  (md_node[:,0])
        m_sim_ref, d_sim_ref, l_n_ref,              # f32 [128,128]
        a_mm_ref, a_ml_ref, a_md_ref,               # f32 [128,128]  (Â, precomputed)
        lin_m_ref, lin_d_ref,                       # f32 [128,128]
        w_md_ref, b_md_ref, w_ml_ref, b_ml_ref,     # f32 [L,128,128] / [L,1,128]
        w_mm_ref, b_mm_ref,
        fc_w_ref, fc_b_ref, dec_w_ref,              # f32 [128,128] / [1,128] / [128,128]
        out_ref,                                    # f32 [P_pad, 128]
        emb_ref, gath_ref,                          # VMEM scratch
        *, num_layers, k_plus_1, method, n_pairs):

    def mm(a, b):
        return jnp.dot(a, b, preferred_element_type=jnp.float32)

    def gcn(a_hat, feat, w_ref, b_ref):
        # GraphEmbbeding: num_layers ConvLayers; each layer reuses weights[0]
        # for all k+1 hops (matching the reference).  Padded rows/cols only
        # ever hold garbage in rows/cols we never read.
        for layer in range(num_layers):             # static unroll
            w = w_ref[layer]                        # [128,128]
            b = b_ref[layer]                        # [1,128]
            rst = mm(feat, w) + b
            h = feat
            for _ in range(1, k_plus_1):            # static unroll
                h = mm(a_hat, h)                    # one hop: h <- Â h
                y = mm(h, w) + b
                if method == "sum":
                    rst = rst + y
                elif method == "mean":              # reference divides every hop
                    rst = (rst + y) / k_plus_1
                # TODO(synk): method == 'cat' changes feature width per layer
                # and is not used in this configuration; omitted.
            feat = jnp.maximum(rst, 0.0)            # relu (gcn_activation='relu')
            # TODO(synk): batchnorm / dropout branches omitted (disabled here).
        return feat

    m_sim = m_sim_ref[...]

    # lin_m / lin_d.  d_sim was pre-placed at rows [m_num : m_num+d_num], so
    # lin_d's output already lands at the disease-node rows of the md graph.
    lin_m_out = mm(m_sim, lin_m_ref[...])           # rows [0:m)      cols [0:in_feats)
    lin_d_out = mm(d_sim_ref[...], lin_d_ref[...])  # rows [m:m+d)    cols [0:in_feats)

    feat_md = lin_m_out + lin_d_out                 # == concat([lin_m, lin_d], axis=0)
    feat_ml = lin_m_out + l_n_ref[...]              # == concat([lin_m, l_n],   axis=0)

    # Three live GCN embeddings.  Last-layer weights of gcn_ml / gcn_mm were
    # column-shifted at init, so the sum below IS the 3-way feature concat.
    emb_ass    = gcn(a_md_ref[...], feat_md, w_md_ref, b_md_ref)   # cols [0:F)
    emb_ass2   = gcn(a_ml_ref[...], feat_ml, w_ml_ref, b_ml_ref)   # cols [F:2F)
    emb_mm_sim = gcn(a_mm_ref[...], m_sim,   w_mm_ref, b_mm_ref)   # cols [2F:3F)

    emb_ref[...] = emb_ass + emb_ass2 + emb_mm_sim  # emb_mm (miRNA rows valid)

    # In-kernel gather of the md_node[:,0] rows (indices come from SMEM).
    gath_ref[...] = jnp.zeros_like(gath_ref)
    for p in range(n_pairs):                        # static unroll, tiny
        idx = idx_ref[p]
        gath_ref[pl.ds(p, 1), :] = emb_ref[pl.ds(idx, 1), :]

    # Decoder head: h = LeakyReLU(g @ W_fc + b_fc); both h_diseases and
    # h_mirnas use the SAME tensor in the reference.
    g = gath_ref[...]
    h = mm(g, fc_w_ref[...]) + fc_b_ref[...]
    h = jnp.where(h >= 0.0, h, _SLOPE * h)
    hd = mm(h, dec_w_ref[...])
    s = jnp.sum(hd * h, axis=1, keepdims=True)      # [P_pad, 1]
    sig = 1.0 / (1.0 + jnp.exp(-s))                 # exact sigmoid, f32
    out_ref[...] = jnp.broadcast_to(sig, out_ref.shape)   # lane-dense write


# --------------------------------------------------------------------------
# One-time graph preparation (hoisted out of the per-forward path)
# --------------------------------------------------------------------------
def precompute_ahat(adj):
    """Â = diag(d^-1/2) Aᵀ diag(d^-1/2), zero-padded to [128,128]."""
    adj = jnp.asarray(adj, jnp.float32)
    degs = jnp.maximum(jnp.sum(adj, axis=1), 1.0)   # out_degrees.clamp(min=1)
    norm = degs ** -0.5
    a_hat = norm[:, None] * adj.T * norm[None, :]
    return _pad2(a_hat)


# --------------------------------------------------------------------------
# Parameter initialisation (padded / placed ONCE here)
# --------------------------------------------------------------------------
def xavier_uniform(key, shape):
    fan_in, fan_out = shape
    limit = (6.0 / (fan_in + fan_out)) ** 0.5
    return jax.random.uniform(key, shape, jnp.float32, -limit, limit)


def init_gcn_params(key, in_feats, hid_feats, out_feats, num_layers, last_col_off=0):
    """W stack [L,128,128], b stack [L,1,128]; last layer columns placed at
    last_col_off so the final 3-way concat becomes an add."""
    ws, bs = [], []
    fi = in_feats
    for i in range(num_layers):
        fo = out_feats if i == num_layers - 1 else hid_feats
        off = last_col_off if i == num_layers - 1 else 0
        key, k1 = jax.random.split(key)
        ws.append(_pad2(xavier_uniform(k1, (fi, fo)), col_off=off))
        bs.append(_pad2(jnp.zeros((1, fo), jnp.float32), rows=1, col_off=off))
        fi = fo
    return jnp.stack(ws), jnp.stack(bs)


def init_params(key, args):
    ks = jax.random.split(key, 10)
    m, d, l = args["m_num"], args["d_num"], args["l_num"]
    fi, fh, fo = args["in_feats"], args["hid_feats"], args["out_feats"]
    L = args["num_layers"]
    p = {}
    # nn.Linear(in, out, bias=False) weights stored transposed as [in, out].
    p["lin_m_W"] = _pad2(xavier_uniform(ks[0], (m, fi)))
    p["lin_d_W"] = _pad2(xavier_uniform(ks[1], (d, fi)))
    # Only the three GCNs that feed pre_score (gcn_dd / gcn_ld only fed the
    # dead emb_dd branch and are removed explicitly, per review).
    p["w_md"], p["b_md"] = init_gcn_params(ks[2], fi, fh, fo, L, last_col_off=0)
    p["w_ml"], p["b_ml"] = init_gcn_params(ks[3], fi, fh, fo, L, last_col_off=fo)
    p["w_mm"], p["b_mm"] = init_gcn_params(ks[4], m, fh, fo, L, last_col_off=2 * fo)
    # h_fc = Linear(3*out_feats, 64); decoder W = randn(64, 64).
    p["fc_W"] = _pad2(xavier_uniform(ks[5], (3 * fo, 64)))
    p["fc_b"] = jnp.zeros((1, PAD), jnp.float32)
    p["dec_W"] = _pad2(jax.random.normal(ks[6], (64, 64), jnp.float32))
    # TODO(synk): the reference draws l_n = th.rand(...) fresh every forward;
    # kept as a fixed parameter here, pre-placed at rows [m : m+l].
    p["l_n"] = _pad2(jax.random.uniform(ks[7], (l, fi), jnp.float32), row_off=m)
    return p


# --------------------------------------------------------------------------
# SupernodeLearn forward (single pallas_call)
# --------------------------------------------------------------------------
def supernode_learn_forward(params, graphs, sim_data, md_node, *, args):
    m_num, d_num = args["m_num"], args["d_num"]
    k_plus_1 = args["k"] + 1
    num_layers = args["num_layers"]
    method = args.get("method", "sum")
    assert method in ("sum", "mean")
    n_pairs = md_node.shape[0]
    p_pad = _round_up(max(n_pairs, 8), 8)

    # ---- SimMatrix ---------------------------------------------------------
    # TODO(synk): SimAttention is not defined in the reference source; a
    # uniform mean over the three similarity views is used in its place.
    m_sim = (sim_data["mm_f"] + sim_data["mm_s"] + sim_data["mm_g"]) / 3.0
    d_sim = (sim_data["dd_t"] + sim_data["dd_s"] + sim_data["dd_g"]) / 3.0
    m_sim = m_sim * (1.0 - jnp.eye(m_num, dtype=m_sim.dtype))   # fill_diagonal_(0)
    d_sim = d_sim * (1.0 - jnp.eye(d_num, dtype=d_sim.dtype))

    # TODO(synk): the sub-graph / neighbour-attention branch (OnehotTran,
    # GetSubgraph, NodeEmbedding, EdgeEmbedding, NeiAttention, NeiAggregator,
    # MLP) is undefined in the reference source and does not feed the returned
    # pre_score, so it is omitted.  The emb_dd branch (gcn_dd, gcn_ld) is dead
    # w.r.t. pre_score and is removed explicitly.

    m_sim_p = _pad2(m_sim)                       # rows/cols [0:m)
    d_sim_sh = _pad2(d_sim, row_off=m_num)       # rows [m:m+d) so lin_d lands shifted

    m_idx = jnp.zeros((p_pad,), jnp.int32).at[:n_pairs].set(
        md_node[:, 0].astype(jnp.int32))

    kernel = functools.partial(_fused_forward_kernel,
                               num_layers=num_layers, k_plus_1=k_plus_1,
                               method=method, n_pairs=n_pairs)
    vspec = pl.BlockSpec(memory_space=_VMEM)
    out = pl.pallas_call(
        kernel,
        out_shape=jax.ShapeDtypeStruct((p_pad, PAD), jnp.float32),
        in_specs=[pl.BlockSpec(memory_space=_SMEM)] + [vspec] * 17,
        out_specs=vspec,
        scratch_shapes=[pltpu.VMEM((PAD, PAD), jnp.float32),      # emb_mm
                        pltpu.VMEM((p_pad, PAD), jnp.float32)],   # gathered rows
    )(m_idx, m_sim_p, d_sim_sh, params["l_n"],
      graphs["a_mm"], graphs["a_ml"], graphs["a_md"],
      params["lin_m_W"], params["lin_d_W"],
      params["w_md"], params["b_md"], params["w_ml"], params["b_ml"],
      params["w_mm"], params["b_mm"],
      params["fc_W"], params["fc_b"], params["dec_W"])
    return out[:n_pairs, 0]


# --------------------------------------------------------------------------
# main
# --------------------------------------------------------------------------
if __name__ == "__main__":
    args = dict(m_num=16, d_num=12, l_num=8,
                in_feats=32, hid_feats=32, out_feats=32,
                k=1, num_layers=2, method="sum")

    key = jax.random.PRNGKey(0)
    k_par, k_sim, k_adj, k_node = jax.random.split(key, 4)
    params = init_params(k_par, args)

    m, d, l = args["m_num"], args["d_num"], args["l_num"]

    def sym(k, n):
        a = jax.random.uniform(k, (n, n), jnp.float32)
        return (a + a.T) / 2.0

    sk = jax.random.split(k_sim, 6)
    sim_data = {"mm_f": sym(sk[0], m), "mm_s": sym(sk[1], m), "mm_g": sym(sk[2], m),
                "dd_t": sym(sk[3], d), "dd_s": sym(sk[4], d), "dd_g": sym(sk[5], d)}

    ak = jax.random.split(k_adj, 4)
    m_d = (jax.random.uniform(ak[0], (m, d)) > 0.5).astype(jnp.float32)
    m_l = (jax.random.uniform(ak[1], (m, l)) > 0.5).astype(jnp.float32)

    def bipartite(assoc, n_a, n_b):
        return jnp.block([[jnp.zeros((n_a, n_a)), assoc],
                          [assoc.T, jnp.zeros((n_b, n_b))]]).astype(jnp.float32)

    md_adj = bipartite(m_d, m, d)          # miRNA nodes first, then diseases
    ml_adj = bipartite(m_l, m, l)          # miRNA nodes first, then lncRNAs
    mm_adj = (sym(ak[3], m) > 0.5).astype(jnp.float32)

    # Static graphs: normalised + padded Â built ONCE, outside the forward.
    graphs = {"a_mm": precompute_ahat(mm_adj),
              "a_ml": precompute_ahat(ml_adj),
              "a_md": precompute_ahat(md_adj)}

    n_pairs = 10
    md_node = jnp.stack(
        [jax.random.randint(jax.random.fold_in(k_node, 0), (n_pairs,), 0, m),
         jax.random.randint(jax.random.fold_in(k_node, 1), (n_pairs,), 0, d)],
        axis=1)

    fwd = jax.jit(functools.partial(supernode_learn_forward, args=args))
    pre_score = jax.block_until_ready(fwd(params, graphs, sim_data, md_node))

    assert pre_score.shape == (n_pairs,)
    assert bool(jnp.all(jnp.isfinite(pre_score)))
    assert bool(jnp.all((pre_score >= 0.0) & (pre_score <= 1.0)))
    print("KERNEL_OK")
</pallas_src>

<mosaic_0001>
module attributes {stable_mosaic.version = 11 : i64} {
  func.func @_fused_forward_kernel(%arg0: memref<16xi32, #tpu.memory_space<smem>>, %arg1: memref<128x128xf32, #tpu.memory_space<vmem>>, %arg2: memref<128x128xf32, #tpu.memory_space<vmem>>, %arg3: memref<128x128xf32, #tpu.memory_space<vmem>>, %arg4: memref<128x128xf32, #tpu.memory_space<vmem>>, %arg5: memref<128x128xf32, #tpu.memory_space<vmem>>, %arg6: memref<128x128xf32, #tpu.memory_space<vmem>>, %arg7: memref<128x128xf32, #tpu.memory_space<vmem>>, %arg8: memref<128x128xf32, #tpu.memory_space<vmem>>, %arg9: memref<2x128x128xf32, #tpu.memory_space<vmem>>, %arg10: memref<2x1x128xf32, #tpu.memory_space<vmem>>, %arg11: memref<2x128x128xf32, #tpu.memory_space<vmem>>, %arg12: memref<2x1x128xf32, #tpu.memory_space<vmem>>, %arg13: memref<2x128x128xf32, #tpu.memory_space<vmem>>, %arg14: memref<2x1x128xf32, #tpu.memory_space<vmem>>, %arg15: memref<128x128xf32, #tpu.memory_space<vmem>>, %arg16: memref<1x128xf32, #tpu.memory_space<vmem>>, %arg17: memref<128x128xf32, #tpu.memory_space<vmem>>, %arg18: memref<16x128xf32, #tpu.memory_space<vmem>>, %arg19: memref<128x128xf32, #tpu.memory_space<vmem>>, %arg20: memref<16x128xf32, #tpu.memory_space<vmem>>) attributes {dimension_semantics = [], scalar_prefetch = 0 : i64, scratch_operands = 2 : i64, tpu.core_type = #tpu.core_type<tc>} {
    %c0 = arith.constant 0 : index
    %c0_0 = arith.constant 0 : index
    %0 = vector.load %arg1[%c0, %c0_0] : memref<128x128xf32, #tpu.memory_space<vmem>>, vector<128x128xf32>
    %c0_1 = arith.constant 0 : index
    %c0_2 = arith.constant 0 : index
    %1 = vector.load %arg7[%c0_1, %c0_2] : memref<128x128xf32, #tpu.memory_space<vmem>>, vector<128x128xf32>
    %cst = arith.constant dense<0.000000e+00> : vector<128x128xf32>
    %2 = tpu.matmul %0, %1, %cst {dimension_numbers = #tpu.dot_dimension_numbers<[1], [0], [0], [1], [0, 0, 1, 1], [], []>} : vector<128x128xf32>, vector<128x128xf32>, vector<128x128xf32> -> vector<128x128xf32>
    %c0_3 = arith.constant 0 : index
    %c0_4 = arith.constant 0 : index
    %3 = vector.load %arg2[%c0_3, %c0_4] : memref<128x128xf32, #tpu.memory_space<vmem>>, vector<128x128xf32>
    %c0_5 = arith.constant 0 : index
    %c0_6 = arith.constant 0 : index
    %4 = vector.load %arg8[%c0_5, %c0_6] : memref<128x128xf32, #tpu.memory_space<vmem>>, vector<128x128xf32>
    %cst_7 = arith.constant dense<0.000000e+00> : vector<128x128xf32>
    %5 = tpu.matmul %3, %4, %cst_7 {dimension_numbers = #tpu.dot_dimension_numbers<[1], [0], [0], [1], [0, 0, 1, 1], [], []>} : vector<128x128xf32>, vector<128x128xf32>, vector<128x128xf32> -> vector<128x128xf32>
    %6 = arith.addf %2, %5 : vector<128x128xf32>
    %c0_8 = arith.constant 0 : index
    %c0_9 = arith.constant 0 : index
    %7 = vector.load %arg3[%c0_8, %c0_9] : memref<128x128xf32, #tpu.memory_space<vmem>>, vector<128x128xf32>
    %8 = arith.addf %2, %7 : vector<128x128xf32>
    %c0_10 = arith.constant 0 : index
    %c0_11 = arith.constant 0 : index
    %9 = vector.load %arg6[%c0_10, %c0_11] : memref<128x128xf32, #tpu.memory_space<vmem>>, vector<128x128xf32>
    %c0_12 = arith.constant 0 : index
    %c0_13 = arith.constant 0 : index
    %c0_14 = arith.constant 0 : index
    %10 = vector.load %arg9[%c0_12, %c0_13, %c0_14] : memref<2x128x128xf32, #tpu.memory_space<vmem>>, vector<1x128x128xf32>
    %11 = vector.shape_cast %10 : vector<1x128x128xf32> to vector<128x128xf32>
    %c0_15 = arith.constant 0 : index
    %c0_16 = arith.constant 0 : index
    %c0_17 = arith.constant 0 : index
    %12 = vector.load %arg10[%c0_15, %c0_16, %c0_17] : memref<2x1x128xf32, #tpu.memory_space<vmem>>, vector<1x1x128xf32>
    %13 = vector.shape_cast %12 : vector<1x1x128xf32> to vector<1x128xf32>
    %cst_18 = arith.constant dense<0.000000e+00> : vector<128x128xf32>
    %14 = tpu.matmul %6, %11, %cst_18 {dimension_numbers = #tpu.dot_dimension_numbers<[1], [0], [0], [1], [0, 0, 1, 1], [], []>} : vector<128x128xf32>, vector<128x128xf32>, vector<128x128xf32> -> vector<128x128xf32>
    %15 = vector.broadcast %13 : vector<1x128xf32> to vector<128x128xf32>
    %16 = arith.addf %14, %15 : vector<128x128xf32>
    %cst_19 = arith.constant dense<0.000000e+00> : vector<128x128xf32>
    %17 = tpu.matmul %9, %6, %cst_19 {dimension_numbers = #tpu.dot_dimension_numbers<[1], [0], [0], [1], [0, 0, 1, 1], [], []>} : vector<128x128xf32>, vector<128x128xf32>, vector<128x128xf32> -> vector<128x128xf32>
    %cst_20 = arith.constant dense<0.000000e+00> : vector<128x128xf32>
    %18 = tpu.matmul %17, %11, %cst_20 {dimension_numbers = #tpu.dot_dimension_numbers<[1], [0], [0], [1], [0, 0, 1, 1], [], []>} : vector<128x128xf32>, vector<128x128xf32>, vector<128x128xf32> -> vector<128x128xf32>
    %19 = vector.broadcast %13 : vector<1x128xf32> to vector<128x128xf32>
    %20 = arith.addf %18, %19 : vector<128x128xf32>
    %21 = arith.addf %16, %20 : vector<128x128xf32>
    %cst_21 = arith.constant 0.000000e+00 : f32
    %22 = vector.broadcast %cst_21 : f32 to vector<128x128xf32>
    %23 = arith.maximumf %21, %22 : vector<128x128xf32>
    %c1 = arith.constant 1 : index
    %c0_22 = arith.constant 0 : index
    %c0_23 = arith.constant 0 : index
    %24 = vector.load %arg9[%c1, %c0_22, %c0_23] : memref<2x128x128xf32, #tpu.memory_space<vmem>>, vector<1x128x128xf32>
    %25 = vector.shape_cast %24 : vector<1x128x128xf32> to vector<128x128xf32>
    %c1_24 = arith.constant 1 : index
    %c0_25 = arith.constant 0 : index
    %c0_26 = arith.constant 0 : index
    %26 = vector.load %arg10[%c1_24, %c0_25, %c0_26] : memref<2x1x128xf32, #tpu.memory_space<vmem>>, vector<1x1x128xf32>
    %27 = vector.shape_cast %26 : vector<1x1x128xf32> to vector<1x128xf32>
    %cst_27 = arith.constant dense<0.000000e+00> : vector<128x128xf32>
    %28 = tpu.matmul %23, %25, %cst_27 {dimension_numbers = #tpu.dot_dimension_numbers<[1], [0], [0], [1], [0, 0, 1, 1], [], []>} : vector<128x128xf32>, vector<128x128xf32>, vector<128x128xf32> -> vector<128x128xf32>
    %29 = vector.broadcast %27 : vector<1x128xf32> to vector<128x128xf32>
    %30 = arith.addf %28, %29 : vector<128x128xf32>
    %cst_28 = arith.constant dense<0.000000e+00> : vector<128x128xf32>
    %31 = tpu.matmul %9, %23, %cst_28 {dimension_numbers = #tpu.dot_dimension_numbers<[1], [0], [0], [1], [0, 0, 1, 1], [], []>} : vector<128x128xf32>, vector<128x128xf32>, vector<128x128xf32> -> vector<128x128xf32>
    %cst_29 = arith.constant dense<0.000000e+00> : vector<128x128xf32>
    %32 = tpu.matmul %31, %25, %cst_29 {dimension_numbers = #tpu.dot_dimension_numbers<[1], [0], [0], [1], [0, 0, 1, 1], [], []>} : vector<128x128xf32>, vector<128x128xf32>, vector<128x128xf32> -> vector<128x128xf32>
    %33 = vector.broadcast %27 : vector<1x128xf32> to vector<128x128xf32>
    %34 = arith.addf %32, %33 : vector<128x128xf32>
    %35 = arith.addf %30, %34 : vector<128x128xf32>
    %cst_30 = arith.constant 0.000000e+00 : f32
    %36 = vector.broadcast %cst_30 : f32 to vector<128x128xf32>
    %37 = arith.maximumf %35, %36 : vector<128x128xf32>
    %c0_31 = arith.constant 0 : index
    %c0_32 = arith.constant 0 : index
    %38 = vector.load %arg5[%c0_31, %c0_32] : memref<128x128xf32, #tpu.memory_space<vmem>>, vector<128x128xf32>
    %c0_33 = arith.constant 0 : index
    %c0_34 = arith.constant 0 : index
    %c0_35 = arith.constant 0 : index
    %39 = vector.load %arg11[%c0_33, %c0_34, %c0_35] : memref<2x128x128xf32, #tpu.memory_space<vmem>>, vector<1x128x128xf32>
    %40 = vector.shape_cast %39 : vector<1x128x128xf32> to vector<128x128xf32>
    %c0_36 = arith.constant 0 : index
    %c0_37 = arith.constant 0 : index
    %c0_38 = arith.constant 0 : index
    %41 = vector.load %arg12[%c0_36, %c0_37, %c0_38] : memref<2x1x128xf32, #tpu.memory_space<vmem>>, vector<1x1x128xf32>
    %42 = vector.shape_cast %41 : vector<1x1x128xf32> to vector<1x128xf32>
    %cst_39 = arith.constant dense<0.000000e+00> : vector<128x128xf32>
    %43 = tpu.matmul %8, %40, %cst_39 {dimension_numbers = #tpu.dot_dimension_numbers<[1], [0], [0], [1], [0, 0, 1, 1], [], []>} : vector<128x128xf32>, vector<128x128xf32>, vector<128x128xf32> -> vector<128x128xf32>
    %44 = vector.broadcast %42 : vector<1x128xf32> to vector<128x128xf32>
    %45 = arith.addf %43, %44 : vector<128x128xf32>
    %cst_40 = arith.constant dense<0.000000e+00> : vector<128x128xf32>
    %46 = tpu.matmul %38, %8, %cst_40 {dimension_numbers = #tpu.dot_dimension_numbers<[1], [0], [0], [1], [0, 0, 1, 1], [], []>} : vector<128x128xf32>, vector<128x128xf32>, vector<128x128xf32> -> vector<128x128xf32>
    %cst_41 = arith.constant dense<0.000000e+00> : vector<128x128xf32>
    %47 = tpu.matmul %46, %40, %cst_41 {dimension_numbers = #tpu.dot_dimension_numbers<[1], [0], [0], [1], [0, 0, 1, 1], [], []>} : vector<128x128xf32>, vector<128x128xf32>, vector<128x128xf32> -> vector<128x128xf32>
    %48 = vector.broadcast %42 : vector<1x128xf32> to vector<128x128xf32>
    %49 = arith.addf %47, %48 : vector<128x128xf32>
    %50 = arith.addf %45, %49 : vector<128x128xf32>
    %cst_42 = arith.constant 0.000000e+00 : f32
    %51 = vector.broadcast %cst_42 : f32 to vector<128x128xf32>
    %52 = arith.maximumf %50, %51 : vector<128x128xf32>
    %c1_43 = arith.constant 1 : index
    %c0_44 = arith.constant 0 : index
    %c0_45 = arith.constant 0 : index
    %53 = vector.load %arg11[%c1_43, %c0_44, %c0_45] : memref<2x128x128xf32, #tpu.memory_space<vmem>>, vector<1x128x128xf32>
    %54 = vector.shape_cast %53 : vector<1x128x128xf32> to vector<128x128xf32>
    %c1_46 = arith.constant 1 : index
    %c0_47 = arith.constant 0 : index
    %c0_48 = arith.constant 0 : index
    %55 = vector.load %arg12[%c1_46, %c0_47, %c0_48] : memref<2x1x128xf32, #tpu.memory_space<vmem>>, vector<1x1x128xf32>
    %56 = vector.shape_cast %55 : vector<1x1x128xf32> to vector<1x128xf32>
    %cst_49 = arith.constant dense<0.000000e+00> : vector<128x128xf32>
    %57 = tpu.matmul %52, %54, %cst_49 {dimension_numbers = #tpu.dot_dimension_numbers<[1], [0], [0], [1], [0, 0, 1, 1], [], []>} : vector<128x128xf32>, vector<128x128xf32>, vector<128x128xf32> -> vector<128x128xf32>
    %58 = vector.broadcast %56 : vector<1x128xf32> to vector<128x128xf32>
    %59 = arith.addf %57, %58 : vector<128x128xf32>
    %cst_50 = arith.constant dense<0.000000e+00> : vector<128x128xf32>
    %60 = tpu.matmul %38, %52, %cst_50 {dimension_numbers = #tpu.dot_dimension_numbers<[1], [0], [0], [1], [0, 0, 1, 1], [], []>} : vector<128x128xf32>, vector<128x128xf32>, vector<128x128xf32> -> vector<128x128xf32>
    %cst_51 = arith.constant dense<0.000000e+00> : vector<128x128xf32>
    %61 = tpu.matmul %60, %54, %cst_51 {dimension_numbers = #tpu.dot_dimension_numbers<[1], [0], [0], [1], [0, 0, 1, 1], [], []>} : vector<128x128xf32>, vector<128x128xf32>, vector<128x128xf32> -> vector<128x128xf32>
    %62 = vector.broadcast %56 : vector<1x128xf32> to vector<128x128xf32>
    %63 = arith.addf %61, %62 : vector<128x128xf32>
    %64 = arith.addf %59, %63 : vector<128x128xf32>
    %cst_52 = arith.constant 0.000000e+00 : f32
    %65 = vector.broadcast %cst_52 : f32 to vector<128x128xf32>
    %66 = arith.maximumf %64, %65 : vector<128x128xf32>
    %c0_53 = arith.constant 0 : index
    %c0_54 = arith.constant 0 : index
    %67 = vector.load %arg4[%c0_53, %c0_54] : memref<128x128xf32, #tpu.memory_space<vmem>>, vector<128x128xf32>
    %c0_55 = arith.constant 0 : index
    %c0_56 = arith.constant 0 : index
    %c0_57 = arith.constant 0 : index
    %68 = vector.load %arg13[%c0_55, %c0_56, %c0_57] : memref<2x128x128xf32, #tpu.memory_space<vmem>>, vector<1x128x128xf32>
    %69 = vector.shape_cast %68 : vector<1x128x128xf32> to vector<128x128xf32>
    %c0_58 = arith.constant 0 : index
    %c0_59 = arith.constant 0 : index
    %c0_60 = arith.constant 0 : index
    %70 = vector.load %arg14[%c0_58, %c0_59, %c0_60] : memref<2x1x128xf32, #tpu.memory_space<vmem>>, vector<1x1x128xf32>
    %71 = vector.shape_cast %70 : vector<1x1x128xf32> to vector<1x128xf32>
    %cst_61 = arith.constant dense<0.000000e+00> : vector<128x128xf32>
    %72 = tpu.matmul %0, %69, %cst_61 {dimension_numbers = #tpu.dot_dimension_numbers<[1], [0], [0], [1], [0, 0, 1, 1], [], []>} : vector<128x128xf32>, vector<128x128xf32>, vector<128x128xf32> -> vector<128x128xf32>
    %73 = vector.broadcast %71 : vector<1x128xf32> to vector<128x128xf32>
    %74 = arith.addf %72, %73 : vector<128x128xf32>
    %cst_62 = arith.constant dense<0.000000e+00> : vector<128x128xf32>
    %75 = tpu.matmul %67, %0, %cst_62 {dimension_numbers = #tpu.dot_dimension_numbers<[1], [0], [0], [1], [0, 0, 1, 1], [], []>} : vector<128x128xf32>, vector<128x128xf32>, vector<128x128xf32> -> vector<128x128xf32>
    %cst_63 = arith.constant dense<0.000000e+00> : vector<128x128xf32>
    %76 = tpu.matmul %75, %69, %cst_63 {dimension_numbers = #tpu.dot_dimension_numbers<[1], [0], [0], [1], [0, 0, 1, 1], [], []>} : vector<128x128xf32>, vector<128x128xf32>, vector<128x128xf32> -> vector<128x128xf32>
    %77 = vector.broadcast %71 : vector<1x128xf32> to vector<128x128xf32>
    %78 = arith.addf %76, %77 : vector<128x128xf32>
    %79 = arith.addf %74, %78 : vector<128x128xf32>
    %cst_64 = arith.constant 0.000000e+00 : f32
    %80 = vector.broadcast %cst_64 : f32 to vector<128x128xf32>
    %81 = arith.maximumf %79, %80 : vector<128x128xf32>
    %c1_65 = arith.constant 1 : index
    %c0_66 = arith.constant 0 : index
    %c0_67 = arith.constant 0 : index
    %82 = vector.load %arg13[%c1_65, %c0_66, %c0_67] : memref<2x128x128xf32, #tpu.memory_space<vmem>>, vector<1x128x128xf32>
    %83 = vector.shape_cast %82 : vector<1x128x128xf32> to vector<128x128xf32>
    %c1_68 = arith.constant 1 : index
    %c0_69 = arith.constant 0 : index
    %c0_70 = arith.constant 0 : index
    %84 = vector.load %arg14[%c1_68, %c0_69, %c0_70] : memref<2x1x128xf32, #tpu.memory_space<vmem>>, vector<1x1x128xf32>
    %85 = vector.shape_cast %84 : vector<1x1x128xf32> to vector<1x128xf32>
    %cst_71 = arith.constant dense<0.000000e+00> : vector<128x128xf32>
    %86 = tpu.matmul %81, %83, %cst_71 {dimension_numbers = #tpu.dot_dimension_numbers<[1], [0], [0], [1], [0, 0, 1, 1], [], []>} : vector<128x128xf32>, vector<128x128xf32>, vector<128x128xf32> -> vector<128x128xf32>
    %87 = vector.broadcast %85 : vector<1x128xf32> to vector<128x128xf32>
    %88 = arith.addf %86, %87 : vector<128x128xf32>
    %cst_72 = arith.constant dense<0.000000e+00> : vector<128x128xf32>
    %89 = tpu.matmul %67, %81, %cst_72 {dimension_numbers = #tpu.dot_dimension_numbers<[1], [0], [0], [1], [0, 0, 1, 1], [], []>} : vector<128x128xf32>, vector<128x128xf32>, vector<128x128xf32> -> vector<128x128xf32>
    %cst_73 = arith.constant dense<0.000000e+00> : vector<128x128xf32>
    %90 = tpu.matmul %89, %83, %cst_73 {dimension_numbers = #tpu.dot_dimension_numbers<[1], [0], [0], [1], [0, 0, 1, 1], [], []>} : vector<128x128xf32>, vector<128x128xf32>, vector<128x128xf32> -> vector<128x128xf32>
    %91 = vector.broadcast %85 : vector<1x128xf32> to vector<128x128xf32>
    %92 = arith.addf %90, %91 : vector<128x128xf32>
    %93 = arith.addf %88, %92 : vector<128x128xf32>
    %cst_74 = arith.constant 0.000000e+00 : f32
    %94 = vector.broadcast %cst_74 : f32 to vector<128x128xf32>
    %95 = arith.maximumf %93, %94 : vector<128x128xf32>
    %96 = arith.addf %37, %66 : vector<128x128xf32>
    %97 = arith.addf %96, %95 : vector<128x128xf32>
    %c0_75 = arith.constant 0 : index
    %c0_76 = arith.constant 0 : index
    %98 = vector.load %arg19[%c0_75, %c0_76] : memref<128x128xf32, #tpu.memory_space<vmem>>, vector<128x128xf32>
    tpu.vector_store %arg19[%c0_75, %c0_76], %97 {strides = array<i32>} : memref<128x128xf32, #tpu.memory_space<vmem>>, vector<128x128xf32>,
    %cst_77 = arith.constant 0.000000e+00 : f32
    %99 = vector.broadcast %cst_77 : f32 to vector<16x128xf32>
    %c0_78 = arith.constant 0 : index
    %c0_79 = arith.constant 0 : index
    %100 = vector.load %arg20[%c0_78, %c0_79] : memref<16x128xf32, #tpu.memory_space<vmem>>, vector<16x128xf32>
    tpu.vector_store %arg20[%c0_78, %c0_79], %99 {strides = array<i32>} : memref<16x128xf32, #tpu.memory_space<vmem>>, vector<16x128xf32>,
    %c0_80 = arith.constant 0 : index
    %101 = memref.load %arg0[%c0_80] : memref<16xi32, #tpu.memory_space<smem>>
    %102 = arith.index_cast %101 : i32 to index
    %c0_81 = arith.constant 0 : index
    %103 = vector.load %arg19[%102, %c0_81] : memref<128x128xf32, #tpu.memory_space<vmem>>, vector<1x128xf32>
    %c0_82 = arith.constant 0 : index
    %c0_83 = arith.constant 0 : index
    %104 = vector.load %arg20[%c0_82, %c0_83] : memref<16x128xf32, #tpu.memory_space<vmem>>, vector<1x128xf32>
    tpu.vector_store %arg20[%c0_82, %c0_83], %103 {strides = array<i32>} : memref<16x128xf32, #tpu.memory_space<vmem>>, vector<1x128xf32>,
    %c1_84 = arith.constant 1 : index
    %105 = memref.load %arg0[%c1_84] : memref<16xi32, #tpu.memory_space<smem>>
    %106 = arith.index_cast %105 : i32 to index
    %c0_85 = arith.constant 0 : index
    %107 = vector.load %arg19[%106, %c0_85] : memref<128x128xf32, #tpu.memory_space<vmem>>, vector<1x128xf32>
    %c1_86 = arith.constant 1 : index
    %c0_87 = arith.constant 0 : index
    %108 = vector.load %arg20[%c1_86, %c0_87] : memref<16x128xf32, #tpu.memory_space<vmem>>, vector<1x128xf32>
    tpu.vector_store %arg20[%c1_86, %c0_87], %107 {strides = array<i32>} : memref<16x128xf32, #tpu.memory_space<vmem>>, vector<1x128xf32>,
    %c2 = arith.constant 2 : index
    %109 = memref.load %arg0[%c2] : memref<16xi32, #tpu.memory_space<smem>>
    %110 = arith.index_cast %109 : i32 to index
    %c0_88 = arith.constant 0 : index
    %111 = vector.load %arg19[%110, %c0_88] : memref<128x128xf32, #tpu.memory_space<vmem>>, vector<1x128xf32>
    %c2_89 = arith.constant 2 : index
    %c0_90 = arith.constant 0 : index
    %112 = vector.load %arg20[%c2_89, %c0_90] : memref<16x128xf32, #tpu.memory_space<vmem>>, vector<1x128xf32>
    tpu.vector_store %arg20[%c2_89, %c0_90], %111 {strides = array<i32>} : memref<16x128xf32, #tpu.memory_space<vmem>>, vector<1x128xf32>,
    %c3 = arith.constant 3 : index
    %113 = memref.load %arg0[%c3] : memref<16xi32, #tpu.memory_space<smem>>
    %114 = arith.index_cast %113 : i32 to index
    %c0_91 = arith.constant 0 : index
    %115 = vector.load %arg19[%114, %c0_91] : memref<128x128xf32, #tpu.memory_space<vmem>>, vector<1x128xf32>
    %c3_92 = arith.constant 3 : index
    %c0_93 = arith.constant 0 : index
    %116 = vector.load %arg20[%c3_92, %c0_93] : memref<16x128xf32, #tpu.memory_space<vmem>>, vector<1x128xf32>
    tpu.vector_store %arg20[%c3_92, %c0_93], %115 {strides = array<i32>} : memref<16x128xf32, #tpu.memory_space<vmem>>, vector<1x128xf32>,
    %c4 = arith.constant 4 : index
    %117 = memref.load %arg0[%c4] : memref<16xi32, #tpu.memory_space<smem>>
    %118 = arith.index_cast %117 : i32 to index
    %c0_94 = arith.constant 0 : index
    %119 = vector.load %arg19[%118, %c0_94] : memref<128x128xf32, #tpu.memory_space<vmem>>, vector<1x128xf32>
    %c4_95 = arith.constant 4 : index
    %c0_96 = arith.constant 0 : index
    %120 = vector.load %arg20[%c4_95, %c0_96] : memref<16x128xf32, #tpu.memory_space<vmem>>, vector<1x128xf32>
    tpu.vector_store %arg20[%c4_95, %c0_96], %119 {strides = array<i32>} : memref<16x128xf32, #tpu.memory_space<vmem>>, vector<1x128xf32>,
    %c5 = arith.constant 5 : index
    %121 = memref.load %arg0[%c5] : memref<16xi32, #tpu.memory_space<smem>>
    %122 = arith.index_cast %121 : i32 to index
    %c0_97 = arith.constant 0 : index
    %123 = vector.load %arg19[%122, %c0_97] : memref<128x128xf32, #tpu.memory_space<vmem>>, vector<1x128xf32>
    %c5_98 = arith.constant 5 : index
    %c0_99 = arith.constant 0 : index
    %124 = vector.load %arg20[%c5_98, %c0_99] : memref<16x128xf32, #tpu.memory_space<vmem>>, vector<1x128xf32>
    tpu.vector_store %arg20[%c5_98, %c0_99], %123 {strides = array<i32>} : memref<16x128xf32, #tpu.memory_space<vmem>>, vector<1x128xf32>,
    %c6 = arith.constant 6 : index
    %125 = memref.load %arg0[%c6] : memref<16xi32, #tpu.memory_space<smem>>
    %126 = arith.index_cast %125 : i32 to index
    %c0_100 = arith.constant 0 : index
    %127 = vector.load %arg19[%126, %c0_100] : memref<128x128xf32, #tpu.memory_space<vmem>>, vector<1x128xf32>
    %c6_101 = arith.constant 6 : index
    %c0_102 = arith.constant 0 : index
    %128 = vector.load %arg20[%c6_101, %c0_102] : memref<16x128xf32, #tpu.memory_space<vmem>>, vector<1x128xf32>
    tpu.vector_store %arg20[%c6_101, %c0_102], %127 {strides = array<i32>} : memref<16x128xf32, #tpu.memory_space<vmem>>, vector<1x128xf32>,
    %c7 = arith.constant 7 : index
    %129 = memref.load %arg0[%c7] : memref<16xi32, #tpu.memory_space<smem>>
    %130 = arith.index_cast %129 : i32 to index
    %c0_103 = arith.constant 0 : index
    %131 = vector.load %arg19[%130, %c0_103] : memref<128x128xf32, #tpu.memory_space<vmem>>, vector<1x128xf32>
    %c7_104 = arith.constant 7 : index
    %c0_105 = arith.constant 0 : index
    %132 = vector.load %arg20[%c7_104, %c0_105] : memref<16x128xf32, #tpu.memory_space<vmem>>, vector<1x128xf32>
    tpu.vector_store %arg20[%c7_104, %c0_105], %131 {strides = array<i32>} : memref<16x128xf32, #tpu.memory_space<vmem>>, vector<1x128xf32>,
    %c8 = arith.constant 8 : index
    %133 = memref.load %arg0[%c8] : memref<16xi32, #tpu.memory_space<smem>>
    %134 = arith.index_cast %133 : i32 to index
    %c0_106 = arith.constant 0 : index
    %135 = vector.load %arg19[%134, %c0_106] : memref<128x128xf32, #tpu.memory_space<vmem>>, vector<1x128xf32>
    %c8_107 = arith.constant 8 : index
    %c0_108 = arith.constant 0 : index
    %136 = vector.load %arg20[%c8_107, %c0_108] : memref<16x128xf32, #tpu.memory_space<vmem>>, vector<1x128xf32>
    tpu.vector_store %arg20[%c8_107, %c0_108], %135 {strides = array<i32>} : memref<16x128xf32, #tpu.memory_space<vmem>>, vector<1x128xf32>,
    %c9 = arith.constant 9 : index
    %137 = memref.load %arg0[%c9] : memref<16xi32, #tpu.memory_space<smem>>
    %138 = arith.index_cast %137 : i32 to index
    %c0_109 = arith.constant 0 : index
    %139 = vector.load %arg19[%138, %c0_109] : memref<128x128xf32, #tpu.memory_space<vmem>>, vector<1x128xf32>
    %c9_110 = arith.constant 9 : index
    %c0_111 = arith.constant 0 : index
    %140 = vector.load %arg20[%c9_110, %c0_111] : memref<16x128xf32, #tpu.memory_space<vmem>>, vector<1x128xf32>
    tpu.vector_store %arg20[%c9_110, %c0_111], %139 {strides = array<i32>} : memref<16x128xf32, #tpu.memory_space<vmem>>, vector<1x128xf32>,
    %c0_112 = arith.constant 0 : index
    %c0_113 = arith.constant 0 : index
    %141 = vector.load %arg20[%c0_112, %c0_113] : memref<16x128xf32, #tpu.memory_space<vmem>>, vector<16x128xf32>
    %c0_114 = arith.constant 0 : index
    %c0_115 = arith.constant 0 : index
    %142 = vector.load %arg15[%c0_114, %c0_115] : memref<128x128xf32, #tpu.memory_space<vmem>>, vector<128x128xf32>
    %cst_116 = arith.constant dense<0.000000e+00> : vector<16x128xf32>
    %143 = tpu.matmul %141, %142, %cst_116 {dimension_numbers = #tpu.dot_dimension_numbers<[1], [0], [0], [1], [0, 0, 1, 1], [], []>} : vector<16x128xf32>, vector<128x128xf32>, vector<16x128xf32> -> vector<16x128xf32>
    %c0_117 = arith.constant 0 : index
    %c0_118 = arith.constant 0 : index
    %144 = vector.load %arg16[%c0_117, %c0_118] : memref<1x128xf32, #tpu.memory_space<vmem>>, vector<1x128xf32>
    %145 = vector.broadcast %144 : vector<1x128xf32> to vector<16x128xf32>
    %146 = arith.addf %143, %145 : vector<16x128xf32>
    %cst_119 = arith.constant 0.000000e+00 : f32
    %147 = vector.broadcast %cst_119 : f32 to vector<16x128xf32>
    %148 = arith.cmpf oge, %146, %147 : vector<16x128xf32>
    %cst_120 = arith.constant 2.000000e-01 : f32
    %149 = vector.broadcast %cst_120 : f32 to vector<16x128xf32>
    %150 = arith.mulf %149, %146 : vector<16x128xf32>
    %151 = arith.select %148, %146, %150 : vector<16x128xi1>, vector<16x128xf32>
    %c0_121 = arith.constant 0 : index
    %c0_122 = arith.constant 0 : index
    %152 = vector.load %arg17[%c0_121, %c0_122] : memref<128x128xf32, #tpu.memory_space<vmem>>, vector<128x128xf32>
    %cst_123 = arith.constant dense<0.000000e+00> : vector<16x128xf32>
    %153 = tpu.matmul %151, %152, %cst_123 {dimension_numbers = #tpu.dot_dimension_numbers<[1], [0], [0], [1], [0, 0, 1, 1], [], []>} : vector<16x128xf32>, vector<128x128xf32>, vector<16x128xf32> -> vector<16x128xf32>
    %154 = arith.mulf %153, %151 : vector<16x128xf32>
    %cst_124 = arith.constant dense<0.000000e+00> : vector<16xf32>
    %155 = vector.multi_reduction <add>, %154, %cst_124 [1] : vector<16x128xf32> to vector<16xf32>
    %156 = vector.shape_cast %155 : vector<16xf32> to vector<16x1xf32>
    %cst_125 = arith.constant 0.000000e+00 : f32
    %157 = vector.broadcast %cst_125 : f32 to vector<16x1xf32>
    %158 = arith.subf %157, %156 : vector<16x1xf32>
    %159 = math.exp %158 : vector<16x1xf32>
    %cst_126 = arith.constant 1.000000e+00 : f32
    %160 = vector.broadcast %cst_126 : f32 to vector<16x1xf32>
    %161 = arith.addf %160, %159 : vector<16x1xf32>
    %cst_127 = arith.constant 1.000000e+00 : f32
    %162 = vector.broadcast %cst_127 : f32 to vector<16x1xf32>
    %163 = arith.divf %162, %161 : vector<16x1xf32>
    %164 = vector.shape_cast %163 : vector<16x1xf32> to vector<16x1xf32>
    %165 = vector.broadcast %164 : vector<16x1xf32> to vector<16x128xf32>
    %c0_128 = arith.constant 0 : index
    %c0_129 = arith.constant 0 : index
    %166 = vector.load %arg18[%c0_128, %c0_129] : memref<16x128xf32, #tpu.memory_space<vmem>>, vector<16x128xf32>
    tpu.vector_store %arg18[%c0_128, %c0_129], %165 {strides = array<i32>} : memref<16x128xf32, #tpu.memory_space<vmem>>, vector<16x128xf32>,
    return
  }
}

</mosaic_0001>

<bundles_post_ra>
// kernel: supernode_learn_forward.1
= control target key start
LH: loop header
LB: loop body
LE: loop exit
PB: predicated region body
PF: predicated region fallthrough
CT: control target
= control target key end

     0   :  { %s8509_s0 = inlined_call_operand.vmem [shape: s32[16], index: 0, kind: input, shape index: {}]   ;;  %s8510_s1 = inlined_call_operand.vmem [shape: f32[128,128], index: 1, kind: input, shape index: {}]   ;;  %s8511_s2 = inlined_call_operand.vmem [shape: f32[128,128], index: 2, kind: input, shape index: {}]   ;;  %s8512_s3 = inlined_call_operand.vmem [shape: f32[128,128], index: 3, kind: input, shape index: {}]   ;;  %s8513_s4 = inlined_call_operand.hbm [shape: f32[128,128], index: 4, kind: input, shape index: {}]   ;;  %s8514_s5 = inlined_call_operand.hbm [shape: f32[128,128], index: 5, kind: input, shape index: {}]   ;;  %s8515_s6 = inlined_call_operand.hbm [shape: f32[128,128], index: 6, kind: input, shape index: {}]   ;;  %s8516_s7 = inlined_call_operand.hbm [shape: f32[128,128], index: 7, kind: input, shape index: {}]   ;;  %s8517_s8 = inlined_call_operand.hbm [shape: f32[128,128], index: 8, kind: input, shape index: {}]   ;;  %s8518_s9 = inlined_call_operand.vmem [shape: f32[2,128,128], index: 9, kind: input, shape index: {}]   ;;  %s8519_s10 = inlined_call_operand.vmem [shape: f32[2,1,128], index: 10, kind: input, shape index: {}]   ;;  %s8520_s11 = inlined_call_operand.hbm [shape: f32[2,128,128], index: 11, kind: input, shape index: {}]   ;;  %s8521_s12 = inlined_call_operand.hbm [shape: f32[2,1,128], index: 12, kind: input, shape index: {}]   ;;  %s8522_s13 = inlined_call_operand.hbm [shape: f32[2,128,128], index: 13, kind: input, shape index: {}]   ;;  %s8523_s14 = inlined_call_operand.hbm [shape: f32[2,1,128], index: 14, kind: input, shape index: {}]   ;;  %s8524_s15 = inlined_call_operand.hbm [shape: f32[128,128], index: 15, kind: input, shape index: {}]   ;;  %s8525_s16 = inlined_call_operand.hbm [shape: f32[1,128], index: 16, kind: input, shape index: {}]   ;;  %s8526_s17 = inlined_call_operand.hbm [shape: f32[128,128], index: 17, kind: input, shape index: {}]   ;;  %s8527_s18 = inlined_call_operand.vmem [shape: f32[16,128], index: 18, kind: output, shape index: {}]  }
   0x1   :  { %8530 = sst [smem:[#allocation33_spill]] %s8509_s0 }
   0x2   :  { %8531 = sst [smem:[#allocation34_spill]] %s8510_s1 }
   0x3   :  { %8532 = sst [smem:[#allocation35_spill]] %s8511_s2 }
   0x4   :  { %23 = vsyncpa [#allocation6], 0 }
   0x5   :  { %24 = vsyncpa [#allocation5], 0 }
   0x6   :  { %25 = vsyncpa [#allocation9], 0 }
   0x7   :  { %26 = vsyncpa [#allocation12], 0 }
   0x8   :  { %27 = vsyncpa [#allocation15], 0 }
   0x9   :  { %28 = vsyncpa [#allocation18], 0 }
   0xa   :  { %29 = vsyncpa [#allocation21], 0 }
   0xb   :  { %30 = vsyncpa [#allocation24], 0  ;;  %s7183_s27 = smov [#allocation8]   ;;  %s7184_s29 = smov [#allocation11]  }
   0xc   :  { %s64_s28 = sshll.u32 %s7183_s27, 4  ;;  %s88_s30 = sshll.u32 %s7184_s29, 4  ;;  %s65_s28 = int_to_ptr.vmem [resolvable:$true] %s64_s28  ;;  %s7296_s30 = int_to_ptr.vmem [resolvable:$true] %s88_s30 }
   0xd   :  { %s6891_s1 = scalar_lea.hbm %s8514_s5, 2048 }
   0xe   :  { %p6892_p0 = scmp.ne.s32.totalorder %s8514_s5, %s6891_s1  ;;  %p6895_p1 = scmp.lt.u32.totalorder %s6891_s1, %s8514_s5 }
  0x10   :  { %p6897_p2 = pnand %p6895_p1, %p6892_p0 }
  0x12   :  { %6900 = shalt.err (!%p6897_p2)
}
  0x13   :  { %s6901_s23 = scalar_lea.vmem %s65_s28, 2048  ;;  %p6906_p4 = scmp.lt.s32.totalorder %s65_s28, %s65_s28 }
  0x14   :  { %p6902_p3 = scmp.ne.s32.totalorder %s65_s28, %s6901_s23  ;;  %p6907_p5 = scmp.lt.s32.totalorder %s6901_s23, %s6901_s23 }
  0x16   :  { %p6908_p6 = por %p6907_p5, %p6906_p4 }
  0x18   :  { %p6909_p7 = pnand %p6908_p6, %p6902_p3 }
  0x1a   :  { %6912 = shalt.err (!%p6909_p7)
}
  0x1b   :  { %s7185_s24 = smov 128   ;;  %s7186_s25 = smov 8  }
  0x1c   :  { %70 = dma.hbm_to_vmem [thread:$0]  %s8514_s5, 2048, %s65_s28, [#allocation9], %s7185_s24, %s7185_s24, %s7186_s25  }
  0x1d   :  { %s6913_s19 = scalar_lea.hbm %s8516_s7, 2048 }
  0x1e   :  { %p6914_p8 = scmp.ne.s32.totalorder %s8516_s7, %s6913_s19  ;;  %p6917_p9 = scmp.lt.u32.totalorder %s6913_s19, %s8516_s7 }
  0x20   :  { %p6919_p10 = pnand %p6917_p9, %p6914_p8 }
  0x22   :  { %6922 = shalt.err (!%p6919_p10)
}
  0x23   :  { %s6923_s2 = scalar_lea.vmem %s7296_s30, 2048  ;;  %p6928_p12 = scmp.lt.s32.totalorder %s7296_s30, %s7296_s30 }
  0x24   :  { %p6924_p11 = scmp.ne.s32.totalorder %s7296_s30, %s6923_s2  ;;  %p6929_p13 = scmp.lt.s32.totalorder %s6923_s2, %s6923_s2 }
  0x26   :  { %p6930_p0 = por %p6929_p13, %p6928_p12 }
  0x28   :  { %p6931_p1 = pnand %p6930_p0, %p6924_p11 }
  0x2a   :  { %6934 = shalt.err (!%p6931_p1)
}
  0x2b   :  { %94 = dma.hbm_to_vmem [thread:$0]  %s8516_s7, 2048, %s7296_s30, [#allocation12], %s7185_s24, %s7185_s24, %s7186_s25  }
  0x2c   :  { %s7187_s23 = smov [#allocation14]   ;;  %s7188_s27 = smov [#allocation17]  }
  0x2d   :  { %s116_s26 = sshll.u32 %s7187_s23, 4  ;;  %s140_s29 = sshll.u32 %s7188_s27, 4  ;;  %s117_s26 = int_to_ptr.vmem [resolvable:$true] %s116_s26  ;;  %s7333_s29 = int_to_ptr.vmem [resolvable:$true] %s140_s29 }
  0x2e   :  { %s6935_s1 = scalar_lea.hbm %s8520_s11, 4096 }
  0x2f   :  { %p6936_p2 = scmp.ne.s32.totalorder %s8520_s11, %s6935_s1  ;;  %p6939_p3 = scmp.lt.u32.totalorder %s6935_s1, %s8520_s11 }
  0x31   :  { %p6941_p4 = pnand %p6939_p3, %p6936_p2 }
  0x33   :  { %6944 = shalt.err (!%p6941_p4)
}
  0x34   :  { %s6945_s7 = scalar_lea.vmem %s117_s26, 4096  ;;  %p6950_p6 = scmp.lt.s32.totalorder %s117_s26, %s117_s26 }
  0x35   :  { %p6946_p5 = scmp.ne.s32.totalorder %s117_s26, %s6945_s7  ;;  %p6951_p7 = scmp.lt.s32.totalorder %s6945_s7, %s6945_s7 }
  0x37   :  { %p6952_p8 = por %p6951_p7, %p6950_p6 }
  0x39   :  { %p6953_p9 = pnand %p6952_p8, %p6946_p5 }
  0x3b   :  { %6956 = shalt.err (!%p6953_p9)
}
  0x3c   :  { %122 = dma.hbm_to_vmem [thread:$0]  %s8520_s11, 4096, %s117_s26, [#allocation15], %s7185_s24, %s7185_s24, %s7186_s25  }
  0x3d   :  { %s6957_s27 = scalar_lea.hbm %s8522_s13, 4096 }
  0x3e   :  { %p6958_p10 = scmp.ne.s32.totalorder %s8522_s13, %s6957_s27  ;;  %p6961_p11 = scmp.lt.u32.totalorder %s6957_s27, %s8522_s13 }
  0x40   :  { %p6963_p12 = pnand %p6961_p11, %p6958_p10 }
  0x42   :  { %6966 = shalt.err (!%p6963_p12)
}
  0x43   :  { %s6967_s21 = scalar_lea.vmem %s7333_s29, 4096  ;;  %p6972_p0 = scmp.lt.s32.totalorder %s7333_s29, %s7333_s29 }
  0x44   :  { %p6968_p13 = scmp.ne.s32.totalorder %s7333_s29, %s6967_s21  ;;  %p6973_p1 = scmp.lt.s32.totalorder %s6967_s21, %s6967_s21 }
  0x46   :  { %p6974_p2 = por %p6973_p1, %p6972_p0 }
  0x48   :  { %p6975_p3 = pnand %p6974_p2, %p6968_p13 }
  0x4a   :  { %6978 = shalt.err (!%p6975_p3)
}
  0x4b   :  { %146 = dma.hbm_to_vmem [thread:$0]  %s8522_s13, 4096, %s7333_s29, [#allocation18], %s7185_s24, %s7185_s24, %s7186_s25  }
  0x4c   :  { %s8533_s7 = sld [smem:[#allocation33_spill]]  ;;  %s7189_s5 = smov [#allocation20]  }
  0x4d   :  { %s164_s28 = sshll.u32 %s7189_s5, 4  ;;  %s6979_s0 = scalar_lea.hbm %s8524_s15, 2048  ;;  %s165_s28 = int_to_ptr.vmem [resolvable:$true] %s164_s28 }
  0x4e   :  { %p6980_p4 = scmp.ne.s32.totalorder %s8524_s15, %s6979_s0  ;;  %p6983_p5 = scmp.lt.u32.totalorder %s6979_s0, %s8524_s15 }
  0x50   :  { %p6985_p6 = pnand %p6983_p5, %p6980_p4 }
  0x52   :  { %s37_s30 = sshll.u32 %s8533_s7, 4  ;;  %s38_s30 = int_to_ptr.vmem [resolvable:$true] %s37_s30 }
  0x53   :  { %6988 = shalt.err (!%p6985_p6)
}
  0x54   :  { %s6989_s13 = scalar_lea.vmem %s165_s28, 2048  ;;  %p6994_p8 = scmp.lt.s32.totalorder %s165_s28, %s165_s28 }
  0x55   :  { %p6990_p7 = scmp.ne.s32.totalorder %s165_s28, %s6989_s13  ;;  %p6995_p9 = scmp.lt.s32.totalorder %s6989_s13, %s6989_s13 }
  0x57   :  { %p6996_p10 = por %p6995_p9, %p6994_p8 }
  0x59   :  { %p6997_p11 = pnand %p6996_p10, %p6990_p7 }
  0x5b   :  { %7000 = shalt.err (!%p6997_p11)
}
  0x5c   :  { %170 = dma.hbm_to_vmem [thread:$0]  %s8524_s15, 2048, %s165_s28, [#allocation21], %s7185_s24, %s7185_s24, %s7186_s25  }
  0x5d   :  { %s7001_s26 = scalar_lea.vmem %s38_s30, 16  ;;  %p7006_p13 = scmp.lt.s32.totalorder %s38_s30, %s38_s30 }
  0x5e   :  { %p7002_p12 = scmp.ne.s32.totalorder %s38_s30, %s7001_s26  ;;  %p7007_p0 = scmp.lt.s32.totalorder %s7001_s26, %s7001_s26 }
  0x60   :  { %p7008_p1 = por %p7007_p0, %p7006_p13 }
  0x62   :  { %p7009_p2 = pnand %p7008_p1, %p7002_p12 }
  0x64   :  { %7012 = shalt.err (!%p7009_p2)
}
  0x65   :  { %s7190_s22 = smov [#allocation4]   ;;  %s7191_s2 = smov [#allocation7]  }
  0x66   :  { %40 = dma.vmem_to_smem %s38_s30, 16, %s7190_s22, [#allocation6]  }
  0x67   :  { %s52_s7 = sshll.u32 %s7191_s2, 4  ;;  %s7192_s5 = smov [#allocation10]   ;;  %s53_s7 = int_to_ptr.vmem [resolvable:$true] %s52_s7 }
  0x68   :  { %s76_s23 = sshll.u32 %s7192_s5, 4  ;;  %s7013_s15 = scalar_lea.hbm %s8513_s4, 2048  ;;  %s7388_s23 = int_to_ptr.vmem [resolvable:$true] %s76_s23 }
  0x69   :  { %p7014_p3 = scmp.ne.s32.totalorder %s8513_s4, %s7013_s15  ;;  %p7017_p4 = scmp.lt.u32.totalorder %s7013_s15, %s8513_s4 }
  0x6b   :  { %p7019_p5 = pnand %p7017_p4, %p7014_p3 }
  0x6d   :  { %7022 = shalt.err (!%p7019_p5)
}
  0x6e   :  { %s7023_s30 = scalar_lea.vmem %s53_s7, 2048  ;;  %p7028_p7 = scmp.lt.s32.totalorder %s53_s7, %s53_s7 }
  0x6f   :  { %p7024_p6 = scmp.ne.s32.totalorder %s53_s7, %s7023_s30  ;;  %p7029_p8 = scmp.lt.s32.totalorder %s7023_s30, %s7023_s30 }
  0x71   :  { %p7030_p9 = por %p7029_p8, %p7028_p7 }
  0x73   :  { %p7031_p10 = pnand %p7030_p9, %p7024_p6 }
  0x75   :  { %7034 = shalt.err (!%p7031_p10)
}
  0x76   :  { %58 = dma.hbm_to_vmem [thread:$0]  %s8513_s4, 2048, %s53_s7, [#allocation5], %s7185_s24, %s7185_s24, %s7186_s25  }
  0x77   :  { %s7035_s26 = scalar_lea.hbm %s8515_s6, 2048 }
  0x78   :  { %p7036_p11 = scmp.ne.s32.totalorder %s8515_s6, %s7035_s26  ;;  %p7039_p12 = scmp.lt.u32.totalorder %s7035_s26, %s8515_s6 }
  0x7a   :  { %p7041_p13 = pnand %p7039_p12, %p7036_p11 }
  0x7c   :  { %7044 = shalt.err (!%p7041_p13)
}
  0x7d   :  { %s7045_s0 = scalar_lea.vmem %s7388_s23, 2048  ;;  %p7050_p1 = scmp.lt.s32.totalorder %s7388_s23, %s7388_s23 }
  0x7e   :  { %p7046_p0 = scmp.ne.s32.totalorder %s7388_s23, %s7045_s0  ;;  %p7051_p2 = scmp.lt.s32.totalorder %s7045_s0, %s7045_s0 }
  0x80   :  { %p7052_p3 = por %p7051_p2, %p7050_p1 }
  0x82   :  { %p7053_p4 = pnand %p7052_p3, %p7046_p0 }
  0x84   :  { %7056 = shalt.err (!%p7053_p4)
}
  0x85   :  { %82 = dma.hbm_to_vmem [thread:$0]  %s8515_s6, 2048, %s7388_s23, [#allocation9], %s7185_s24, %s7185_s24, %s7186_s25  }
  0x86   :  { %s7193_s15 = smov [#allocation13]   ;;  %s7194_s19 = smov [#allocation16]  }
  0x87   :  { %s100_s28 = sshll.u32 %s7193_s15, 4  ;;  %s128_s1 = sshll.u32 %s7194_s19, 4  ;;  %s101_s28 = int_to_ptr.vmem [resolvable:$true] %s100_s28  ;;  %s7425_s1 = int_to_ptr.vmem [resolvable:$true] %s128_s1 }
  0x88   :  { %s7057_s21 = scalar_lea.hbm %s8517_s8, 2048 }
  0x89   :  { %p7058_p5 = scmp.ne.s32.totalorder %s8517_s8, %s7057_s21  ;;  %p7061_p6 = scmp.lt.u32.totalorder %s7057_s21, %s8517_s8 }
  0x8b   :  { %p7063_p7 = pnand %p7061_p6, %p7058_p5 }
  0x8d   :  { %7066 = shalt.err (!%p7063_p7)
}
  0x8e   :  { %s7067_s6 = scalar_lea.vmem %s101_s28, 2048  ;;  %p7072_p9 = scmp.lt.s32.totalorder %s101_s28, %s101_s28 }
  0x8f   :  { %p7068_p8 = scmp.ne.s32.totalorder %s101_s28, %s7067_s6  ;;  %p7073_p10 = scmp.lt.s32.totalorder %s7067_s6, %s7067_s6 }
  0x91   :  { %p7074_p11 = por %p7073_p10, %p7072_p9 }
  0x93   :  { %p7075_p12 = pnand %p7074_p11, %p7068_p8 }
  0x95   :  { %7078 = shalt.err (!%p7075_p12)
}
  0x96   :  { %106 = dma.hbm_to_vmem [thread:$0]  %s8517_s8, 2048, %s101_s28, [#allocation12], %s7185_s24, %s7185_s24, %s7186_s25  }
  0x97   :  { %s7079_s27 = scalar_lea.hbm %s8521_s12, 32 }
  0x98   :  { %p7080_p13 = scmp.ne.s32.totalorder %s8521_s12, %s7079_s27  ;;  %p7083_p0 = scmp.lt.u32.totalorder %s7079_s27, %s8521_s12 }
  0x9a   :  { %p7085_p1 = pnand %p7083_p0, %p7080_p13 }
  0x9c   :  { %7088 = shalt.err (!%p7085_p1)
}
  0x9d   :  { %s7089_s19 = scalar_lea.vmem %s7425_s1, 32  ;;  %p7094_p3 = scmp.lt.s32.totalorder %s7425_s1, %s7425_s1 }
  0x9e   :  { %p7090_p2 = scmp.ne.s32.totalorder %s7425_s1, %s7089_s19  ;;  %p7095_p4 = scmp.lt.s32.totalorder %s7089_s19, %s7089_s19 }
  0xa0   :  { %p7096_p5 = por %p7095_p4, %p7094_p3 }
  0xa2   :  { %p7097_p6 = pnand %p7096_p5, %p7090_p2 }
  0xa4   :  { %7100 = shalt.err (!%p7097_p6)
}
  0xa5   :  { %s7195_s8 = smov 16   ;;  %s7196_s28 = smov 1  }
  0xa6   :  { %134 = dma.hbm_to_vmem [thread:$0]  %s8521_s12, 32, %s7425_s1, [#allocation15], %s7195_s8, %s7195_s8, %s7196_s28  }
  0xa7   :  { %s7197_s21 = smov [#allocation19]   ;;  %s7198_s29 = smov [#allocation22]  }
  0xa8   :  { %s152_s13 = sshll.u32 %s7197_s21, 4  ;;  %s177_s11 = sshll.u32 %s7198_s29, 4  ;;  %s153_s13 = int_to_ptr.vmem [resolvable:$true] %s152_s13  ;;  %s178_s11 = int_to_ptr.vmem [resolvable:$true] %s177_s11 }
  0xa9   :  { %s7101_s23 = scalar_lea.hbm %s8523_s14, 32 }
  0xaa   :  { %p7102_p7 = scmp.ne.s32.totalorder %s8523_s14, %s7101_s23  ;;  %p7105_p8 = scmp.lt.u32.totalorder %s7101_s23, %s8523_s14 }
  0xac   :  { %p7107_p9 = pnand %p7105_p8, %p7102_p7 }
  0xae   :  { %7110 = shalt.err (!%p7107_p9)
}
  0xaf   :  { %s7111_s12 = scalar_lea.vmem %s153_s13, 32  ;;  %p7116_p11 = scmp.lt.s32.totalorder %s153_s13, %s153_s13 }
  0xb0   :  { %p7112_p10 = scmp.ne.s32.totalorder %s153_s13, %s7111_s12  ;;  %p7117_p12 = scmp.lt.s32.totalorder %s7111_s12, %s7111_s12 }
  0xb2   :  { %p7118_p13 = por %p7117_p12, %p7116_p11 }
  0xb4   :  { %p7119_p0 = pnand %p7118_p13, %p7112_p10 }
  0xb6   :  { %7122 = shalt.err (!%p7119_p0)
}
  0xb7   :  { %158 = dma.hbm_to_vmem [thread:$0]  %s8523_s14, 32, %s153_s13, [#allocation18], %s7195_s8, %s7195_s8, %s7196_s28  }
  0xb8   :  { %s7123_s15 = scalar_lea.hbm %s8525_s16, 16 }
  0xb9   :  { %p7124_p1 = scmp.ne.s32.totalorder %s8525_s16, %s7123_s15  ;;  %p7127_p2 = scmp.lt.u32.totalorder %s7123_s15, %s8525_s16 }
  0xbb   :  { %p7129_p3 = pnand %p7127_p2, %p7124_p1 }
  0xbd   :  { %7132 = shalt.err (!%p7129_p3)
}
  0xbe   :  { %s7133_s29 = scalar_lea.vmem %s178_s11, 16  ;;  %s7137_s26 = scalar_lea.vmem %s178_s11, 32 }
  0xbf   :  { %p7134_p4 = scmp.ne.s32.totalorder %s178_s11, %s7133_s29  ;;  %p7138_p5 = scmp.lt.s32.totalorder %s178_s11, %s178_s11 }
  0xc0   :  { %p7139_p6 = scmp.lt.s32.totalorder %s7137_s26, %s7133_s29 }
  0xc2   :  { %p7140_p7 = por %p7139_p6, %p7138_p5 }
  0xc4   :  { %p7141_p8 = pnand %p7140_p7, %p7134_p4 }
  0xc6   :  { %7144 = shalt.err (!%p7141_p8)
}
  0xc7   :  { %180 = dma.hbm_to_vmem [thread:$0]  %s8525_s16, 16, %s178_s11, [#allocation21]  }
  0xc8   :  { %s7199_s28 = smov [#allocation23]   ;;  %s7145_s22 = scalar_lea.hbm %s8526_s17, 2048 }
  0xc9   :  { %s186_s13 = sshll.u32 %s7199_s28, 4  ;;  %p7146_p9 = scmp.ne.s32.totalorder %s8526_s17, %s7145_s22  ;;  %s187_s13 = int_to_ptr.vmem [resolvable:$true] %s186_s13 }
  0xca   :  { %p7149_p10 = scmp.lt.u32.totalorder %s7145_s22, %s8526_s17 }
  0xcc   :  { %p7151_p11 = pnand %p7149_p10, %p7146_p9 }
  0xce   :  { %7154 = shalt.err (!%p7151_p11)
}
  0xcf   :  { %s7155_s1 = scalar_lea.vmem %s187_s13, 2048  ;;  %p7160_p13 = scmp.lt.s32.totalorder %s187_s13, %s187_s13 }
  0xd0   :  { %p7156_p12 = scmp.ne.s32.totalorder %s187_s13, %s7155_s1  ;;  %p7161_p0 = scmp.lt.s32.totalorder %s7155_s1, %s7155_s1 }
  0xd2   :  { %p7162_p1 = por %p7161_p0, %p7160_p13 }
  0xd4   :  { %p7163_p2 = pnand %p7162_p1, %p7156_p12 }
  0xd6   :  { %7166 = shalt.err (!%p7163_p2)
}
  0xd7   :  { %192 = dma.hbm_to_vmem [thread:$0]  %s8526_s17, 2048, %s187_s13, [#allocation24], %s7185_s24, %s7185_s24, %s7186_s25  }
  0xd8   :  { %7167 = dma.done.wait [#allocation6], 16  }
  0xd9   :  { %7168 = vsyncadd [#allocation6], 4294967280 }
  0xda   :  { %7169 = dma.done.wait [#allocation5], 2048  }
  0xdb   :  { %7170 = vsyncadd [#allocation5], 4294965248 }
  0xdc   :  { %7171 = dma.done.wait [#allocation9], 4096  }
  0xdd   :  { %7172 = vsyncadd [#allocation9], 4294963200 }
  0xde   :  { %7173 = dma.done.wait [#allocation12], 4096  }
  0xdf   :  { %7174 = vsyncadd [#allocation12], 4294963200 }
  0xe0   :  { %7175 = dma.done.wait [#allocation15], 4128  }
  0xe1   :  { %7176 = vsyncadd [#allocation15], 4294963168 }
  0xe2   :  { %7177 = dma.done.wait [#allocation18], 4128  }
  0xe3   :  { %7178 = vsyncadd [#allocation18], 4294963168 }
  0xe4   :  { %7179 = dma.done.wait [#allocation21], 2064  }
  0xe5   :  { %7180 = vsyncadd [#allocation21], 4294965232 }
  0xe6   :  { %7181 = dma.done.wait [#allocation24], 2048  }
  0xe7   :  { %7182 = vsyncadd [#allocation24], 4294965248 }
  0xe8   :  { %232 = sfence }
  0xe9   :  { %v249_v0 = vld [vmem:[#allocation11] sm:$0xff]  ;;  %v250_v1 = vld [vmem:[#allocation11 + $0x8] sm:$0xff]  ;;  %v251_v5 = vld [vmem:[#allocation11 + $0x10] sm:$0xff]  ;;  %s8534_s25 = sld [smem:[#allocation34_spill]]  ;;  %s8535_s7 = sld [smem:[#allocation35_spill]] }
  0xea   :  { %v426_v2 = vld [vmem:[#allocation13] sm:$0xff]  ;;  %v5857_v3 = vpack.c.bf16 %v250_v1, %v249_v0  ;;  %v427_v4 = vld [vmem:[#allocation13 + $0x8] sm:$0xff]  ;;  %v252_v6 = vld [vmem:[#allocation11 + $0x18] sm:$0xff]  ;;  %s3989_s14 = sld [smem:[#allocation4 + $0x9]]  ;;  %s3679_s8 = sld [smem:[#allocation4]] }
  0xeb   :  { %v5889_v7 = vpack.c.bf16 %v427_v4, %v426_v2  ;;  %v5861_v8 = vpack.c.bf16 %v252_v6, %v251_v5  ;;  %v428_v9 = vld [vmem:[#allocation13 + $0x10] sm:$0xff]  ;;  %v429_v10 = vld [vmem:[#allocation13 + $0x18] sm:$0xff]  ;;  %v253_v11 = vld [vmem:[#allocation11 + $0x20] sm:$0xff]  ;;  %s3981_s28 = sld [smem:[#allocation4 + $0x1]]  ;;  %s3982_s13 = sld [smem:[#allocation4 + $0x2]] }
  0xec   :  { %5858 = vmatprep.subr.bf16.mxu0 %v5857_v3  ;;  %v5893_v12 = vpack.c.bf16 %v429_v10, %v428_v9  ;;  %v254_v13 = vld [vmem:[#allocation11 + $0x28] sm:$0xff]  ;;  %v430_v14 = vld [vmem:[#allocation13 + $0x20] sm:$0xff]  ;;  %v255_v18 = vld [vmem:[#allocation11 + $0x30] sm:$0xff]  ;;  %s3983_s6 = sld [smem:[#allocation4 + $0x3]]  ;;  %s3984_s23 = sld [smem:[#allocation4 + $0x4]] }
  0xed   :  { %v431_v15 = vld [vmem:[#allocation13 + $0x28] sm:$0xff]  ;;  %5890 = vmatprep.subr.bf16.mxu1 %v5889_v7  ;;  %5860 = vmatpush3.bf16.msra.mxu0 %v5857_v3  ;;  %v5865_v16 = vpack.c.bf16 %v254_v13, %v253_v11  ;;  %v256_v19 = vld [vmem:[#allocation11 + $0x38] sm:$0xff]  ;;  %v432_v20 = vld [vmem:[#allocation13 + $0x30] sm:$0xff]  ;;  %s3985_s22 = sld [smem:[#allocation4 + $0x5]]  ;;  %s3986_s2 = sld [smem:[#allocation4 + $0x6]] }
  0xee   :  { %5892 = vmatpush3.bf16.msra.mxu1 %v5889_v7  ;;  %5862 = vmatprep.subr.bf16.mxu0 %v5861_v8  ;;  %v5897_v17 = vpack.c.bf16 %v431_v15, %v430_v14  ;;  %v433_v21 = vld [vmem:[#allocation13 + $0x38] sm:$0xff]  ;;  %v5869_v22 = vpack.c.bf16 %v256_v19, %v255_v18  ;;  %v257_v24 = vld [vmem:[#allocation11 + $0x40] sm:$0xff]  ;;  %v258_v25 = vld [vmem:[#allocation11 + $0x48] sm:$0xff]  ;;  %s8500_s5 = sld [smem:[#allocation4 + $0x7]] }
  0xef   :  { %5894 = vmatprep.subr.bf16.mxu1 %v5893_v12  ;;  %v5901_v23 = vpack.c.bf16 %v433_v21, %v432_v20  ;;  %v233_v26 = vld [vmem:[%s8534_s25] sm:$0xff]  ;;  %v434_v27 = vld [vmem:[#allocation13 + $0x40] sm:$0xff]  ;;  %v435_v28 = vld [vmem:[#allocation13 + $0x48] sm:$0xff]  ;;  %v5873_v30 = vpack.c.bf16 %v258_v25, %v257_v24 }
  0xf0   :  { %4699 = vmatprep.mubr.f32.mxu0 %v233_v26  ;;  %v410_v29 = vld [vmem:[%s8535_s7] sm:$0xff]  ;;  %v5905_v31 = vpack.c.bf16 %v435_v28, %v434_v27  ;;  %v260_v33 = vld [vmem:[#allocation11 + $0x58] sm:$0xff]  ;;  %v261_v38 = vld [vmem:[#allocation11 + $0x60] sm:$0xff]  ;;  %s3680_s12 = scalar_lea.vmem [#allocation2], %s3679_s8 }
  0xf1   :  { %5864 = vmatpush3.bf16.msra.mxu0 %v5861_v8  ;;  %4755 = vmatprep.mubr.f32.mxu1 %v410_v29  ;;  %v259_v32 = vld [vmem:[#allocation11 + $0x50] sm:$0xff]  ;;  %v437_v35 = vld [vmem:[#allocation13 + $0x58] sm:$0xff]  ;;  %v262_v39 = vld [vmem:[#allocation11 + $0x68] sm:$0xff]  ;;  %s3684_s1 = scalar_lea.vmem [#allocation2], %s3981_s28  ;;  %s3688_s16 = scalar_lea.vmem [#allocation2], %s3982_s13 }
  0xf2   :  { %5896 = vmatpush3.bf16.msra.mxu1 %v5893_v12  ;;  %5866 = vmatprep.subr.bf16.mxu0 %v5865_v16  ;;  %v436_v34 = vld [vmem:[#allocation13 + $0x50] sm:$0xff]  ;;  %v5877_v36 = vpack.c.bf16 %v260_v33, %v259_v32  ;;  %v438_v40 = vld [vmem:[#allocation13 + $0x60] sm:$0xff]  ;;  %v439_v41 = vld [vmem:[#allocation13 + $0x68] sm:$0xff]  ;;  %v5881_v42 = vpack.c.bf16 %v262_v39, %v261_v38  ;;  %s3692_s11 = scalar_lea.vmem [#allocation2], %s3983_s6  ;;  %s3696_s17 = scalar_lea.vmem [#allocation2], %s3984_s23 }
  0xf3   :  { %5898 = vmatprep.subr.bf16.mxu1 %v5897_v17  ;;  %v5909_v37 = vpack.c.bf16 %v437_v35, %v436_v34  ;;  %v5913_v43 = vpack.c.bf16 %v439_v41, %v438_v40  ;;  %v263_v44 = vld [vmem:[#allocation11 + $0x70] sm:$0xff]  ;;  %v264_v45 = vld [vmem:[#allocation11 + $0x78] sm:$0xff]  ;;  %v653_v53 = vld [vmem:[%s8518_s9 + $0x10] sm:$0xff]  ;;  %s3700_s24 = scalar_lea.vmem [#allocation2], %s3985_s22  ;;  %s3704_s0 = scalar_lea.vmem [#allocation2], %s3986_s2 }
  0xf4   :  { %v440_v46 = vld [vmem:[#allocation13 + $0x70] sm:$0xff]  ;;  %v441_v47 = vld [vmem:[#allocation13 + $0x78] sm:$0xff]  ;;  %v5885_v48 = vpack.c.bf16 %v264_v45, %v263_v44  ;;  %v654_v54 = vld [vmem:[%s8518_s9 + $0x18] sm:$0xff]  ;;  %s3708_s4 = scalar_lea.vmem [#allocation2], %s8500_s5 }
  0xf5   :  { %5868 = vmatpush3.bf16.msra.mxu0 %v5865_v16  ;;  %v5917_v49 = vpack.c.bf16 %v441_v47, %v440_v46  ;;  %v651_v50 = vld [vmem:[%s8518_s9] sm:$0xff]  ;;  %v652_v51 = vld [vmem:[%s8518_s9 + $0x8] sm:$0xff]  ;;  %v235_v57 = vld [vmem:[%s8534_s25 + $0x10] sm:$0xff]  ;;  %v7531_v59 = vpack.c.bf16 %v654_v54, %v653_v53 }
  0xf6   :  { %5900 = vmatpush3.bf16.msra.mxu1 %v5897_v17  ;;  %5870 = vmatprep.subr.bf16.mxu0 %v5869_v22  ;;  %v7510_v52 = vpack.c.bf16 %v652_v51, %v651_v50  ;;  %v234_v55 = vld [vmem:[%s8534_s25 + $0x8] sm:$0xff]  ;;  %v412_v58 = vld [vmem:[%s8535_s7 + $0x10] sm:$0xff]  ;;  %v655_v60 = vld [vmem:[%s8518_s9 + $0x20] sm:$0xff] }
  0xf7   :  { %5902 = vmatprep.subr.bf16.mxu1 %v5901_v23  ;;  %v411_v56 = vld [vmem:[%s8535_s7 + $0x8] sm:$0xff]  ;;  %v236_v62 = vld [vmem:[%s8534_s25 + $0x18] sm:$0xff]  ;;  %v237_v0 = vld [vmem:[%s8534_s25 + $0x20] sm:$0xff] }
  0xf8   :  { %v656_v61 = vld [vmem:[%s8518_s9 + $0x28] sm:$0xff]  ;;  %v413_v63 = vld [vmem:[%s8535_s7 + $0x18] sm:$0xff]  ;;  %v414_v1 = vld [vmem:[%s8535_s7 + $0x20] sm:$0xff] }
  0xf9   :  { %5872 = vmatpush3.bf16.msra.mxu0 %v5869_v22  ;;  %v7553_v2 = vpack.c.bf16 %v656_v61, %v655_v60  ;;  %v657_v3 = vld [vmem:[%s8518_s9 + $0x30] sm:$0xff]  ;;  %v658_v4 = vld [vmem:[%s8518_s9 + $0x38] sm:$0xff]  ;;  %v238_v5 = vld [vmem:[%s8534_s25 + $0x28] sm:$0xff] }
  0xfa   :  { %5904 = vmatpush3.bf16.msra.mxu1 %v5901_v23  ;;  %5874 = vmatprep.subr.bf16.mxu0 %v5873_v30  ;;  %v415_v6 = vld [vmem:[%s8535_s7 + $0x28] sm:$0xff]  ;;  %v239_v7 = vld [vmem:[%s8534_s25 + $0x30] sm:$0xff]  ;;  %v7575_v9 = vpack.c.bf16 %v658_v4, %v657_v3  ;;  %v659_v10 = vld [vmem:[%s8518_s9 + $0x40] sm:$0xff] }
  0xfb   :  { %5906 = vmatprep.subr.bf16.mxu1 %v5905_v31  ;;  %v416_v8 = vld [vmem:[%s8535_s7 + $0x30] sm:$0xff]  ;;  %v660_v11 = vld [vmem:[%s8518_s9 + $0x48] sm:$0xff]  ;;  %v240_v12 = vld [vmem:[%s8534_s25 + $0x38] sm:$0xff] }
  0xfc   :  { %v417_v13 = vld [vmem:[%s8535_s7 + $0x38] sm:$0xff]  ;;  %v241_v14 = vld [vmem:[%s8534_s25 + $0x40] sm:$0xff]  ;;  %v7597_v16 = vpack.c.bf16 %v660_v11, %v659_v10  ;;  %v661_v17 = vld [vmem:[%s8518_s9 + $0x50] sm:$0xff] }
  0xfd   :  { %5876 = vmatpush3.bf16.msra.mxu0 %v5873_v30  ;;  %v418_v15 = vld [vmem:[%s8535_s7 + $0x40] sm:$0xff]  ;;  %v662_v18 = vld [vmem:[%s8518_s9 + $0x58] sm:$0xff]  ;;  %v242_v19 = vld [vmem:[%s8534_s25 + $0x48] sm:$0xff] }
  0xfe   :  { %5908 = vmatpush3.bf16.msra.mxu1 %v5905_v31  ;;  %5878 = vmatprep.subr.bf16.mxu0 %v5877_v36  ;;  %v419_v20 = vld [vmem:[%s8535_s7 + $0x48] sm:$0xff]  ;;  %v243_v21 = vld [vmem:[%s8534_s25 + $0x50] sm:$0xff]  ;;  %v7619_v23 = vpack.c.bf16 %v662_v18, %v661_v17  ;;  %v663_v24 = vld [vmem:[%s8518_s9 + $0x60] sm:$0xff] }
  0xff   :  { %5910 = vmatprep.subr.bf16.mxu1 %v5909_v37  ;;  %v420_v22 = vld [vmem:[%s8535_s7 + $0x50] sm:$0xff]  ;;  %v664_v25 = vld [vmem:[%s8518_s9 + $0x68] sm:$0xff]  ;;  %v244_v26 = vld [vmem:[%s8534_s25 + $0x58] sm:$0xff] }
 0x100   :  { %v421_v27 = vld [vmem:[%s8535_s7 + $0x58] sm:$0xff]  ;;  %v245_v28 = vld [vmem:[%s8534_s25 + $0x60] sm:$0xff]  ;;  %v7641_v30 = vpack.c.bf16 %v664_v25, %v663_v24  ;;  %v246_v31 = vld [vmem:[%s8534_s25 + $0x68] sm:$0xff] }
 0x101   :  { %5880 = vmatpush3.bf16.msra.mxu0 %v5877_v36  ;;  %v422_v29 = vld [vmem:[%s8535_s7 + $0x60] sm:$0xff]  ;;  %v423_v32 = vld [vmem:[%s8535_s7 + $0x68] sm:$0xff]  ;;  %v247_v33 = vld [vmem:[%s8534_s25 + $0x70] sm:$0xff] }
 0x102   :  { %5912 = vmatpush3.bf16.msra.mxu1 %v5909_v37  ;;  %5882 = vmatprep.subr.bf16.mxu0 %v5881_v42  ;;  %v424_v34 = vld [vmem:[%s8535_s7 + $0x70] sm:$0xff]  ;;  %v248_v35 = vld [vmem:[%s8534_s25 + $0x78] sm:$0xff]  ;;  %v604_v41 = vld [vmem:[%s8512_s3 + $0x8] sm:$0xff] }
 0x103   :  { %5914 = vmatprep.subr.bf16.mxu1 %v5913_v43  ;;  %v425_v36 = vld [vmem:[%s8535_s7 + $0x78] sm:$0xff]  ;;  %v665_v37 = vld [vmem:[%s8518_s9 + $0x70] sm:$0xff]  ;;  %s3716_s7 = scalar_lea.vmem [#allocation2], %s3989_s14 }
 0x104   :  { %v666_v38 = vld [vmem:[%s8518_s9 + $0x78] sm:$0xff]  ;;  %v7675_v40 = vld [vmem:[#allocation10] sm:$0xff] }
 0x105   :  { %5884 = vmatpush3.bf16.msra.mxu0 %v5881_v42  ;;  %v7670_v39 = vpack.c.bf16 %v666_v38, %v665_v37  ;;  %v603_v42 = vld [vmem:[%s8512_s3] sm:$0xff] }
 0x106   :  { %5916 = vmatpush3.bf16.msra.mxu1 %v5913_v43  ;;  %5886 = vmatprep.subr.bf16.mxu0 %v5885_v48 }
 0x107   :  { %5918 = vmatprep.subr.bf16.mxu1 %v5917_v49 }
 0x109   :  { %5888 = vmatpush3.bf16.msra.mxu0 %v5885_v48 }
 0x10a   :  { %5920 = vmatpush3.bf16.msra.mxu1 %v5917_v49  ;;  %5922 = vmatprep.subr.bf16.mxu0 %v7510_v52 }
 0x10c   :  { %4700 = vmatmul.mubr.f32.vlgmr.msra.gmra.mrb[0].mxu0 %v234_v55 }
 0x10d   :  { %4756 = vmatmul.mubr.f32.vlgmr.msra.gmra.mrb[0].mxu1 %v411_v56  ;;  %4702 = vmatprep.mubr.f32.mxu0 %v235_v57 }
 0x10e   :  { %4758 = vmatprep.mubr.f32.mxu1 %v412_v58  ;;  %5924 = vmatpush3.bf16.msra.mxu0 %v7510_v52 }
 0x10f   :  { %5926 = vmatprep.subr.bf16.mxu0 %v7531_v59 }
 0x110   :  { %4703 = vmatmul.mubr.f32.gmra.mrb[2].mxu0 %v236_v62 }
 0x111   :  { %4759 = vmatmul.mubr.f32.gmra.mrb[2].mxu1 %v413_v63  ;;  %4705 = vmatprep.mubr.f32.mxu0 %v237_v0 }
 0x112   :  { %4761 = vmatprep.mubr.f32.mxu1 %v414_v1  ;;  %5928 = vmatpush3.bf16.msra.mxu0 %v7531_v59 }
 0x113   :  { %5930 = vmatprep.subr.bf16.mxu0 %v7553_v2 }
 0x114   :  { %4706 = vmatmul.mubr.f32.gmra.mrb[4].mxu0 %v238_v5 }
 0x115   :  { %4762 = vmatmul.mubr.f32.gmra.mrb[4].mxu1 %v415_v6  ;;  %4708 = vmatprep.mubr.f32.mxu0 %v239_v7 }
 0x116   :  { %4764 = vmatprep.mubr.f32.mxu1 %v416_v8  ;;  %5932 = vmatpush3.bf16.msra.mxu0 %v7553_v2 }
 0x117   :  { %5934 = vmatprep.subr.bf16.mxu0 %v7575_v9 }
 0x118   :  { %4709 = vmatmul.mubr.f32.gmra.mrb[6].mxu0 %v240_v12 }
 0x119   :  { %4765 = vmatmul.mubr.f32.gmra.mrb[6].mxu1 %v417_v13  ;;  %4711 = vmatprep.mubr.f32.mxu0 %v241_v14 }
 0x11a   :  { %4767 = vmatprep.mubr.f32.mxu1 %v418_v15  ;;  %5936 = vmatpush3.bf16.msra.mxu0 %v7575_v9 }
 0x11b   :  { %5938 = vmatprep.subr.bf16.mxu0 %v7597_v16 }
 0x11c   :  { %4712 = vmatmul.mubr.f32.gmra.mrb[8].mxu0 %v242_v19 }
 0x11d   :  { %4768 = vmatmul.mubr.f32.gmra.mrb[8].mxu1 %v419_v20  ;;  %4714 = vmatprep.mubr.f32.mxu0 %v243_v21 }
 0x11e   :  { %4770 = vmatprep.mubr.f32.mxu1 %v420_v22  ;;  %5940 = vmatpush3.bf16.msra.mxu0 %v7597_v16 }
 0x11f   :  { %5942 = vmatprep.subr.bf16.mxu0 %v7619_v23 }
 0x120   :  { %4715 = vmatmul.mubr.f32.gmra.mrb[10].mxu0 %v244_v26 }
 0x121   :  { %4771 = vmatmul.mubr.f32.gmra.mrb[10].mxu1 %v421_v27  ;;  %4717 = vmatprep.mubr.f32.mxu0 %v245_v28 }
 0x122   :  { %4773 = vmatprep.mubr.f32.mxu1 %v422_v29  ;;  %5944 = vmatpush3.bf16.msra.mxu0 %v7619_v23 }
 0x123   :  { %5946 = vmatprep.subr.bf16.mxu0 %v7641_v30 }
 0x124   :  { %4718 = vmatmul.mubr.f32.gmra.mrb[12].mxu0 %v246_v31 }
 0x125   :  { %4774 = vmatmul.mubr.f32.gmra.mrb[12].mxu1 %v423_v32  ;;  %4720 = vmatprep.mubr.f32.mxu0 %v247_v33 }
 0x126   :  { %4776 = vmatprep.mubr.f32.mxu1 %v424_v34  ;;  %5948 = vmatpush3.bf16.msra.mxu0 %v7641_v30 }
 0x127   :  { %5950 = vmatprep.subr.bf16.mxu0 %v7670_v39 }
 0x128   :  { %4721 = vmatmul.mubr.f32.gmra.mrb[14].mxu0 %v248_v35 }
 0x129   :  { %4777 = vmatmul.mubr.f32.gmra.mrb[14].mxu1 %v425_v36 }
 0x12a   :  { %5952 = vmatpush3.bf16.msra.mxu0 %v7670_v39  ;;  %4867 = vmatprep.mubr.f32.mxu1 %v7675_v40 }
 0x12b   :  { %5986 = vmatprep.subr.bf16.mxu0 %v7510_v52 }
 0x1df   :  { %v4701_v43 = vpop.f32.mrb[0].mxu0 }
 0x1e0   :  { %v7684_v44 = vadd.f32 %v4701_v43, %v604_v41  ;;  %v4757_v45 = vpop.f32.mrb[0].mxu1  ;;  %v331_v46 = vpop.f32.mrb[1].mxu0  ;;  %v7749_v41 = vld [vmem:[#allocation10 + $0x8] sm:$0xff] }
 0x1e1   :  { %v588_v47 = vadd.f32 %v4757_v45, %v4701_v43  ;;  %v7686_v48 = vadd.f32 %v603_v42, %v331_v46  ;;  %v508_v49 = vpop.f32.mrb[1].mxu1  ;;  %v7751_v42 = vld [vmem:[#allocation10 + $0x10] sm:$0xff]  ;;  %v7755_v43 = vld [vmem:[#allocation10 + $0x18] sm:$0xff]  ;;  %v7761_v45 = vld [vmem:[#allocation10 + $0x28] sm:$0xff] }
 0x1e2   :  { %v587_v50 = vadd.f32 %v508_v49, %v331_v46  ;;  %v7767_v46 = vld [vmem:[#allocation10 + $0x38] sm:$0xff]  ;;  %v7773_v49 = vld [vmem:[#allocation10 + $0x48] sm:$0xff] }
 0x1e3   :  { %v7690_v51 = vpack.c.bf16 %v7684_v44, %v7686_v48  ;;  %v7692_v53 = vpop.f32.mrb[2].mxu0 }
 0x1e4   :  { %v5953_v54 = vpack.c.bf16 %v588_v47, %v587_v50  ;;  %v4760_v55 = vpop.f32.mrb[2].mxu1  ;;  %4811 = vmatprep.mubr.f32.mxu0 %v587_v50  ;;  %v7694_v56 = vpop.f32.mrb[3].mxu0  ;;  %v7775_v50 = vld [vmem:[#allocation10 + $0x50] sm:$0xff] }
 0x1e5   :  { %v590_v57 = vadd.f32 %v4760_v55, %v7692_v53  ;;  %v518_v58 = vpop.f32.mrb[3].mxu1  ;;  %4812 = vmatmul.mubr.f32.vlgmr.msra.gmra.mrb[16].mxu0 %v588_v47  ;;  %v7769_v47 = vld [vmem:[#allocation10 + $0x40] sm:$0xff] }
 0x1e6   :  { %v589_v60 = vadd.f32 %v518_v58, %v7694_v56  ;;  %5954 = vmatprep.subr.bf16.mxu1 %v5953_v54  ;;  %5988 = vmatpush3.bf16.msra.mxu0 %v7510_v52  ;;  %v7781_v55 = vld [vmem:[#allocation10 + $0x60] sm:$0xff]  ;;  %v7787_v58 = vld [vmem:[#allocation10 + $0x70] sm:$0xff] }
 0x1e7   :  { %5956 = vmatpush3.bf16.msra.mxu1 %v5953_v54  ;;  %v7699_v61 = vpop.f32.mrb[4].mxu0  ;;  %5990 = vmatprep.subr.bf16.mxu0 %v7531_v59  ;;  %v7779_v54 = vld [vmem:[#allocation10 + $0x58] sm:$0xff] }
 0x1e8   :  { %v5957_v62 = vpack.c.bf16 %v590_v57, %v589_v60  ;;  %v4763_v63 = vpop.f32.mrb[4].mxu1  ;;  %4814 = vmatprep.mubr.f32.mxu0 %v589_v60  ;;  %v7702_v0 = vpop.f32.mrb[5].mxu0  ;;  %v7791_v60 = vld [vmem:[#allocation10 + $0x78] sm:$0xff] }
 0x1e9   :  { %v592_v1 = vadd.f32 %v4763_v63, %v7699_v61  ;;  %v528_v3 = vpop.f32.mrb[5].mxu1  ;;  %4815 = vmatmul.mubr.f32.gmra.mrb[18].mxu0 %v590_v57  ;;  %v7785_v57 = vld [vmem:[#allocation10 + $0x68] sm:$0xff]  ;;  %v3960_v63 = vld [vmem:[%s8518_s9 + $0x88] sm:$0xff] }
 0x1ea   :  { %v591_v4 = vadd.f32 %v528_v3, %v7702_v0  ;;  %5958 = vmatprep.subr.bf16.mxu1 %v5957_v62  ;;  %5992 = vmatpush3.bf16.msra.mxu0 %v7531_v59 }
 0x1eb   :  { %5960 = vmatpush3.bf16.msra.mxu1 %v5957_v62  ;;  %v7707_v52 = vpop.f32.mrb[6].mxu0  ;;  %5994 = vmatprep.subr.bf16.mxu0 %v7553_v2  ;;  %v3959_v62 = vld [vmem:[%s8518_s9 + $0x80] sm:$0xff] }
 0x1ec   :  { %v5961_v5 = vpack.c.bf16 %v592_v1, %v591_v4  ;;  %v4766_v6 = vpop.f32.mrb[6].mxu1  ;;  %4817 = vmatprep.mubr.f32.mxu0 %v591_v4  ;;  %v7710_v7 = vpop.f32.mrb[7].mxu0  ;;  %v7803_v3 = vpack.c.bf16 %v3960_v63, %v3959_v62  ;;  %v3962_v4 = vld [vmem:[%s8518_s9 + $0x98] sm:$0xff] }
 0x1ed   :  { %v594_v8 = vadd.f32 %v4766_v6, %v7707_v52  ;;  %v538_v10 = vpop.f32.mrb[7].mxu1  ;;  %4818 = vmatmul.mubr.f32.gmra.mrb[20].mxu0 %v592_v1  ;;  %v3961_v1 = vld [vmem:[%s8518_s9 + $0x90] sm:$0xff]  ;;  %v3963_v6 = vld [vmem:[%s8518_s9 + $0xa0] sm:$0xff] }
 0x1ee   :  { %v593_v11 = vadd.f32 %v538_v10, %v7710_v7  ;;  %5962 = vmatprep.subr.bf16.mxu1 %v5961_v5  ;;  %5996 = vmatpush3.bf16.msra.mxu0 %v7553_v2 }
 0x1ef   :  { %5964 = vmatpush3.bf16.msra.mxu1 %v5961_v5  ;;  %v7715_v59 = vpop.f32.mrb[8].mxu0  ;;  %5998 = vmatprep.subr.bf16.mxu0 %v7575_v9  ;;  %v7808_v5 = vpack.c.bf16 %v3962_v4, %v3961_v1 }
 0x1f0   :  { %v5965_v12 = vpack.c.bf16 %v594_v8, %v593_v11  ;;  %v4769_v13 = vpop.f32.mrb[8].mxu1  ;;  %4820 = vmatprep.mubr.f32.mxu0 %v593_v11  ;;  %v7718_v14 = vpop.f32.mrb[9].mxu0  ;;  %v3965_v11 = vld [vmem:[%s8518_s9 + $0xb0] sm:$0xff] }
 0x1f1   :  { %v596_v15 = vadd.f32 %v4769_v13, %v7715_v59  ;;  %v548_v17 = vpop.f32.mrb[9].mxu1  ;;  %4821 = vmatmul.mubr.f32.gmra.mrb[22].mxu0 %v594_v8  ;;  %v3964_v8 = vld [vmem:[%s8518_s9 + $0xa8] sm:$0xff] }
 0x1f2   :  { %v595_v18 = vadd.f32 %v548_v17, %v7718_v14  ;;  %5966 = vmatprep.subr.bf16.mxu1 %v5965_v12  ;;  %6000 = vmatpush3.bf16.msra.mxu0 %v7575_v9  ;;  %v7819_v10 = vpack.c.bf16 %v3964_v8, %v3963_v6  ;;  %v3968_v17 = vld [vmem:[%s8518_s9 + $0xc8] sm:$0xff] }
 0x1f3   :  { %5968 = vmatpush3.bf16.msra.mxu1 %v5965_v12  ;;  %v7723_v2 = vpop.f32.mrb[10].mxu0  ;;  %6002 = vmatprep.subr.bf16.mxu0 %v7597_v16  ;;  %v3966_v12 = vld [vmem:[%s8518_s9 + $0xb8] sm:$0xff] }
 0x1f4   :  { %v5969_v19 = vpack.c.bf16 %v596_v15, %v595_v18  ;;  %v4772_v20 = vpop.f32.mrb[10].mxu1  ;;  %4823 = vmatprep.mubr.f32.mxu0 %v595_v18  ;;  %v7726_v21 = vpop.f32.mrb[11].mxu0  ;;  %v7829_v13 = vpack.c.bf16 %v3966_v12, %v3965_v11  ;;  %v3973_v11 = vld [vmem:[%s8518_s9 + $0xf0] sm:$0xff]  ;;  %v3974_v12 = vld [vmem:[%s8518_s9 + $0xf8] sm:$0xff] }
 0x1f5   :  { %v598_v22 = vadd.f32 %v4772_v20, %v7723_v2  ;;  %v558_v24 = vpop.f32.mrb[11].mxu1  ;;  %4824 = vmatmul.mubr.f32.gmra.mrb[24].mxu0 %v596_v15  ;;  %v3967_v15 = vld [vmem:[%s8518_s9 + $0xc0] sm:$0xff]  ;;  %v3970_v20 = vld [vmem:[%s8518_s9 + $0xd8] sm:$0xff] }
 0x1f6   :  { %v597_v25 = vadd.f32 %v558_v24, %v7726_v21  ;;  %5970 = vmatprep.subr.bf16.mxu1 %v5969_v19  ;;  %6004 = vmatpush3.bf16.msra.mxu0 %v7597_v16  ;;  %v7839_v18 = vpack.c.bf16 %v3968_v17, %v3967_v15  ;;  %v3971_v24 = vld [vmem:[%s8518_s9 + $0xe0] sm:$0xff]  ;;  %v7871_v15 = vpack.c.bf16 %v3974_v12, %v3973_v11 }
 0x1f7   :  { %5972 = vmatpush3.bf16.msra.mxu1 %v5969_v19  ;;  %v7731_v9 = vpop.f32.mrb[12].mxu0  ;;  %6006 = vmatprep.subr.bf16.mxu0 %v7619_v23  ;;  %v3969_v19 = vld [vmem:[%s8518_s9 + $0xd0] sm:$0xff] }
 0x1f8   :  { %v5973_v26 = vpack.c.bf16 %v598_v22, %v597_v25  ;;  %v4775_v27 = vpop.f32.mrb[12].mxu1  ;;  %4826 = vmatprep.mubr.f32.mxu0 %v597_v25  ;;  %v7734_v28 = vpop.f32.mrb[13].mxu0  ;;  %v3972_v25 = vld [vmem:[%s8518_s9 + $0xe8] sm:$0xff] }
 0x1f9   :  { %v600_v29 = vadd.f32 %v4775_v27, %v7731_v9  ;;  %v568_v31 = vpop.f32.mrb[13].mxu1  ;;  %4827 = vmatmul.mubr.f32.gmra.mrb[26].mxu0 %v598_v22  ;;  %v7849_v22 = vpack.c.bf16 %v3970_v20, %v3969_v19 }
 0x1fa   :  { %v599_v32 = vadd.f32 %v568_v31, %v7734_v28  ;;  %5974 = vmatprep.subr.bf16.mxu1 %v5973_v26  ;;  %6008 = vmatpush3.bf16.msra.mxu0 %v7619_v23 }
 0x1fb   :  { %5976 = vmatpush3.bf16.msra.mxu1 %v5973_v26  ;;  %v7739_v16 = vpop.f32.mrb[14].mxu0  ;;  %6010 = vmatprep.subr.bf16.mxu0 %v7641_v30  ;;  %v7859_v26 = vpack.c.bf16 %v3972_v25, %v3971_v24 }
 0x1fc   :  { %v5977_v33 = vpack.c.bf16 %v600_v29, %v599_v32  ;;  %v4778_v34 = vpop.f32.mrb[14].mxu1  ;;  %4829 = vmatprep.mubr.f32.mxu0 %v599_v32  ;;  %v7742_v35 = vpop.f32.mrb[15].mxu0 }
 0x1fd   :  { %v602_v36 = vadd.f32 %v4778_v34, %v7739_v16  ;;  %v578_v37 = vpop.f32.mrb[15].mxu1  ;;  %4830 = vmatmul.mubr.f32.gmra.mrb[28].mxu0 %v600_v29 }
 0x1fe   :  { %v601_v38 = vadd.f32 %v578_v37, %v7742_v35  ;;  %5978 = vmatprep.subr.bf16.mxu1 %v5977_v33  ;;  %6012 = vmatpush3.bf16.msra.mxu0 %v7641_v30  ;;  %v7757_v30 = vld [vmem:[#allocation10 + $0x20] sm:$0xff] }
 0x1ff   :  { %5980 = vmatpush3.bf16.msra.mxu1 %v5977_v33  ;;  %6014 = vmatprep.subr.bf16.mxu0 %v7670_v39 }
 0x200   :  { %v5981_v23 = vpack.c.bf16 %v602_v36, %v601_v38  ;;  %4832 = vmatprep.mubr.f32.mxu0 %v601_v38 }
 0x201   :  { %4833 = vmatmul.mubr.f32.gmra.mrb[30].mxu0 %v602_v36 }
 0x202   :  { %5982 = vmatprep.subr.bf16.mxu1 %v5981_v23  ;;  %6016 = vmatpush3.bf16.msra.mxu0 %v7670_v39  ;;  %v7763_v39 = vld [vmem:[#allocation10 + $0x30] sm:$0xff] }
 0x203   :  { %5984 = vmatpush3.bf16.msra.mxu1 %v5981_v23 }
 0x204   :  { %6018 = vmatprep.subr.bf16.mxu1 %v7803_v3 }
 0x206   :  { %4868 = vmatmul.mubr.f32.vlgmr.msra.gmra.mrb[16].mxu1 %v7749_v41 }
 0x207   :  { %4870 = vmatprep.mubr.f32.mxu1 %v7751_v42  ;;  %6020 = vmatpush3.bf16.msra.mxu1 %v7803_v3 }
 0x208   :  { %6022 = vmatprep.subr.bf16.mxu1 %v7808_v5 }
 0x20a   :  { %4871 = vmatmul.mubr.f32.gmra.mrb[18].mxu1 %v7755_v43 }
 0x20b   :  { %4873 = vmatprep.mubr.f32.mxu1 %v7757_v30  ;;  %6024 = vmatpush3.bf16.msra.mxu1 %v7808_v5 }
 0x20c   :  { %6026 = vmatprep.subr.bf16.mxu1 %v7819_v10 }
 0x20e   :  { %4874 = vmatmul.mubr.f32.gmra.mrb[20].mxu1 %v7761_v45 }
 0x20f   :  { %4876 = vmatprep.mubr.f32.mxu1 %v7763_v39  ;;  %6028 = vmatpush3.bf16.msra.mxu1 %v7819_v10 }
 0x210   :  { %6030 = vmatprep.subr.bf16.mxu1 %v7829_v13 }
 0x212   :  { %4877 = vmatmul.mubr.f32.gmra.mrb[22].mxu1 %v7767_v46 }
 0x213   :  { %4879 = vmatprep.mubr.f32.mxu1 %v7769_v47  ;;  %6032 = vmatpush3.bf16.msra.mxu1 %v7829_v13 }
 0x214   :  { %6034 = vmatprep.subr.bf16.mxu1 %v7839_v18 }
 0x216   :  { %4880 = vmatmul.mubr.f32.gmra.mrb[24].mxu1 %v7773_v49 }
 0x217   :  { %4882 = vmatprep.mubr.f32.mxu1 %v7775_v50  ;;  %6036 = vmatpush3.bf16.msra.mxu1 %v7839_v18 }
 0x218   :  { %6038 = vmatprep.subr.bf16.mxu1 %v7849_v22 }
 0x21a   :  { %4883 = vmatmul.mubr.f32.gmra.mrb[26].mxu1 %v7779_v54 }
 0x21b   :  { %4885 = vmatprep.mubr.f32.mxu1 %v7781_v55  ;;  %6040 = vmatpush3.bf16.msra.mxu1 %v7849_v22 }
 0x21c   :  { %6042 = vmatprep.subr.bf16.mxu1 %v7859_v26 }
 0x21e   :  { %4886 = vmatmul.mubr.f32.gmra.mrb[28].mxu1 %v7785_v57 }
 0x21f   :  { %4888 = vmatprep.mubr.f32.mxu1 %v7787_v58  ;;  %6044 = vmatpush3.bf16.msra.mxu1 %v7859_v26 }
 0x220   :  { %6046 = vmatprep.subr.bf16.mxu1 %v7871_v15 }
 0x222   :  { %4889 = vmatmul.mubr.f32.gmra.mrb[30].mxu1 %v7791_v60 }
 0x223   :  { %6048 = vmatpush3.bf16.msra.mxu1 %v7871_v15 }
 0x224   :  { %6082 = vmatprep.subr.bf16.mxu1 %v7803_v3 }
 0x2d9   :  { %v4869_v27 = vpop.f32.mrb[16].mxu1 }
 0x2da   :  { %v885_v29 = vpop.f32.mrb[17].mxu1 }
 0x2db   :  { %4923 = vmatprep.mubr.f32.mxu0 %v885_v29 }
 0x2dc   :  { %4924 = vmatmul.mubr.f32.vlgmr.msra.gmra.mrb[16].mxu0 %v4869_v27 }
 0x2dd   :  { %v4872_v31 = vpop.f32.mrb[18].mxu1 }
 0x2de   :  { %v895_v32 = vpop.f32.mrb[19].mxu1 }
 0x2df   :  { %4926 = vmatprep.mubr.f32.mxu0 %v895_v32 }
 0x2e0   :  { %4927 = vmatmul.mubr.f32.gmra.mrb[18].mxu0 %v4872_v31 }
 0x2e1   :  { %v4875_v33 = vpop.f32.mrb[20].mxu1 }
 0x2e2   :  { %v905_v34 = vpop.f32.mrb[21].mxu1 }
 0x2e3   :  { %4929 = vmatprep.mubr.f32.mxu0 %v905_v34 }
 0x2e4   :  { %4930 = vmatmul.mubr.f32.gmra.mrb[20].mxu0 %v4875_v33 }
 0x2e5   :  { %v4878_v36 = vpop.f32.mrb[22].mxu1 }
 0x2e6   :  { %v915_v37 = vpop.f32.mrb[23].mxu1 }
 0x2e7   :  { %4932 = vmatprep.mubr.f32.mxu0 %v915_v37 }
 0x2e8   :  { %4933 = vmatmul.mubr.f32.gmra.mrb[22].mxu0 %v4878_v36 }
 0x2e9   :  { %v4881_v38 = vpop.f32.mrb[24].mxu1 }
 0x2ea   :  { %v925_v23 = vpop.f32.mrb[25].mxu1 }
 0x2eb   :  { %4935 = vmatprep.mubr.f32.mxu0 %v925_v23 }
 0x2ec   :  { %4936 = vmatmul.mubr.f32.gmra.mrb[24].mxu0 %v4881_v38 }
 0x2ed   :  { %v4884_v62 = vpop.f32.mrb[26].mxu1 }
 0x2ee   :  { %v935_v63 = vpop.f32.mrb[27].mxu1 }
 0x2ef   :  { %4938 = vmatprep.mubr.f32.mxu0 %v935_v63 }
 0x2f0   :  { %4939 = vmatmul.mubr.f32.gmra.mrb[26].mxu0 %v4884_v62 }
 0x2f1   :  { %v4887_v1 = vpop.f32.mrb[28].mxu1 }
 0x2f2   :  { %v945_v4 = vpop.f32.mrb[29].mxu1 }
 0x2f3   :  { %4941 = vmatprep.mubr.f32.mxu0 %v945_v4 }
 0x2f4   :  { %4942 = vmatmul.mubr.f32.gmra.mrb[28].mxu0 %v4887_v1 }
 0x2f5   :  { %v4890_v6 = vpop.f32.mrb[30].mxu1 }
 0x2f6   :  { %v955_v8 = vpop.f32.mrb[31].mxu1 }
 0x2f7   :  { %4944 = vmatprep.mubr.f32.mxu0 %v955_v8 }
 0x2f8   :  { %4945 = vmatmul.mubr.f32.gmra.mrb[30].mxu0 %v4890_v6 }
 0x2f9   :  { %5035 = vmatprep.mubr.f32.mxu0 %v7675_v40  ;;  %v3958_v40 = vld [vmem:[%s8519_s10] ss:$0 sm:$0xff] }
 0x2fa   :  { %v7879_v17 = vadd.f32 %v3958_v40, %v3958_v40 }
 0x3af   :  { %v4925_v19 = vpop.f32.mrb[16].mxu0 }
 0x3b0   :  { %v6562_v20 = vadd.f32 %v7879_v17, %v4925_v19  ;;  %v1030_v24 = vpop.f32.mrb[17].mxu0 }
 0x3b1   :  { %v6564_v25 = vadd.f32 %v7879_v17, %v1030_v24 }
 0x3b2   :  { %v1126_v27 = vmax.f32 %v6562_v20, 0.0 }
 0x3b3   :  { %v1125_v29 = vmax.f32 %v6564_v25, 0.0  ;;  %v4928_v31 = vpop.f32.mrb[18].mxu0 }
 0x3b4   :  { %v6566_v32 = vadd.f32 %v7879_v17, %v4928_v31  ;;  %v1040_v33 = vpop.f32.mrb[19].mxu0 }
 0x3b5   :  { %v6049_v34 = vpack.c.bf16 %v1126_v27, %v1125_v29  ;;  %v6568_v36 = vadd.f32 %v7879_v17, %v1040_v33  ;;  %4979 = vmatprep.mubr.f32.mxu1 %v1125_v29 }
 0x3b6   :  { %v1128_v37 = vmax.f32 %v6566_v32, 0.0  ;;  %4980 = vmatmul.mubr.f32.vlgmr.msra.gmra.mrb[32].mxu1 %v1126_v27 }
 0x3b7   :  { %v1127_v38 = vmax.f32 %v6568_v36, 0.0  ;;  %6084 = vmatpush3.bf16.msra.mxu1 %v7803_v3  ;;  %v4931_v23 = vpop.f32.mrb[20].mxu0  ;;  %6050 = vmatprep.subr.bf16.mxu0 %v6049_v34 }
 0x3b8   :  { %v6570_v62 = vadd.f32 %v7879_v17, %v4931_v23  ;;  %v1050_v63 = vpop.f32.mrb[21].mxu0  ;;  %6052 = vmatpush3.bf16.msra.mxu0 %v6049_v34  ;;  %6086 = vmatprep.subr.bf16.mxu1 %v7808_v5 }
 0x3b9   :  { %v6053_v1 = vpack.c.bf16 %v1128_v37, %v1127_v38  ;;  %v6572_v4 = vadd.f32 %v7879_v17, %v1050_v63  ;;  %4982 = vmatprep.mubr.f32.mxu1 %v1127_v38 }
 0x3ba   :  { %v1130_v6 = vmax.f32 %v6570_v62, 0.0  ;;  %4983 = vmatmul.mubr.f32.gmra.mrb[34].mxu1 %v1128_v37 }
 0x3bb   :  { %v1129_v8 = vmax.f32 %v6572_v4, 0.0  ;;  %6088 = vmatpush3.bf16.msra.mxu1 %v7808_v5  ;;  %v4934_v11 = vpop.f32.mrb[22].mxu0  ;;  %6054 = vmatprep.subr.bf16.mxu0 %v6053_v1 }
 0x3bc   :  { %v6574_v3 = vadd.f32 %v7879_v17, %v4934_v11  ;;  %v1060_v12 = vpop.f32.mrb[23].mxu0  ;;  %6056 = vmatpush3.bf16.msra.mxu0 %v6053_v1  ;;  %6090 = vmatprep.subr.bf16.mxu1 %v7819_v10 }
 0x3bd   :  { %v6057_v40 = vpack.c.bf16 %v1130_v6, %v1129_v8  ;;  %v6576_v19 = vadd.f32 %v7879_v17, %v1060_v12  ;;  %4985 = vmatprep.mubr.f32.mxu1 %v1129_v8 }
 0x3be   :  { %v1132_v20 = vmax.f32 %v6574_v3, 0.0  ;;  %4986 = vmatmul.mubr.f32.gmra.mrb[36].mxu1 %v1130_v6 }
 0x3bf   :  { %v1131_v24 = vmax.f32 %v6576_v19, 0.0  ;;  %6092 = vmatpush3.bf16.msra.mxu1 %v7819_v10  ;;  %v4937_v25 = vpop.f32.mrb[24].mxu0  ;;  %6058 = vmatprep.subr.bf16.mxu0 %v6057_v40 }
 0x3c0   :  { %v6578_v5 = vadd.f32 %v7879_v17, %v4937_v25  ;;  %v1070_v27 = vpop.f32.mrb[25].mxu0  ;;  %6060 = vmatpush3.bf16.msra.mxu0 %v6057_v40  ;;  %6094 = vmatprep.subr.bf16.mxu1 %v7829_v13  ;;  %v1650_v25 = vld [vmem:[#allocation14 + $0x8] sm:$0xff] }
 0x3c1   :  { %v6061_v29 = vpack.c.bf16 %v1132_v20, %v1131_v24  ;;  %v6580_v31 = vadd.f32 %v7879_v17, %v1070_v27  ;;  %4988 = vmatprep.mubr.f32.mxu1 %v1131_v24  ;;  %v1649_v24 = vld [vmem:[#allocation14] sm:$0xff] }
 0x3c2   :  { %v1134_v32 = vmax.f32 %v6578_v5, 0.0  ;;  %4989 = vmatmul.mubr.f32.gmra.mrb[38].mxu1 %v1132_v20  ;;  %v7911_v27 = vpack.c.bf16 %v1650_v25, %v1649_v24 }
 0x3c3   :  { %v1133_v33 = vmax.f32 %v6580_v31, 0.0  ;;  %6096 = vmatpush3.bf16.msra.mxu1 %v7829_v13  ;;  %v4940_v34 = vpop.f32.mrb[26].mxu0  ;;  %6062 = vmatprep.subr.bf16.mxu0 %v6061_v29  ;;  %v1652_v31 = vld [vmem:[#allocation14 + $0x18] sm:$0xff] }
 0x3c4   :  { %v6582_v10 = vadd.f32 %v7879_v17, %v4940_v34  ;;  %v1080_v36 = vpop.f32.mrb[27].mxu0  ;;  %6064 = vmatpush3.bf16.msra.mxu0 %v6061_v29  ;;  %6098 = vmatprep.subr.bf16.mxu1 %v7839_v18  ;;  %v1651_v29 = vld [vmem:[#allocation14 + $0x10] sm:$0xff]  ;;  %v1656_v34 = vld [vmem:[#allocation14 + $0x38] sm:$0xff] }
 0x3c5   :  { %v6065_v37 = vpack.c.bf16 %v1134_v32, %v1133_v33  ;;  %v6584_v38 = vadd.f32 %v7879_v17, %v1080_v36  ;;  %4991 = vmatprep.mubr.f32.mxu1 %v1133_v33  ;;  %v1658_v36 = vld [vmem:[#allocation14 + $0x48] sm:$0xff] }
 0x3c6   :  { %v1136_v23 = vmax.f32 %v6582_v10, 0.0  ;;  %4992 = vmatmul.mubr.f32.gmra.mrb[40].mxu1 %v1134_v32  ;;  %v1654_v32 = vld [vmem:[#allocation14 + $0x28] sm:$0xff] }
 0x3c7   :  { %v1135_v62 = vmax.f32 %v6584_v38, 0.0  ;;  %6100 = vmatpush3.bf16.msra.mxu1 %v7839_v18  ;;  %v4943_v63 = vpop.f32.mrb[28].mxu0  ;;  %6066 = vmatprep.subr.bf16.mxu0 %v6065_v37  ;;  %v1662_v38 = vld [vmem:[#allocation14 + $0x68] sm:$0xff] }
 0x3c8   :  { %v6586_v13 = vadd.f32 %v7879_v17, %v4943_v63  ;;  %v1090_v1 = vpop.f32.mrb[29].mxu0  ;;  %6068 = vmatpush3.bf16.msra.mxu0 %v6065_v37  ;;  %6102 = vmatprep.subr.bf16.mxu1 %v7849_v22  ;;  %v1660_v37 = vld [vmem:[#allocation14 + $0x58] sm:$0xff] }
 0x3c9   :  { %v6069_v4 = vpack.c.bf16 %v1136_v23, %v1135_v62  ;;  %v6588_v6 = vadd.f32 %v7879_v17, %v1090_v1  ;;  %4994 = vmatprep.mubr.f32.mxu1 %v1135_v62 }
 0x3ca   :  { %v1138_v8 = vmax.f32 %v6586_v13, 0.0  ;;  %4995 = vmatmul.mubr.f32.gmra.mrb[42].mxu1 %v1136_v23  ;;  %v1664_v23 = vld [vmem:[#allocation14 + $0x78] sm:$0xff] }
 0x3cb   :  { %v1137_v11 = vmax.f32 %v6588_v6, 0.0  ;;  %6104 = vmatpush3.bf16.msra.mxu1 %v7849_v22  ;;  %v4946_v3 = vpop.f32.mrb[30].mxu0  ;;  %6070 = vmatprep.subr.bf16.mxu0 %v6069_v4 }
 0x3cc   :  { %v6590_v18 = vadd.f32 %v7879_v17, %v4946_v3  ;;  %v1100_v12 = vpop.f32.mrb[31].mxu0  ;;  %6072 = vmatpush3.bf16.msra.mxu0 %v6069_v4  ;;  %6106 = vmatprep.subr.bf16.mxu1 %v7859_v26 }
 0x3cd   :  { %v6073_v40 = vpack.c.bf16 %v1138_v8, %v1137_v11  ;;  %v6592_v19 = vadd.f32 %v7879_v17, %v1100_v12  ;;  %4997 = vmatprep.mubr.f32.mxu1 %v1137_v11  ;;  %v1653_v17 = vld [vmem:[#allocation14 + $0x20] sm:$0xff] }
 0x3ce   :  { %v1140_v20 = vmax.f32 %v6590_v18, 0.0  ;;  %4998 = vmatmul.mubr.f32.gmra.mrb[44].mxu1 %v1138_v8  ;;  %v7922_v33 = vpack.c.bf16 %v1654_v32, %v1653_v17 }
 0x3cf   :  { %v1139_v5 = vmax.f32 %v6592_v19, 0.0  ;;  %6108 = vmatpush3.bf16.msra.mxu1 %v7859_v26  ;;  %6074 = vmatprep.subr.bf16.mxu0 %v6073_v40  ;;  %v7916_v26 = vpack.c.bf16 %v1652_v31, %v1651_v29 }
 0x3d0   :  { %6076 = vmatpush3.bf16.msra.mxu0 %v6073_v40  ;;  %6110 = vmatprep.subr.bf16.mxu1 %v7871_v15 }
 0x3d1   :  { %v6077_v22 = vpack.c.bf16 %v1140_v20, %v1139_v5  ;;  %5000 = vmatprep.mubr.f32.mxu1 %v1139_v5 }
 0x3d2   :  { %5001 = vmatmul.mubr.f32.gmra.mrb[46].mxu1 %v1140_v20 }
 0x3d3   :  { %6112 = vmatpush3.bf16.msra.mxu1 %v7871_v15  ;;  %6078 = vmatprep.subr.bf16.mxu0 %v6077_v22  ;;  %v1655_v15 = vld [vmem:[#allocation14 + $0x30] sm:$0xff] }
 0x3d4   :  { %6146 = vmatprep.subr.bf16.mxu1 %v7690_v51  ;;  %6080 = vmatpush3.bf16.msra.mxu0 %v6077_v22  ;;  %v7928_v10 = vpack.c.bf16 %v1656_v34, %v1655_v15 }
 0x3d5   :  { %6114 = vmatprep.subr.bf16.mxu0 %v7911_v27 }
 0x3d7   :  { %5036 = vmatmul.mubr.f32.vlgmr.msra.gmra.mrb[32].mxu0 %v7749_v41  ;;  %v1657_v41 = vld [vmem:[#allocation14 + $0x40] sm:$0xff] }
 0x3d8   :  { %6116 = vmatpush3.bf16.msra.mxu0 %v7911_v27  ;;  %5038 = vmatprep.mubr.f32.mxu0 %v7751_v42  ;;  %v7934_v42 = vpack.c.bf16 %v1658_v36, %v1657_v41  ;;  %v8038_v41 = vld [vmem:[#allocation8 + $0x8] sm:$0xff]  ;;  %v8040_v36 = vld [vmem:[#allocation8 + $0x10] sm:$0xff] }
 0x3d9   :  { %6118 = vmatprep.subr.bf16.mxu0 %v7916_v26 }
 0x3db   :  { %5039 = vmatmul.mubr.f32.gmra.mrb[34].mxu0 %v7755_v43  ;;  %v1659_v43 = vld [vmem:[#allocation14 + $0x50] sm:$0xff] }
 0x3dc   :  { %6120 = vmatpush3.bf16.msra.mxu0 %v7916_v26  ;;  %5041 = vmatprep.mubr.f32.mxu0 %v7757_v30  ;;  %v7940_v30 = vpack.c.bf16 %v1660_v37, %v1659_v43  ;;  %v8046_v43 = vld [vmem:[#allocation8 + $0x20] sm:$0xff]  ;;  %v8050_v37 = vld [vmem:[#allocation8 + $0x28] sm:$0xff] }
 0x3dd   :  { %6122 = vmatprep.subr.bf16.mxu0 %v7922_v33 }
 0x3df   :  { %5042 = vmatmul.mubr.f32.gmra.mrb[36].mxu0 %v7761_v45  ;;  %v1661_v45 = vld [vmem:[#allocation14 + $0x60] sm:$0xff] }
 0x3e0   :  { %6124 = vmatpush3.bf16.msra.mxu0 %v7922_v33  ;;  %5044 = vmatprep.mubr.f32.mxu0 %v7763_v39  ;;  %v7946_v39 = vpack.c.bf16 %v1662_v38, %v1661_v45  ;;  %v8056_v45 = vld [vmem:[#allocation8 + $0x38] sm:$0xff]  ;;  %v8058_v38 = vld [vmem:[#allocation8 + $0x40] sm:$0xff] }
 0x3e1   :  { %6126 = vmatprep.subr.bf16.mxu0 %v7928_v10 }
 0x3e3   :  { %5045 = vmatmul.mubr.f32.gmra.mrb[38].mxu0 %v7767_v46  ;;  %v1663_v46 = vld [vmem:[#allocation14 + $0x70] sm:$0xff] }
 0x3e4   :  { %6128 = vmatpush3.bf16.msra.mxu0 %v7928_v10  ;;  %5047 = vmatprep.mubr.f32.mxu0 %v7769_v47  ;;  %v7952_v47 = vpack.c.bf16 %v1664_v23, %v1663_v46  ;;  %v8064_v46 = vld [vmem:[#allocation8 + $0x50] sm:$0xff]  ;;  %v8068_v23 = vld [vmem:[#allocation8 + $0x58] sm:$0xff] }
 0x3e5   :  { %6130 = vmatprep.subr.bf16.mxu0 %v7934_v42 }
 0x3e7   :  { %5048 = vmatmul.mubr.f32.gmra.mrb[40].mxu0 %v7773_v49  ;;  %v605_v49 = vld [vmem:[%s8512_s3 + $0x10] sm:$0xff] }
 0x3e8   :  { %6132 = vmatpush3.bf16.msra.mxu0 %v7934_v42  ;;  %5050 = vmatprep.mubr.f32.mxu0 %v7775_v50  ;;  %v606_v50 = vld [vmem:[%s8512_s3 + $0x18] sm:$0xff] }
 0x3e9   :  { %6134 = vmatprep.subr.bf16.mxu0 %v7940_v30 }
 0x3eb   :  { %5051 = vmatmul.mubr.f32.gmra.mrb[42].mxu0 %v7779_v54  ;;  %v621_v54 = vadd.f32 %v605_v49, %v7694_v56  ;;  %v609_v56 = vld [vmem:[%s8512_s3 + $0x30] sm:$0xff]  ;;  %v8074_v49 = vld [vmem:[#allocation8 + $0x68] sm:$0xff] }
 0x3ec   :  { %6136 = vmatpush3.bf16.msra.mxu0 %v7940_v30  ;;  %5053 = vmatprep.mubr.f32.mxu0 %v7781_v55  ;;  %v607_v55 = vld [vmem:[%s8512_s3 + $0x20] sm:$0xff] }
 0x3ed   :  { %6138 = vmatprep.subr.bf16.mxu0 %v7946_v39 }
 0x3ef   :  { %5054 = vmatmul.mubr.f32.gmra.mrb[44].mxu0 %v7785_v57  ;;  %v622_v57 = vadd.f32 %v7692_v53, %v606_v50  ;;  %v610_v53 = vld [vmem:[%s8512_s3 + $0x38] sm:$0xff]  ;;  %v8076_v50 = vld [vmem:[#allocation8 + $0x70] sm:$0xff] }
 0x3f0   :  { %6140 = vmatpush3.bf16.msra.mxu0 %v7946_v39  ;;  %5056 = vmatprep.mubr.f32.mxu0 %v7787_v58  ;;  %v623_v58 = vadd.f32 %v607_v55, %v7702_v0  ;;  %v611_v0 = vld [vmem:[%s8512_s3 + $0x40] sm:$0xff]  ;;  %v626_v62 = vadd.f32 %v7707_v52, %v610_v53  ;;  %v614_v52 = vld [vmem:[%s8512_s3 + $0x58] sm:$0xff]  ;;  %v2140_v55 = vld [vmem:[#allocation14 + $0x80] sm:$0xff] }
 0x3f1   :  { %6142 = vmatprep.subr.bf16.mxu0 %v7952_v47  ;;  %v627_v63 = vadd.f32 %v611_v0, %v7718_v14  ;;  %v615_v14 = vld [vmem:[%s8512_s3 + $0x60] sm:$0xff]  ;;  %v630_v4 = vadd.f32 %v7723_v2, %v614_v52  ;;  %v618_v2 = vld [vmem:[%s8512_s3 + $0x78] sm:$0xff]  ;;  %v6149_v18 = vpack.c.bf16 %v622_v57, %v621_v54  ;;  %v2144_v53 = vld [vmem:[#allocation14 + $0xa0] sm:$0xff] }
 0x3f2   :  { %v631_v6 = vadd.f32 %v615_v14, %v7734_v28  ;;  %v634_v28 = vadd.f32 %v7739_v16, %v618_v2  ;;  %v2151_v14 = vld [vmem:[#allocation14 + $0xd8] sm:$0xff] }
 0x3f3   :  { %5057 = vmatmul.mubr.f32.gmra.mrb[46].mxu0 %v7791_v60  ;;  %v625_v60 = vadd.f32 %v609_v56, %v7710_v7  ;;  %v613_v7 = vld [vmem:[%s8512_s3 + $0x50] sm:$0xff]  ;;  %v2143_v56 = vld [vmem:[#allocation14 + $0x98] sm:$0xff] }
 0x3f4   :  { %6144 = vmatpush3.bf16.msra.mxu0 %v7952_v47  ;;  %5147 = vmatprep.mubr.f32.mxu0 %v7686_v48  ;;  %v608_v48 = vld [vmem:[%s8512_s3 + $0x28] sm:$0xff]  ;;  %v629_v1 = vadd.f32 %v613_v7, %v7726_v21  ;;  %v617_v21 = vld [vmem:[%s8512_s3 + $0x70] sm:$0xff] }
 0x3f5   :  { %6178 = vmatprep.subr.bf16.mxu0 %v7911_v27  ;;  %v633_v11 = vadd.f32 %v617_v21, %v7742_v35  ;;  %v6157_v20 = vpack.c.bf16 %v626_v62, %v625_v60  ;;  %v2148_v7 = vld [vmem:[#allocation14 + $0xc0] sm:$0xff] }
 0x3f7   :  { %5148 = vmatmul.mubr.f32.vlgmr.msra.gmra.mrb[48].mxu0 %v7684_v44  ;;  %v624_v44 = vadd.f32 %v7699_v61, %v608_v48  ;;  %v612_v61 = vld [vmem:[%s8512_s3 + $0x48] sm:$0xff]  ;;  %v2142_v48 = vld [vmem:[#allocation14 + $0x90] sm:$0xff] }
 0x3f8   :  { %5150 = vmatprep.mubr.f32.mxu0 %v621_v54  ;;  %6180 = vmatpush3.bf16.msra.mxu0 %v7911_v27  ;;  %v628_v13 = vadd.f32 %v7715_v59, %v612_v61  ;;  %v616_v59 = vld [vmem:[%s8512_s3 + $0x68] sm:$0xff]  ;;  %v6165_v27 = vpack.c.bf16 %v630_v4, %v629_v1 }
 0x3f9   :  { %6182 = vmatprep.subr.bf16.mxu0 %v7916_v26  ;;  %v632_v8 = vadd.f32 %v7731_v9, %v616_v59  ;;  %v6153_v40 = vpack.c.bf16 %v624_v44, %v623_v58  ;;  %v8080_v54 = vld [vmem:[#allocation8 + $0x78] sm:$0xff]  ;;  %v2152_v59 = vld [vmem:[#allocation14 + $0xe0] sm:$0xff] }
 0x3fa   :  { %v6161_v5 = vpack.c.bf16 %v628_v13, %v627_v63  ;;  %v2147_v61 = vld [vmem:[#allocation14 + $0xb8] sm:$0xff] }
 0x3fb   :  { %5151 = vmatmul.mubr.f32.gmra.mrb[50].mxu0 %v622_v57  ;;  %v2141_v57 = vld [vmem:[#allocation14 + $0x88] sm:$0xff] }
 0x3fc   :  { %5153 = vmatprep.mubr.f32.mxu0 %v623_v58  ;;  %6184 = vmatpush3.bf16.msra.mxu0 %v7916_v26  ;;  %v6169_v26 = vpack.c.bf16 %v632_v8, %v631_v6  ;;  %v8083_v58 = vpack.c.bf16 %v2141_v57, %v2140_v55 }
 0x3fd   :  { %6186 = vmatprep.subr.bf16.mxu0 %v7922_v33 }
 0x3ff   :  { %5154 = vmatmul.mubr.f32.gmra.mrb[52].mxu0 %v624_v44  ;;  %v8085_v44 = vpack.c.bf16 %v2143_v56, %v2142_v48 }
 0x400   :  { %5156 = vmatprep.mubr.f32.mxu0 %v625_v60  ;;  %6188 = vmatpush3.bf16.msra.mxu0 %v7922_v33  ;;  %v6173_v33 = vpack.c.bf16 %v634_v28, %v633_v11  ;;  %v2145_v60 = vld [vmem:[#allocation14 + $0xa8] sm:$0xff] }
 0x401   :  { %6190 = vmatprep.subr.bf16.mxu0 %v7928_v10  ;;  %v8090_v0 = vpack.c.bf16 %v2145_v60, %v2144_v53  ;;  %v2154_v60 = vld [vmem:[#allocation14 + $0xf0] sm:$0xff] }
 0x403   :  { %5157 = vmatmul.mubr.f32.gmra.mrb[54].mxu0 %v626_v62  ;;  %v2146_v62 = vld [vmem:[#allocation14 + $0xb0] sm:$0xff] }
 0x404   :  { %5159 = vmatprep.mubr.f32.mxu0 %v627_v63  ;;  %6192 = vmatpush3.bf16.msra.mxu0 %v7928_v10  ;;  %v8035_v10 = vld [vmem:[#allocation8] sm:$0xff]  ;;  %v8094_v63 = vpack.c.bf16 %v2147_v61, %v2146_v62  ;;  %v2155_v62 = vld [vmem:[#allocation14 + $0xf8] sm:$0xff] }
 0x405   :  { %6194 = vmatprep.subr.bf16.mxu0 %v7934_v42  ;;  %v8144_v61 = vpack.c.bf16 %v2155_v62, %v2154_v60 }
 0x407   :  { %5160 = vmatmul.mubr.f32.gmra.mrb[56].mxu0 %v628_v13  ;;  %v2149_v13 = vld [vmem:[#allocation14 + $0xc8] sm:$0xff] }
 0x408   :  { %5162 = vmatprep.mubr.f32.mxu0 %v629_v1  ;;  %6196 = vmatpush3.bf16.msra.mxu0 %v7934_v42  ;;  %v8044_v42 = vld [vmem:[#allocation8 + $0x18] sm:$0xff]  ;;  %v8098_v52 = vpack.c.bf16 %v2149_v13, %v2148_v7  ;;  %v2150_v1 = vld [vmem:[#allocation14 + $0xd0] sm:$0xff]  ;;  %v3977_v7 = vld [vmem:[#allocation16] ss:$0 sm:$0xff] }
 0x409   :  { %6198 = vmatprep.subr.bf16.mxu0 %v7940_v30  ;;  %v8149_v13 = vadd.f32 %v3977_v7, %v3977_v7 }
 0x40b   :  { %5163 = vmatmul.mubr.f32.gmra.mrb[58].mxu0 %v630_v4  ;;  %v8102_v4 = vpack.c.bf16 %v2151_v14, %v2150_v1 }
 0x40c   :  { %5165 = vmatprep.mubr.f32.mxu0 %v631_v6  ;;  %6200 = vmatpush3.bf16.msra.mxu0 %v7940_v30  ;;  %v8052_v30 = vld [vmem:[#allocation8 + $0x30] sm:$0xff]  ;;  %v2153_v6 = vld [vmem:[#allocation14 + $0xe8] sm:$0xff] }
 0x40d   :  { %6202 = vmatprep.subr.bf16.mxu0 %v7946_v39  ;;  %v8106_v21 = vpack.c.bf16 %v2153_v6, %v2152_v59 }
 0x40f   :  { %5166 = vmatmul.mubr.f32.gmra.mrb[60].mxu0 %v632_v8 }
 0x410   :  { %5168 = vmatprep.mubr.f32.mxu0 %v633_v11  ;;  %6204 = vmatpush3.bf16.msra.mxu0 %v7946_v39  ;;  %v8062_v39 = vld [vmem:[#allocation8 + $0x48] sm:$0xff] }
 0x411   :  { %6206 = vmatprep.subr.bf16.mxu0 %v7952_v47 }
 0x413   :  { %5169 = vmatmul.mubr.f32.gmra.mrb[62].mxu0 %v634_v28 }
 0x414   :  { %6208 = vmatpush3.bf16.msra.mxu0 %v7952_v47  ;;  %v8070_v47 = vld [vmem:[#allocation8 + $0x60] sm:$0xff] }
 0x4aa   :  { %v5037_v9 = vpop.f32.mrb[32].mxu0 }
 0x4ab   :  { %v1377_v3 = vpop.f32.mrb[33].mxu0 }
 0x4ac   :  { %5091 = vmatprep.mubr.f32.mxu1 %v1377_v3 }
 0x4ad   :  { %5092 = vmatmul.mubr.f32.vlgmr.msra.gmra.mrb[32].mxu1 %v5037_v9 }
 0x4ae   :  { %6148 = vmatpush3.bf16.msra.mxu1 %v7690_v51  ;;  %v5040_v12 = vpop.f32.mrb[34].mxu0 }
 0x4af   :  { %6150 = vmatprep.subr.bf16.mxu1 %v6149_v18  ;;  %v1387_v35 = vpop.f32.mrb[35].mxu0 }
 0x4b0   :  { %5094 = vmatprep.mubr.f32.mxu1 %v1387_v35 }
 0x4b1   :  { %5095 = vmatmul.mubr.f32.gmra.mrb[34].mxu1 %v5040_v12 }
 0x4b2   :  { %6152 = vmatpush3.bf16.msra.mxu1 %v6149_v18  ;;  %v5043_v16 = vpop.f32.mrb[36].mxu0 }
 0x4b3   :  { %6154 = vmatprep.subr.bf16.mxu1 %v6153_v40  ;;  %v1397_v19 = vpop.f32.mrb[37].mxu0 }
 0x4b4   :  { %5097 = vmatprep.mubr.f32.mxu1 %v1397_v19 }
 0x4b5   :  { %5098 = vmatmul.mubr.f32.gmra.mrb[36].mxu1 %v5043_v16 }
 0x4b6   :  { %6156 = vmatpush3.bf16.msra.mxu1 %v6153_v40  ;;  %v5046_v24 = vpop.f32.mrb[38].mxu0 }
 0x4b7   :  { %6158 = vmatprep.subr.bf16.mxu1 %v6157_v20  ;;  %v1407_v25 = vpop.f32.mrb[39].mxu0 }
 0x4b8   :  { %5100 = vmatprep.mubr.f32.mxu1 %v1407_v25 }
 0x4b9   :  { %5101 = vmatmul.mubr.f32.gmra.mrb[38].mxu1 %v5046_v24 }
 0x4ba   :  { %6160 = vmatpush3.bf16.msra.mxu1 %v6157_v20  ;;  %v5049_v51 = vpop.f32.mrb[40].mxu0 }
 0x4bb   :  { %6162 = vmatprep.subr.bf16.mxu1 %v6161_v5  ;;  %v1417_v22 = vpop.f32.mrb[41].mxu0 }
 0x4bc   :  { %5103 = vmatprep.mubr.f32.mxu1 %v1417_v22 }
 0x4bd   :  { %5104 = vmatmul.mubr.f32.gmra.mrb[40].mxu1 %v5049_v51 }
 0x4be   :  { %6164 = vmatpush3.bf16.msra.mxu1 %v6161_v5  ;;  %v5052_v29 = vpop.f32.mrb[42].mxu0 }
 0x4bf   :  { %6166 = vmatprep.subr.bf16.mxu1 %v6165_v27  ;;  %v1427_v31 = vpop.f32.mrb[43].mxu0 }
 0x4c0   :  { %5106 = vmatprep.mubr.f32.mxu1 %v1427_v31 }
 0x4c1   :  { %5107 = vmatmul.mubr.f32.gmra.mrb[42].mxu1 %v5052_v29 }
 0x4c2   :  { %6168 = vmatpush3.bf16.msra.mxu1 %v6165_v27  ;;  %v5055_v17 = vpop.f32.mrb[44].mxu0 }
 0x4c3   :  { %6170 = vmatprep.subr.bf16.mxu1 %v6169_v26  ;;  %v1437_v32 = vpop.f32.mrb[45].mxu0 }
 0x4c4   :  { %5109 = vmatprep.mubr.f32.mxu1 %v1437_v32 }
 0x4c5   :  { %5110 = vmatmul.mubr.f32.gmra.mrb[44].mxu1 %v5055_v17 }
 0x4c6   :  { %6172 = vmatpush3.bf16.msra.mxu1 %v6169_v26  ;;  %v5058_v15 = vpop.f32.mrb[46].mxu0 }
 0x4c7   :  { %6174 = vmatprep.subr.bf16.mxu1 %v6173_v33  ;;  %v1447_v34 = vpop.f32.mrb[47].mxu0 }
 0x4c8   :  { %5112 = vmatprep.mubr.f32.mxu1 %v1447_v34 }
 0x4c9   :  { %5113 = vmatmul.mubr.f32.gmra.mrb[46].mxu1 %v5058_v15 }
 0x4ca   :  { %6176 = vmatpush3.bf16.msra.mxu1 %v6173_v33  ;;  %5203 = vmatprep.mubr.f32.mxu1 %v8035_v10 }
 0x4cb   :  { %6210 = vmatprep.subr.bf16.mxu1 %v8083_v58 }
 0x4cd   :  { %5204 = vmatmul.mubr.f32.vlgmr.msra.gmra.mrb[48].mxu1 %v8038_v41 }
 0x4ce   :  { %5206 = vmatprep.mubr.f32.mxu1 %v8040_v36  ;;  %6212 = vmatpush3.bf16.msra.mxu1 %v8083_v58 }
 0x4cf   :  { %6214 = vmatprep.subr.bf16.mxu1 %v8085_v44 }
 0x4d1   :  { %5207 = vmatmul.mubr.f32.gmra.mrb[50].mxu1 %v8044_v42 }
 0x4d2   :  { %5209 = vmatprep.mubr.f32.mxu1 %v8046_v43  ;;  %6216 = vmatpush3.bf16.msra.mxu1 %v8085_v44 }
 0x4d3   :  { %6218 = vmatprep.subr.bf16.mxu1 %v8090_v0 }
 0x4d5   :  { %5210 = vmatmul.mubr.f32.gmra.mrb[52].mxu1 %v8050_v37 }
 0x4d6   :  { %5212 = vmatprep.mubr.f32.mxu1 %v8052_v30  ;;  %6220 = vmatpush3.bf16.msra.mxu1 %v8090_v0 }
 0x4d7   :  { %6222 = vmatprep.subr.bf16.mxu1 %v8094_v63 }
 0x4d9   :  { %5213 = vmatmul.mubr.f32.gmra.mrb[54].mxu1 %v8056_v45 }
 0x4da   :  { %5215 = vmatprep.mubr.f32.mxu1 %v8058_v38  ;;  %6224 = vmatpush3.bf16.msra.mxu1 %v8094_v63 }
 0x4db   :  { %6226 = vmatprep.subr.bf16.mxu1 %v8098_v52 }
 0x4dd   :  { %5216 = vmatmul.mubr.f32.gmra.mrb[56].mxu1 %v8062_v39 }
 0x4de   :  { %5218 = vmatprep.mubr.f32.mxu1 %v8064_v46  ;;  %6228 = vmatpush3.bf16.msra.mxu1 %v8098_v52 }
 0x4df   :  { %6230 = vmatprep.subr.bf16.mxu1 %v8102_v4 }
 0x4e1   :  { %5219 = vmatmul.mubr.f32.gmra.mrb[58].mxu1 %v8068_v23 }
 0x4e2   :  { %5221 = vmatprep.mubr.f32.mxu1 %v8070_v47  ;;  %6232 = vmatpush3.bf16.msra.mxu1 %v8102_v4 }
 0x4e3   :  { %6234 = vmatprep.subr.bf16.mxu1 %v8106_v21 }
 0x4e5   :  { %5222 = vmatmul.mubr.f32.gmra.mrb[60].mxu1 %v8074_v49 }
 0x4e6   :  { %5224 = vmatprep.mubr.f32.mxu1 %v8076_v50  ;;  %6236 = vmatpush3.bf16.msra.mxu1 %v8106_v21 }
 0x4e7   :  { %6238 = vmatprep.subr.bf16.mxu1 %v8144_v61 }
 0x4e9   :  { %5225 = vmatmul.mubr.f32.gmra.mrb[62].mxu1 %v8080_v54 }
 0x4ea   :  { %6240 = vmatpush3.bf16.msra.mxu1 %v8144_v61 }
 0x4eb   :  { %6274 = vmatprep.subr.bf16.mxu1 %v8083_v58 }
 0x580   :  { %v8111_v8 = vpop.f32.mrb[32].mxu1 }
 0x581   :  { %v8113_v2 = vpop.f32.mrb[33].mxu1 }
 0x584   :  { %v8115_v11 = vpop.f32.mrb[34].mxu1 }
 0x585   :  { %v8117_v28 = vpop.f32.mrb[35].mxu1 }
 0x588   :  { %v8119_v9 = vpop.f32.mrb[36].mxu1 }
 0x589   :  { %v8121_v3 = vpop.f32.mrb[37].mxu1 }
 0x58c   :  { %v8123_v18 = vpop.f32.mrb[38].mxu1 }
 0x58d   :  { %v8125_v12 = vpop.f32.mrb[39].mxu1 }
 0x590   :  { %v8127_v35 = vpop.f32.mrb[40].mxu1 }
 0x591   :  { %v8129_v40 = vpop.f32.mrb[41].mxu1 }
 0x594   :  { %v8131_v16 = vpop.f32.mrb[42].mxu1 }
 0x595   :  { %v8133_v19 = vpop.f32.mrb[43].mxu1 }
 0x598   :  { %v8135_v20 = vpop.f32.mrb[44].mxu1 }
 0x599   :  { %v8137_v24 = vpop.f32.mrb[45].mxu1 }
 0x59c   :  { %v8139_v25 = vpop.f32.mrb[46].mxu1 }
 0x59d   :  { %v8141_v5 = vpop.f32.mrb[47].mxu1 }
 0x5a0   :  { %v5205_v51 = vpop.f32.mrb[48].mxu1 }
 0x5a1   :  { %v1883_v22 = vpop.f32.mrb[49].mxu1 }
 0x5a2   :  { %5259 = vmatprep.mubr.f32.mxu0 %v1883_v22 }
 0x5a3   :  { %5260 = vmatmul.mubr.f32.vlgmr.msra.gmra.mrb[48].mxu0 %v5205_v51 }
 0x5a4   :  { %v5208_v27 = vpop.f32.mrb[50].mxu1 }
 0x5a5   :  { %v1893_v29 = vpop.f32.mrb[51].mxu1 }
 0x5a6   :  { %5262 = vmatprep.mubr.f32.mxu0 %v1893_v29 }
 0x5a7   :  { %5263 = vmatmul.mubr.f32.gmra.mrb[50].mxu0 %v5208_v27 }
 0x5a8   :  { %v5211_v31 = vpop.f32.mrb[52].mxu1 }
 0x5a9   :  { %v1903_v26 = vpop.f32.mrb[53].mxu1 }
 0x5aa   :  { %5265 = vmatprep.mubr.f32.mxu0 %v1903_v26 }
 0x5ab   :  { %5266 = vmatmul.mubr.f32.gmra.mrb[52].mxu0 %v5211_v31 }
 0x5ac   :  { %v5214_v17 = vpop.f32.mrb[54].mxu1 }
 0x5ad   :  { %v1913_v32 = vpop.f32.mrb[55].mxu1 }
 0x5ae   :  { %5268 = vmatprep.mubr.f32.mxu0 %v1913_v32 }
 0x5af   :  { %5269 = vmatmul.mubr.f32.gmra.mrb[54].mxu0 %v5214_v17 }
 0x5b0   :  { %v5217_v33 = vpop.f32.mrb[56].mxu1 }
 0x5b1   :  { %v1923_v15 = vpop.f32.mrb[57].mxu1 }
 0x5b2   :  { %5271 = vmatprep.mubr.f32.mxu0 %v1923_v15 }
 0x5b3   :  { %5272 = vmatmul.mubr.f32.gmra.mrb[56].mxu0 %v5217_v33 }
 0x5b4   :  { %v5220_v34 = vpop.f32.mrb[58].mxu1 }
 0x5b5   :  { %v1933_v55 = vpop.f32.mrb[59].mxu1 }
 0x5b6   :  { %5274 = vmatprep.mubr.f32.mxu0 %v1933_v55 }
 0x5b7   :  { %5275 = vmatmul.mubr.f32.gmra.mrb[58].mxu0 %v5220_v34 }
 0x5b8   :  { %v5223_v57 = vpop.f32.mrb[60].mxu1 }
 0x5b9   :  { %v1943_v48 = vpop.f32.mrb[61].mxu1 }
 0x5ba   :  { %5277 = vmatprep.mubr.f32.mxu0 %v1943_v48 }
 0x5bb   :  { %5278 = vmatmul.mubr.f32.gmra.mrb[60].mxu0 %v5223_v57 }
 0x5bc   :  { %v5226_v56 = vpop.f32.mrb[62].mxu1 }
 0x5bd   :  { %v1953_v53 = vpop.f32.mrb[63].mxu1 }
 0x5be   :  { %5280 = vmatprep.mubr.f32.mxu0 %v1953_v53 }
 0x5bf   :  { %5281 = vmatmul.mubr.f32.gmra.mrb[62].mxu0 %v5226_v56 }
 0x5c0   :  { %5371 = vmatprep.mubr.f32.mxu0 %v8035_v10 }
 0x676   :  { %v5261_v1 = vpop.f32.mrb[48].mxu0 }
 0x677   :  { %v6626_v14 = vadd.f32 %v8149_v13, %v5261_v1  ;;  %v2028_v59 = vpop.f32.mrb[49].mxu0 }
 0x678   :  { %v6628_v6 = vadd.f32 %v8149_v13, %v2028_v59 }
 0x679   :  { %v2124_v10 = vmax.f32 %v6626_v14, 0.0 }
 0x67a   :  { %v2123_v51 = vmax.f32 %v6628_v6, 0.0  ;;  %v5264_v22 = vpop.f32.mrb[50].mxu0 }
 0x67b   :  { %v6630_v27 = vadd.f32 %v8149_v13, %v5264_v22  ;;  %v2038_v29 = vpop.f32.mrb[51].mxu0 }
 0x67c   :  { %v6241_v31 = vpack.c.bf16 %v2124_v10, %v2123_v51  ;;  %v6632_v26 = vadd.f32 %v8149_v13, %v2038_v29  ;;  %5315 = vmatprep.mubr.f32.mxu1 %v2123_v51 }
 0x67d   :  { %v2126_v17 = vmax.f32 %v6630_v27, 0.0  ;;  %5316 = vmatmul.mubr.f32.vlgmr.msra.gmra.mrb[64].mxu1 %v2124_v10 }
 0x67e   :  { %v2125_v32 = vmax.f32 %v6632_v26, 0.0  ;;  %v5267_v33 = vpop.f32.mrb[52].mxu0  ;;  %6242 = vmatprep.subr.bf16.mxu0 %v6241_v31  ;;  %6276 = vmatpush3.bf16.msra.mxu1 %v8083_v58 }
 0x67f   :  { %v6634_v15 = vadd.f32 %v8149_v13, %v5267_v33  ;;  %v2048_v34 = vpop.f32.mrb[53].mxu0  ;;  %6244 = vmatpush3.bf16.msra.mxu0 %v6241_v31  ;;  %6278 = vmatprep.subr.bf16.mxu1 %v8085_v44 }
 0x680   :  { %v6245_v55 = vpack.c.bf16 %v2126_v17, %v2125_v32  ;;  %v6636_v57 = vadd.f32 %v8149_v13, %v2048_v34  ;;  %5318 = vmatprep.mubr.f32.mxu1 %v2125_v32 }
 0x681   :  { %v2128_v48 = vmax.f32 %v6634_v15, 0.0  ;;  %5319 = vmatmul.mubr.f32.gmra.mrb[66].mxu1 %v2126_v17 }
 0x682   :  { %v2127_v56 = vmax.f32 %v6636_v57, 0.0  ;;  %v5270_v53 = vpop.f32.mrb[54].mxu0  ;;  %6246 = vmatprep.subr.bf16.mxu0 %v6245_v55  ;;  %6280 = vmatpush3.bf16.msra.mxu1 %v8085_v44 }
 0x683   :  { %v6638_v60 = vadd.f32 %v8149_v13, %v5270_v53  ;;  %v2058_v58 = vpop.f32.mrb[55].mxu0  ;;  %6248 = vmatpush3.bf16.msra.mxu0 %v6245_v55  ;;  %6282 = vmatprep.subr.bf16.mxu1 %v8090_v0 }
 0x684   :  { %v6249_v62 = vpack.c.bf16 %v2128_v48, %v2127_v56  ;;  %v6640_v7 = vadd.f32 %v8149_v13, %v2058_v58  ;;  %5321 = vmatprep.mubr.f32.mxu1 %v2127_v56 }
 0x685   :  { %v2130_v1 = vmax.f32 %v6638_v60, 0.0  ;;  %5322 = vmatmul.mubr.f32.gmra.mrb[68].mxu1 %v2128_v48 }
 0x686   :  { %v2129_v14 = vmax.f32 %v6640_v7, 0.0  ;;  %v5273_v59 = vpop.f32.mrb[56].mxu0  ;;  %6250 = vmatprep.subr.bf16.mxu0 %v6249_v62  ;;  %6284 = vmatpush3.bf16.msra.mxu1 %v8090_v0 }
 0x687   :  { %v6642_v6 = vadd.f32 %v8149_v13, %v5273_v59  ;;  %v2068_v44 = vpop.f32.mrb[57].mxu0  ;;  %6252 = vmatpush3.bf16.msra.mxu0 %v6249_v62  ;;  %6286 = vmatprep.subr.bf16.mxu1 %v8094_v63  ;;  %v2658_v59 = vld [vmem:[#allocation17 + $0x58] sm:$0xff] }
 0x688   :  { %v6253_v10 = vpack.c.bf16 %v2130_v1, %v2129_v14  ;;  %v6644_v51 = vadd.f32 %v8149_v13, %v2068_v44  ;;  %5324 = vmatprep.mubr.f32.mxu1 %v2129_v14  ;;  %v2657_v14 = vld [vmem:[#allocation17 + $0x50] sm:$0xff]  ;;  %v2659_v44 = vld [vmem:[#allocation17 + $0x60] sm:$0xff] }
 0x689   :  { %v2132_v22 = vmax.f32 %v6642_v6, 0.0  ;;  %5325 = vmatmul.mubr.f32.gmra.mrb[70].mxu1 %v2130_v1  ;;  %v6325_v6 = vpack.c.bf16 %v2658_v59, %v2657_v14  ;;  %v8254_v14 = vld [vmem:[#allocation7 + $0x10] sm:$0xff]  ;;  %v8258_v59 = vld [vmem:[#allocation7 + $0x18] sm:$0xff] }
 0x68a   :  { %v2131_v27 = vmax.f32 %v6644_v51, 0.0  ;;  %v5276_v29 = vpop.f32.mrb[58].mxu0  ;;  %6254 = vmatprep.subr.bf16.mxu0 %v6253_v10  ;;  %6288 = vmatpush3.bf16.msra.mxu1 %v8094_v63 }
 0x68b   :  { %v6646_v31 = vadd.f32 %v8149_v13, %v5276_v29  ;;  %v2078_v0 = vpop.f32.mrb[59].mxu0  ;;  %6256 = vmatpush3.bf16.msra.mxu0 %v6253_v10  ;;  %6290 = vmatprep.subr.bf16.mxu1 %v8098_v52  ;;  %v2660_v10 = vld [vmem:[#allocation17 + $0x68] sm:$0xff] }
 0x68c   :  { %v6257_v26 = vpack.c.bf16 %v2132_v22, %v2131_v27  ;;  %v6648_v17 = vadd.f32 %v8149_v13, %v2078_v0  ;;  %5327 = vmatprep.mubr.f32.mxu1 %v2131_v27  ;;  %v6329_v51 = vpack.c.bf16 %v2660_v10, %v2659_v44  ;;  %v2662_v27 = vld [vmem:[#allocation17 + $0x78] sm:$0xff]  ;;  %v6878_v0 = vld [vmem:[%s8534_s25 + $0x18] sm:$0xff]  ;;  %v8266_v10 = vld [vmem:[#allocation7 + $0x30] sm:$0xff] }
 0x68d   :  { %v2134_v32 = vmax.f32 %v6646_v31, 0.0  ;;  %5328 = vmatmul.mubr.f32.gmra.mrb[72].mxu1 %v2132_v22  ;;  %v2661_v22 = vld [vmem:[#allocation17 + $0x70] sm:$0xff]  ;;  %v6877_v31 = vld [vmem:[%s8534_s25 + $0x10] sm:$0xff]  ;;  %v8264_v44 = vld [vmem:[#allocation7 + $0x28] sm:$0xff] }
 0x68e   :  { %v2133_v33 = vmax.f32 %v6648_v17, 0.0  ;;  %v5279_v15 = vpop.f32.mrb[60].mxu0  ;;  %6258 = vmatprep.subr.bf16.mxu0 %v6257_v26  ;;  %6292 = vmatpush3.bf16.msra.mxu1 %v8098_v52  ;;  %v6333_v29 = vpack.c.bf16 %v2662_v27, %v2661_v22  ;;  %v6880_v17 = vld [vmem:[%s8534_s25 + $0x28] sm:$0xff]  ;;  %v8272_v22 = vld [vmem:[#allocation7 + $0x40] sm:$0xff]  ;;  %v8276_v27 = vld [vmem:[#allocation7 + $0x48] sm:$0xff] }
 0x68f   :  { %v6650_v34 = vadd.f32 %v8149_v13, %v5279_v15  ;;  %v2088_v63 = vpop.f32.mrb[61].mxu0  ;;  %6260 = vmatpush3.bf16.msra.mxu0 %v6257_v26  ;;  %6294 = vmatprep.subr.bf16.mxu1 %v8102_v4  ;;  %v6879_v26 = vld [vmem:[%s8534_s25 + $0x20] sm:$0xff] }
 0x690   :  { %v6261_v55 = vpack.c.bf16 %v2134_v32, %v2133_v33  ;;  %v6652_v57 = vadd.f32 %v8149_v13, %v2088_v63  ;;  %5330 = vmatprep.mubr.f32.mxu1 %v2133_v33  ;;  %v6882_v33 = vld [vmem:[%s8534_s25 + $0x38] sm:$0xff]  ;;  %v6883_v15 = vld [vmem:[%s8534_s25 + $0x40] sm:$0xff]  ;;  %v6885_v63 = vld [vmem:[%s8534_s25 + $0x50] sm:$0xff] }
 0x691   :  { %v2136_v48 = vmax.f32 %v6650_v34, 0.0  ;;  %5331 = vmatmul.mubr.f32.gmra.mrb[74].mxu1 %v2134_v32  ;;  %v6881_v32 = vld [vmem:[%s8534_s25 + $0x30] sm:$0xff]  ;;  %v6884_v34 = vld [vmem:[%s8534_s25 + $0x48] sm:$0xff] }
 0x692   :  { %v2135_v56 = vmax.f32 %v6652_v57, 0.0  ;;  %v5282_v53 = vpop.f32.mrb[62].mxu0  ;;  %6262 = vmatprep.subr.bf16.mxu0 %v6261_v55  ;;  %6296 = vmatpush3.bf16.msra.mxu1 %v8102_v4  ;;  %v6887_v57 = vld [vmem:[%s8534_s25 + $0x60] sm:$0xff] }
 0x693   :  { %v6654_v60 = vadd.f32 %v8149_v13, %v5282_v53  ;;  %v2098_v52 = vpop.f32.mrb[63].mxu0  ;;  %6264 = vmatpush3.bf16.msra.mxu0 %v6261_v55  ;;  %6298 = vmatprep.subr.bf16.mxu1 %v8106_v21  ;;  %v6886_v55 = vld [vmem:[%s8534_s25 + $0x58] sm:$0xff] }
 0x694   :  { %v6265_v58 = vpack.c.bf16 %v2136_v48, %v2135_v56  ;;  %v6656_v62 = vadd.f32 %v8149_v13, %v2098_v52  ;;  %5333 = vmatprep.mubr.f32.mxu1 %v2135_v56  ;;  %v6889_v56 = vld [vmem:[%s8534_s25 + $0x70] sm:$0xff]  ;;  %v6890_v53 = vld [vmem:[%s8534_s25 + $0x78] sm:$0xff] }
 0x695   :  { %v2138_v7 = vmax.f32 %v6654_v60, 0.0  ;;  %5334 = vmatmul.mubr.f32.gmra.mrb[76].mxu1 %v2136_v48  ;;  %v6888_v48 = vld [vmem:[%s8534_s25 + $0x68] sm:$0xff] }
 0x696   :  { %v2137_v1 = vmax.f32 %v6656_v62, 0.0  ;;  %6266 = vmatprep.subr.bf16.mxu0 %v6265_v58  ;;  %6300 = vmatpush3.bf16.msra.mxu1 %v8106_v21  ;;  %v2655_v21 = vld [vmem:[#allocation17 + $0x40] sm:$0xff] }
 0x697   :  { %6268 = vmatpush3.bf16.msra.mxu0 %v6265_v58  ;;  %6302 = vmatprep.subr.bf16.mxu1 %v8144_v61  ;;  %v6341_v58 = vpack.c.bf16 %v6878_v0, %v6877_v31 }
 0x698   :  { %v6269_v4 = vpack.c.bf16 %v2138_v7, %v2137_v1  ;;  %5336 = vmatprep.mubr.f32.mxu1 %v2137_v1  ;;  %v6345_v1 = vpack.c.bf16 %v6880_v17, %v6879_v26 }
 0x699   :  { %5337 = vmatmul.mubr.f32.gmra.mrb[78].mxu1 %v2138_v7 }
 0x69a   :  { %6270 = vmatprep.subr.bf16.mxu0 %v6269_v4  ;;  %6304 = vmatpush3.bf16.msra.mxu1 %v8144_v61  ;;  %v2656_v61 = vld [vmem:[#allocation17 + $0x48] sm:$0xff] }
 0x69b   :  { %6272 = vmatpush3.bf16.msra.mxu0 %v6269_v4  ;;  %v6321_v13 = vpack.c.bf16 %v2656_v61, %v2655_v21  ;;  %v8249_v61 = vld [vmem:[#allocation7] sm:$0xff] }
 0x69e   :  { %5372 = vmatmul.mubr.f32.vlgmr.msra.gmra.mrb[64].mxu0 %v8038_v41  ;;  %v6875_v41 = vld [vmem:[%s8534_s25] sm:$0xff] }
 0x69f   :  { %5374 = vmatprep.mubr.f32.mxu0 %v8040_v36  ;;  %v6876_v36 = vld [vmem:[%s8534_s25 + $0x8] sm:$0xff] }
 0x6a2   :  { %5375 = vmatmul.mubr.f32.gmra.mrb[66].mxu0 %v8044_v42  ;;  %v8203_v42 = vpack.c.bf16 %v6876_v36, %v6875_v41 }
 0x6a3   :  { %5377 = vmatprep.mubr.f32.mxu0 %v8046_v43  ;;  %v2647_v43 = vld [vmem:[#allocation17] sm:$0xff] }
 0x6a4   :  { %6338 = vmatprep.subr.bf16.mxu1 %v8203_v42 }
 0x6a6   :  { %5378 = vmatmul.mubr.f32.gmra.mrb[68].mxu0 %v8050_v37  ;;  %v2648_v37 = vld [vmem:[#allocation17 + $0x8] sm:$0xff] }
 0x6a7   :  { %5380 = vmatprep.mubr.f32.mxu0 %v8052_v30  ;;  %v2649_v30 = vld [vmem:[#allocation17 + $0x10] sm:$0xff] }
 0x6aa   :  { %5381 = vmatmul.mubr.f32.gmra.mrb[70].mxu0 %v8056_v45  ;;  %v6305_v45 = vpack.c.bf16 %v2648_v37, %v2647_v43 }
 0x6ab   :  { %5383 = vmatprep.mubr.f32.mxu0 %v8058_v38  ;;  %v2650_v38 = vld [vmem:[#allocation17 + $0x18] sm:$0xff] }
 0x6ac   :  { %6306 = vmatprep.subr.bf16.mxu0 %v6305_v45 }
 0x6ad   :  { %6308 = vmatpush3.bf16.msra.mxu0 %v6305_v45 }
 0x6ae   :  { %5384 = vmatmul.mubr.f32.gmra.mrb[72].mxu0 %v8062_v39  ;;  %v6309_v39 = vpack.c.bf16 %v2650_v38, %v2649_v30  ;;  %v6353_v30 = vpack.c.bf16 %v6884_v34, %v6883_v15  ;;  %v6357_v38 = vpack.c.bf16 %v6886_v55, %v6885_v63 }
 0x6af   :  { %5386 = vmatprep.mubr.f32.mxu0 %v8064_v46  ;;  %v2651_v46 = vld [vmem:[#allocation17 + $0x20] sm:$0xff] }
 0x6b0   :  { %6310 = vmatprep.subr.bf16.mxu0 %v6309_v39 }
 0x6b1   :  { %6312 = vmatpush3.bf16.msra.mxu0 %v6309_v39 }
 0x6b2   :  { %5387 = vmatmul.mubr.f32.gmra.mrb[74].mxu0 %v8068_v23  ;;  %v2652_v23 = vld [vmem:[#allocation17 + $0x28] sm:$0xff] }
 0x6b3   :  { %5389 = vmatprep.mubr.f32.mxu0 %v8070_v47  ;;  %v6313_v47 = vpack.c.bf16 %v2652_v23, %v2651_v46  ;;  %v6361_v23 = vpack.c.bf16 %v6888_v48, %v6887_v57 }
 0x6b5   :  { %6314 = vmatprep.subr.bf16.mxu0 %v6313_v47 }
 0x6b6   :  { %5390 = vmatmul.mubr.f32.gmra.mrb[76].mxu0 %v8074_v49  ;;  %v2653_v49 = vld [vmem:[#allocation17 + $0x30] sm:$0xff] }
 0x6b7   :  { %5392 = vmatprep.mubr.f32.mxu0 %v8076_v50  ;;  %v2654_v50 = vld [vmem:[#allocation17 + $0x38] sm:$0xff]  ;;  %6316 = vmatpush3.bf16.msra.mxu0 %v6313_v47 }
 0x6ba   :  { %5393 = vmatmul.mubr.f32.gmra.mrb[78].mxu0 %v8080_v54  ;;  %v6317_v54 = vpack.c.bf16 %v2654_v50, %v2653_v49  ;;  %v6365_v50 = vpack.c.bf16 %v6890_v53, %v6889_v56 }
 0x6bb   :  { %5483 = vmatprep.mubr.f32.mxu0 %v6875_v41 }
 0x6bc   :  { %6318 = vmatprep.subr.bf16.mxu0 %v6317_v54 }
 0x6bd   :  { %6320 = vmatpush3.bf16.msra.mxu0 %v6317_v54 }
 0x6be   :  { %6322 = vmatprep.subr.bf16.mxu0 %v6321_v13 }
 0x6c1   :  { %6324 = vmatpush3.bf16.msra.mxu0 %v6321_v13 }
 0x6c2   :  { %6326 = vmatprep.subr.bf16.mxu0 %v6325_v6 }
 0x6c5   :  { %6328 = vmatpush3.bf16.msra.mxu0 %v6325_v6 }
 0x6c6   :  { %6330 = vmatprep.subr.bf16.mxu0 %v6329_v51 }
 0x6c9   :  { %6332 = vmatpush3.bf16.msra.mxu0 %v6329_v51 }
 0x6ca   :  { %6334 = vmatprep.subr.bf16.mxu0 %v6333_v29 }
 0x6cd   :  { %6336 = vmatpush3.bf16.msra.mxu0 %v6333_v29 }
 0x6ce   :  { %6370 = vmatprep.subr.bf16.mxu0 %v6305_v45 }
 0x6d0   :  { %5484 = vmatmul.mubr.f32.vlgmr.msra.gmra.mrb[80].mxu0 %v6876_v36  ;;  %v6349_v36 = vpack.c.bf16 %v6882_v33, %v6881_v32 }
 0x6d1   :  { %6372 = vmatpush3.bf16.msra.mxu0 %v6305_v45  ;;  %5486 = vmatprep.mubr.f32.mxu0 %v6877_v31  ;;  %v8282_v31 = vld [vmem:[#allocation7 + $0x58] sm:$0xff] }
 0x6d2   :  { %6374 = vmatprep.subr.bf16.mxu0 %v6309_v39 }
 0x6d4   :  { %5487 = vmatmul.mubr.f32.gmra.mrb[82].mxu0 %v6878_v0  ;;  %v8284_v0 = vld [vmem:[#allocation7 + $0x60] sm:$0xff] }
 0x6d5   :  { %6376 = vmatpush3.bf16.msra.mxu0 %v6309_v39  ;;  %5489 = vmatprep.mubr.f32.mxu0 %v6879_v26  ;;  %v8288_v26 = vld [vmem:[#allocation7 + $0x68] sm:$0xff] }
 0x6d6   :  { %6378 = vmatprep.subr.bf16.mxu0 %v6313_v47 }
 0x6d8   :  { %5490 = vmatmul.mubr.f32.gmra.mrb[84].mxu0 %v6880_v17  ;;  %v8290_v17 = vld [vmem:[#allocation7 + $0x70] sm:$0xff] }
 0x6d9   :  { %6380 = vmatpush3.bf16.msra.mxu0 %v6313_v47  ;;  %5492 = vmatprep.mubr.f32.mxu0 %v6881_v32  ;;  %v8294_v32 = vld [vmem:[#allocation7 + $0x78] sm:$0xff] }
 0x6da   :  { %6382 = vmatprep.subr.bf16.mxu0 %v6317_v54 }
 0x6dc   :  { %5493 = vmatmul.mubr.f32.gmra.mrb[86].mxu0 %v6882_v33  ;;  %v3138_v33 = vld [vmem:[#allocation17 + $0x80] sm:$0xff] }
 0x6dd   :  { %6384 = vmatpush3.bf16.msra.mxu0 %v6317_v54  ;;  %5495 = vmatprep.mubr.f32.mxu0 %v6883_v15  ;;  %v3139_v15 = vld [vmem:[#allocation17 + $0x88] sm:$0xff] }
 0x6de   :  { %6386 = vmatprep.subr.bf16.mxu0 %v6321_v13 }
 0x6e0   :  { %5496 = vmatmul.mubr.f32.gmra.mrb[88].mxu0 %v6884_v34  ;;  %v3140_v34 = vld [vmem:[#allocation17 + $0x90] sm:$0xff] }
 0x6e1   :  { %6388 = vmatpush3.bf16.msra.mxu0 %v6321_v13  ;;  %5498 = vmatprep.mubr.f32.mxu0 %v6885_v63  ;;  %v8252_v13 = vld [vmem:[#allocation7 + $0x8] sm:$0xff]  ;;  %v8297_v63 = vpack.c.bf16 %v3139_v15, %v3138_v33 }
 0x6e2   :  { %6390 = vmatprep.subr.bf16.mxu0 %v6325_v6 }
 0x6e4   :  { %5499 = vmatmul.mubr.f32.gmra.mrb[90].mxu0 %v6886_v55  ;;  %v3141_v55 = vld [vmem:[#allocation17 + $0x98] sm:$0xff] }
 0x6e5   :  { %6392 = vmatpush3.bf16.msra.mxu0 %v6325_v6  ;;  %5501 = vmatprep.mubr.f32.mxu0 %v6887_v57  ;;  %v8260_v6 = vld [vmem:[#allocation7 + $0x20] sm:$0xff]  ;;  %v8299_v57 = vpack.c.bf16 %v3141_v55, %v3140_v34 }
 0x6e6   :  { %6394 = vmatprep.subr.bf16.mxu0 %v6329_v51 }
 0x6e8   :  { %5502 = vmatmul.mubr.f32.gmra.mrb[92].mxu0 %v6888_v48  ;;  %v3142_v48 = vld [vmem:[#allocation17 + $0xa0] sm:$0xff] }
 0x6e9   :  { %6396 = vmatpush3.bf16.msra.mxu0 %v6329_v51  ;;  %5504 = vmatprep.mubr.f32.mxu0 %v6889_v56  ;;  %v8270_v51 = vld [vmem:[#allocation7 + $0x38] sm:$0xff]  ;;  %v3143_v56 = vld [vmem:[#allocation17 + $0xa8] sm:$0xff] }
 0x6ea   :  { %6398 = vmatprep.subr.bf16.mxu0 %v6333_v29 }
 0x6ec   :  { %5505 = vmatmul.mubr.f32.gmra.mrb[94].mxu0 %v6890_v53  ;;  %v8304_v53 = vpack.c.bf16 %v3143_v56, %v3142_v48 }
 0x6ed   :  { %6400 = vmatpush3.bf16.msra.mxu0 %v6333_v29  ;;  %v8278_v29 = vld [vmem:[#allocation7 + $0x50] sm:$0xff] }
 0x771   :  { %v5373_v60 = vpop.f32.mrb[64].mxu0 }
 0x772   :  { %v2375_v52 = vpop.f32.mrb[65].mxu0 }
 0x773   :  { %5427 = vmatprep.mubr.f32.mxu1 %v2375_v52  ;;  %v3145_v52 = vld [vmem:[#allocation17 + $0xb8] sm:$0xff] }
 0x774   :  { %5428 = vmatmul.mubr.f32.vlgmr.msra.gmra.mrb[64].mxu1 %v5373_v60  ;;  %v3144_v60 = vld [vmem:[#allocation17 + $0xb0] sm:$0xff] }
 0x775   :  { %v5376_v62 = vpop.f32.mrb[66].mxu0  ;;  %6340 = vmatpush3.bf16.msra.mxu1 %v8203_v42 }
 0x776   :  { %v2385_v7 = vpop.f32.mrb[67].mxu0  ;;  %6342 = vmatprep.subr.bf16.mxu1 %v6341_v58 }
 0x777   :  { %5430 = vmatprep.mubr.f32.mxu1 %v2385_v7  ;;  %v3147_v7 = vld [vmem:[#allocation17 + $0xc8] sm:$0xff] }
 0x778   :  { %5431 = vmatmul.mubr.f32.gmra.mrb[66].mxu1 %v5376_v62  ;;  %v3146_v62 = vld [vmem:[#allocation17 + $0xc0] sm:$0xff] }
 0x779   :  { %v5379_v4 = vpop.f32.mrb[68].mxu0  ;;  %6344 = vmatpush3.bf16.msra.mxu1 %v6341_v58  ;;  %v8308_v58 = vpack.c.bf16 %v3145_v52, %v3144_v60 }
 0x77a   :  { %v2395_v41 = vpop.f32.mrb[69].mxu0  ;;  %6346 = vmatprep.subr.bf16.mxu1 %v6345_v1 }
 0x77b   :  { %5433 = vmatprep.mubr.f32.mxu1 %v2395_v41  ;;  %v3149_v41 = vld [vmem:[#allocation17 + $0xd8] sm:$0xff] }
 0x77c   :  { %5434 = vmatmul.mubr.f32.gmra.mrb[68].mxu1 %v5379_v4  ;;  %v3148_v4 = vld [vmem:[#allocation17 + $0xd0] sm:$0xff] }
 0x77d   :  { %v5382_v43 = vpop.f32.mrb[70].mxu0  ;;  %6348 = vmatpush3.bf16.msra.mxu1 %v6345_v1  ;;  %v8312_v1 = vpack.c.bf16 %v3147_v7, %v3146_v62 }
 0x77e   :  { %v2405_v37 = vpop.f32.mrb[71].mxu0  ;;  %6350 = vmatprep.subr.bf16.mxu1 %v6349_v36 }
 0x77f   :  { %5436 = vmatprep.mubr.f32.mxu1 %v2405_v37  ;;  %v3151_v37 = vld [vmem:[#allocation17 + $0xe8] sm:$0xff] }
 0x780   :  { %5437 = vmatmul.mubr.f32.gmra.mrb[70].mxu1 %v5382_v43  ;;  %v3150_v43 = vld [vmem:[#allocation17 + $0xe0] sm:$0xff] }
 0x781   :  { %v5385_v42 = vpop.f32.mrb[72].mxu0  ;;  %6352 = vmatpush3.bf16.msra.mxu1 %v6349_v36  ;;  %v8316_v36 = vpack.c.bf16 %v3149_v41, %v3148_v4 }
 0x782   :  { %v2415_v45 = vpop.f32.mrb[73].mxu0  ;;  %6354 = vmatprep.subr.bf16.mxu1 %v6353_v30 }
 0x783   :  { %5439 = vmatprep.mubr.f32.mxu1 %v2415_v45  ;;  %v3978_v45 = vld [vmem:[#allocation16 + $0x1] ss:$0 sm:$0xff] }
 0x784   :  { %5440 = vmatmul.mubr.f32.gmra.mrb[72].mxu1 %v5385_v42  ;;  %v3976_v42 = vld [vmem:[%s8519_s10 + $0x1] ss:$0 sm:$0xff]  ;;  %s3988_s10 = sld [smem:[#allocation4 + $0x8]] }
 0x785   :  { %v5388_v39 = vpop.f32.mrb[74].mxu0  ;;  %6356 = vmatpush3.bf16.msra.mxu1 %v6353_v30  ;;  %v8320_v30 = vpack.c.bf16 %v3151_v37, %v3150_v43 }
 0x786   :  { %v2425_v46 = vpop.f32.mrb[75].mxu0  ;;  %6358 = vmatprep.subr.bf16.mxu1 %v6357_v38 }
 0x787   :  { %5442 = vmatprep.mubr.f32.mxu1 %v2425_v46 }
 0x788   :  { %5443 = vmatmul.mubr.f32.gmra.mrb[74].mxu1 %v5388_v39  ;;  %v8330_v39 = vadd.f32 %v3978_v45, %v3978_v45 }
 0x789   :  { %v5391_v47 = vpop.f32.mrb[76].mxu0  ;;  %6360 = vmatpush3.bf16.msra.mxu1 %v6357_v38  ;;  %v8328_v38 = vadd.f32 %v3976_v42, %v3976_v42 }
 0x78a   :  { %v2435_v49 = vpop.f32.mrb[77].mxu0  ;;  %6362 = vmatprep.subr.bf16.mxu1 %v6361_v23  ;;  %s3712_s27 = scalar_lea.vmem [#allocation2], %s3988_s10 }
 0x78b   :  { %5445 = vmatprep.mubr.f32.mxu1 %v2435_v49  ;;  %v6594_v46 = vadd.f32 %v8328_v38, %v8111_v8  ;;  %v6598_v33 = vadd.f32 %v8328_v38, %v8115_v11  ;;  %v6600_v55 = vadd.f32 %v8328_v38, %v8117_v28  ;;  %v6602_v11 = vadd.f32 %v8328_v38, %v8119_v9 }
 0x78c   :  { %5446 = vmatmul.mubr.f32.gmra.mrb[76].mxu1 %v5391_v47  ;;  %v6604_v28 = vadd.f32 %v8328_v38, %v8121_v3  ;;  %v6606_v9 = vadd.f32 %v8328_v38, %v8123_v18  ;;  %v6608_v3 = vadd.f32 %v8328_v38, %v8125_v12  ;;  %v6610_v18 = vadd.f32 %v8328_v38, %v8127_v35 }
 0x78d   :  { %v5394_v54 = vpop.f32.mrb[78].mxu0  ;;  %6364 = vmatpush3.bf16.msra.mxu1 %v6361_v23  ;;  %v6596_v23 = vadd.f32 %v8328_v38, %v8113_v2  ;;  %v1620_v7 = vmax.f32 %v6598_v33, 0.0  ;;  %v1619_v41 = vmax.f32 %v6600_v55, 0.0  ;;  %v6612_v12 = vadd.f32 %v8328_v38, %v8129_v40 }
 0x78e   :  { %v2445_v21 = vpop.f32.mrb[79].mxu0  ;;  %6366 = vmatprep.subr.bf16.mxu1 %v6365_v50  ;;  %v6614_v35 = vadd.f32 %v8328_v38, %v8131_v16  ;;  %v6616_v40 = vadd.f32 %v8328_v38, %v8133_v19  ;;  %v6618_v16 = vadd.f32 %v8328_v38, %v8135_v20  ;;  %v6620_v19 = vadd.f32 %v8328_v38, %v8137_v24 }
 0x78f   :  { %5448 = vmatprep.mubr.f32.mxu1 %v2445_v21  ;;  %v1618_v21 = vmax.f32 %v6594_v46, 0.0  ;;  %v1617_v34 = vmax.f32 %v6596_v23, 0.0  ;;  %v6622_v20 = vadd.f32 %v8328_v38, %v8139_v25  ;;  %v6624_v24 = vadd.f32 %v8328_v38, %v8141_v5 }
 0x790   :  { %5449 = vmatmul.mubr.f32.gmra.mrb[78].mxu1 %v5394_v54 }
 0x791   :  { %6368 = vmatpush3.bf16.msra.mxu1 %v6365_v50  ;;  %5539 = vmatprep.mubr.f32.mxu1 %v8249_v61 }
 0x792   :  { %6402 = vmatprep.subr.bf16.mxu1 %v8297_v63 }
 0x794   :  { %5540 = vmatmul.mubr.f32.vlgmr.msra.gmra.mrb[80].mxu1 %v8252_v13 }
 0x795   :  { %5542 = vmatprep.mubr.f32.mxu1 %v8254_v14  ;;  %6404 = vmatpush3.bf16.msra.mxu1 %v8297_v63 }
 0x796   :  { %6406 = vmatprep.subr.bf16.mxu1 %v8299_v57 }
 0x798   :  { %5543 = vmatmul.mubr.f32.gmra.mrb[82].mxu1 %v8258_v59 }
 0x799   :  { %5545 = vmatprep.mubr.f32.mxu1 %v8260_v6  ;;  %6408 = vmatpush3.bf16.msra.mxu1 %v8299_v57 }
 0x79a   :  { %6410 = vmatprep.subr.bf16.mxu1 %v8304_v53 }
 0x79c   :  { %5546 = vmatmul.mubr.f32.gmra.mrb[84].mxu1 %v8264_v44 }
 0x79d   :  { %5548 = vmatprep.mubr.f32.mxu1 %v8266_v10  ;;  %6412 = vmatpush3.bf16.msra.mxu1 %v8304_v53 }
 0x79e   :  { %6414 = vmatprep.subr.bf16.mxu1 %v8308_v58 }
 0x7a0   :  { %5549 = vmatmul.mubr.f32.gmra.mrb[86].mxu1 %v8270_v51 }
 0x7a1   :  { %5551 = vmatprep.mubr.f32.mxu1 %v8272_v22  ;;  %6416 = vmatpush3.bf16.msra.mxu1 %v8308_v58 }
 0x7a2   :  { %6418 = vmatprep.subr.bf16.mxu1 %v8312_v1 }
 0x7a4   :  { %5552 = vmatmul.mubr.f32.gmra.mrb[88].mxu1 %v8276_v27 }
 0x7a5   :  { %5554 = vmatprep.mubr.f32.mxu1 %v8278_v29  ;;  %6420 = vmatpush3.bf16.msra.mxu1 %v8312_v1 }
 0x7a6   :  { %6422 = vmatprep.subr.bf16.mxu1 %v8316_v36 }
 0x7a8   :  { %5555 = vmatmul.mubr.f32.gmra.mrb[90].mxu1 %v8282_v31 }
 0x7a9   :  { %5557 = vmatprep.mubr.f32.mxu1 %v8284_v0  ;;  %6424 = vmatpush3.bf16.msra.mxu1 %v8316_v36 }
 0x7aa   :  { %6426 = vmatprep.subr.bf16.mxu1 %v8320_v30 }
 0x7ac   :  { %5558 = vmatmul.mubr.f32.gmra.mrb[92].mxu1 %v8288_v26 }
 0x7ad   :  { %5560 = vmatprep.mubr.f32.mxu1 %v8290_v17  ;;  %6428 = vmatpush3.bf16.msra.mxu1 %v8320_v30 }
 0x7b0   :  { %5561 = vmatmul.mubr.f32.gmra.mrb[94].mxu1 %v8294_v32 }
 0x847   :  { %v5429_v47 = vpop.f32.mrb[64].mxu1 }
 0x848   :  { %v6658_v49 = vadd.f32 %v8330_v39, %v5429_v47  ;;  %v2520_v50 = vpop.f32.mrb[65].mxu1 }
 0x849   :  { %v6660_v54 = vadd.f32 %v8330_v39, %v2520_v50 }
 0x84a   :  { %v2616_v15 = vmax.f32 %v6658_v49, 0.0  ;;  %v1622_v49 = vmax.f32 %v6602_v11, 0.0 }
 0x84b   :  { %v2615_v48 = vmax.f32 %v6660_v54, 0.0  ;;  %v5432_v8 = vpop.f32.mrb[66].mxu1  ;;  %v1621_v54 = vmax.f32 %v6604_v28, 0.0 }
 0x84c   :  { %v8342_v56 = vadd.f32 %v2616_v15, %v1618_v21  ;;  %v6662_v2 = vadd.f32 %v8330_v39, %v5432_v8  ;;  %v2530_v60 = vpop.f32.mrb[67].mxu1 }
 0x84d   :  { %v8345_v52 = vadd.f32 %v2615_v48, %v1617_v34  ;;  %v6664_v62 = vadd.f32 %v8330_v39, %v2530_v60 }
 0x84e   :  { %v2618_v4 = vmax.f32 %v6662_v2, 0.0  ;;  %v1624_v2 = vmax.f32 %v6606_v9, 0.0 }
 0x84f   :  { %v2617_v43 = vmax.f32 %v6664_v62, 0.0  ;;  %v5435_v37 = vpop.f32.mrb[68].mxu1  ;;  %v1623_v62 = vmax.f32 %v6608_v3, 0.0 }
 0x850   :  { %v8352_v42 = vadd.f32 %v2618_v4, %v1620_v7  ;;  %v6666_v45 = vadd.f32 %v8330_v39, %v5435_v37  ;;  %v2540_v46 = vpop.f32.mrb[69].mxu1 }
 0x851   :  { %v8355_v23 = vadd.f32 %v2617_v43, %v1619_v41  ;;  %v6668_v47 = vadd.f32 %v8330_v39, %v2540_v46 }
 0x852   :  { %v2620_v50 = vmax.f32 %v6666_v45, 0.0  ;;  %v1626_v45 = vmax.f32 %v6610_v18, 0.0 }
 0x853   :  { %v2619_v21 = vmax.f32 %v6668_v47, 0.0  ;;  %v5438_v33 = vpop.f32.mrb[70].mxu1  ;;  %v1625_v47 = vmax.f32 %v6612_v12, 0.0 }
 0x854   :  { %v8362_v15 = vadd.f32 %v2620_v50, %v1622_v49  ;;  %v6670_v34 = vadd.f32 %v8330_v39, %v5438_v33  ;;  %v2550_v55 = vpop.f32.mrb[71].mxu1 }
 0x855   :  { %v8365_v48 = vadd.f32 %v2619_v21, %v1621_v54  ;;  %v6672_v8 = vadd.f32 %v8330_v39, %v2550_v55 }
 0x856   :  { %v2622_v60 = vmax.f32 %v6670_v34, 0.0  ;;  %v1628_v34 = vmax.f32 %v6614_v35, 0.0 }
 0x857   :  { %v2621_v7 = vmax.f32 %v6672_v8, 0.0  ;;  %v5441_v11 = vpop.f32.mrb[72].mxu1  ;;  %v1627_v8 = vmax.f32 %v6616_v40, 0.0 }
 0x858   :  { %v8372_v4 = vadd.f32 %v2622_v60, %v1624_v2  ;;  %v6674_v41 = vadd.f32 %v8330_v39, %v5441_v11  ;;  %v2560_v28 = vpop.f32.mrb[73].mxu1 }
 0x859   :  { %v8375_v43 = vadd.f32 %v2621_v7, %v1623_v62  ;;  %v6676_v37 = vadd.f32 %v8330_v39, %v2560_v28 }
 0x85a   :  { %v2624_v46 = vmax.f32 %v6674_v41, 0.0  ;;  %v1630_v41 = vmax.f32 %v6618_v16, 0.0 }
 0x85b   :  { %v2623_v49 = vmax.f32 %v6676_v37, 0.0  ;;  %v5444_v9 = vpop.f32.mrb[74].mxu1  ;;  %v1629_v37 = vmax.f32 %v6620_v19, 0.0 }
 0x85c   :  { %v8382_v50 = vadd.f32 %v2624_v46, %v1626_v45  ;;  %v6678_v54 = vadd.f32 %v8330_v39, %v5444_v9  ;;  %v2570_v3 = vpop.f32.mrb[75].mxu1 }
 0x85d   :  { %v8385_v21 = vadd.f32 %v2623_v49, %v1625_v47  ;;  %v6680_v33 = vadd.f32 %v8330_v39, %v2570_v3 }
 0x85e   :  { %v2626_v55 = vmax.f32 %v6678_v54, 0.0  ;;  %v1632_v54 = vmax.f32 %v6622_v20, 0.0 }
 0x85f   :  { %v2625_v2 = vmax.f32 %v6680_v33, 0.0  ;;  %v5447_v18 = vpop.f32.mrb[76].mxu1  ;;  %v1631_v33 = vmax.f32 %v6624_v24, 0.0 }
 0x860   :  { %v8392_v60 = vadd.f32 %v2626_v55, %v1628_v34  ;;  %v6682_v62 = vadd.f32 %v8330_v39, %v5447_v18  ;;  %v2580_v12 = vpop.f32.mrb[77].mxu1 }
 0x861   :  { %v8395_v7 = vadd.f32 %v2625_v2, %v1627_v8  ;;  %v6684_v11 = vadd.f32 %v8330_v39, %v2580_v12 }
 0x862   :  { %v2628_v28 = vmax.f32 %v6682_v62, 0.0 }
 0x863   :  { %v2627_v45 = vmax.f32 %v6684_v11, 0.0  ;;  %v5450_v35 = vpop.f32.mrb[78].mxu1 }
 0x864   :  { %v8402_v46 = vadd.f32 %v2628_v28, %v1630_v41  ;;  %v6686_v47 = vadd.f32 %v8330_v39, %v5450_v35  ;;  %v2590_v40 = vpop.f32.mrb[79].mxu1  ;;  %v3153_v35 = vld [vmem:[#allocation17 + $0xf8] sm:$0xff] }
 0x865   :  { %v8405_v49 = vadd.f32 %v2627_v45, %v1629_v37  ;;  %v6688_v9 = vadd.f32 %v8330_v39, %v2590_v40  ;;  %v3152_v45 = vld [vmem:[#allocation17 + $0xf0] sm:$0xff]  ;;  %v3979_v40 = vld [vmem:[#allocation19] ss:$0 sm:$0xff] }
 0x866   :  { %v2630_v3 = vmax.f32 %v6686_v47, 0.0  ;;  %v8413_v47 = vpack.c.bf16 %v3153_v35, %v3152_v45 }
 0x867   :  { %v2629_v25 = vmax.f32 %v6688_v9, 0.0  ;;  %v5541_v34 = vpop.f32.mrb[80].mxu1  ;;  %v8418_v9 = vadd.f32 %v3979_v40, %v3979_v40 }
 0x868   :  { %v8408_v16 = vadd.f32 %v2630_v3, %v1632_v54  ;;  %v2881_v55 = vpop.f32.mrb[81].mxu1  ;;  %6430 = vmatprep.subr.bf16.mxu1 %v8413_v47 }
 0x869   :  { %v8410_v5 = vadd.f32 %v2629_v25, %v1631_v33  ;;  %5595 = vmatprep.mubr.f32.mxu0 %v2881_v55  ;;  %6432 = vmatpush3.bf16.msra.mxu1 %v8413_v47 }
 0x86a   :  { %5596 = vmatmul.mubr.f32.vlgmr.msra.gmra.mrb[80].mxu0 %v5541_v34  ;;  %6466 = vmatprep.subr.bf16.mxu1 %v8297_v63 }
 0x86b   :  { %v5544_v38 = vpop.f32.mrb[82].mxu1 }
 0x86c   :  { %v2891_v8 = vpop.f32.mrb[83].mxu1 }
 0x86d   :  { %5598 = vmatprep.mubr.f32.mxu0 %v2891_v8 }
 0x86e   :  { %5599 = vmatmul.mubr.f32.gmra.mrb[82].mxu0 %v5544_v38 }
 0x86f   :  { %v5547_v19 = vpop.f32.mrb[84].mxu1 }
 0x870   :  { %v2901_v2 = vpop.f32.mrb[85].mxu1 }
 0x871   :  { %5601 = vmatprep.mubr.f32.mxu0 %v2901_v2 }
 0x872   :  { %5602 = vmatmul.mubr.f32.gmra.mrb[84].mxu0 %v5547_v19 }
 0x873   :  { %v5550_v39 = vpop.f32.mrb[86].mxu1 }
 0x874   :  { %v2911_v18 = vpop.f32.mrb[87].mxu1 }
 0x875   :  { %5604 = vmatprep.mubr.f32.mxu0 %v2911_v18 }
 0x876   :  { %5605 = vmatmul.mubr.f32.gmra.mrb[86].mxu0 %v5550_v39 }
 0x877   :  { %v5553_v62 = vpop.f32.mrb[88].mxu1 }
 0x878   :  { %v2921_v12 = vpop.f32.mrb[89].mxu1 }
 0x879   :  { %5607 = vmatprep.mubr.f32.mxu0 %v2921_v12 }
 0x87a   :  { %5608 = vmatmul.mubr.f32.gmra.mrb[88].mxu0 %v5553_v62 }
 0x87b   :  { %v5556_v11 = vpop.f32.mrb[90].mxu1 }
 0x87c   :  { %v2931_v41 = vpop.f32.mrb[91].mxu1 }
 0x87d   :  { %5610 = vmatprep.mubr.f32.mxu0 %v2931_v41 }
 0x87e   :  { %5611 = vmatmul.mubr.f32.gmra.mrb[90].mxu0 %v5556_v11 }
 0x87f   :  { %v5559_v20 = vpop.f32.mrb[92].mxu1 }
 0x880   :  { %v2941_v28 = vpop.f32.mrb[93].mxu1 }
 0x881   :  { %5613 = vmatprep.mubr.f32.mxu0 %v2941_v28 }
 0x882   :  { %5614 = vmatmul.mubr.f32.gmra.mrb[92].mxu0 %v5559_v20 }
 0x883   :  { %v5562_v37 = vpop.f32.mrb[94].mxu1 }
 0x884   :  { %v2951_v24 = vpop.f32.mrb[95].mxu1 }
 0x885   :  { %5616 = vmatprep.mubr.f32.mxu0 %v2951_v24 }
 0x886   :  { %5617 = vmatmul.mubr.f32.gmra.mrb[94].mxu0 %v5562_v37 }
 0x887   :  { %5707 = vmatprep.mubr.f32.mxu0 %v8249_v61 }
 0x93d   :  { %v5597_v54 = vpop.f32.mrb[80].mxu0 }
 0x93e   :  { %v6690_v3 = vadd.f32 %v8418_v9, %v5597_v54  ;;  %v3026_v33 = vpop.f32.mrb[81].mxu0 }
 0x93f   :  { %v6692_v25 = vadd.f32 %v8418_v9, %v3026_v33 }
 0x940   :  { %v3122_v61 = vmax.f32 %v6690_v3, 0.0 }
 0x941   :  { %v3121_v34 = vmax.f32 %v6692_v25, 0.0  ;;  %v5600_v55 = vpop.f32.mrb[82].mxu0 }
 0x942   :  { %v6694_v38 = vadd.f32 %v8418_v9, %v5600_v55  ;;  %v3036_v8 = vpop.f32.mrb[83].mxu0 }
 0x943   :  { %v6433_v19 = vpack.c.bf16 %v3122_v61, %v3121_v34  ;;  %v6696_v2 = vadd.f32 %v8418_v9, %v3036_v8  ;;  %5651 = vmatprep.mubr.f32.mxu1 %v3121_v34 }
 0x944   :  { %v3124_v39 = vmax.f32 %v6694_v38, 0.0  ;;  %5652 = vmatmul.mubr.f32.vlgmr.msra.gmra.mrb[96].mxu1 %v3122_v61 }
 0x945   :  { %v3123_v18 = vmax.f32 %v6696_v2, 0.0  ;;  %v5603_v62 = vpop.f32.mrb[84].mxu0  ;;  %6434 = vmatprep.subr.bf16.mxu0 %v6433_v19  ;;  %6468 = vmatpush3.bf16.msra.mxu1 %v8297_v63 }
 0x946   :  { %v6698_v12 = vadd.f32 %v8418_v9, %v5603_v62  ;;  %v3046_v11 = vpop.f32.mrb[85].mxu0  ;;  %6436 = vmatpush3.bf16.msra.mxu0 %v6433_v19  ;;  %6470 = vmatprep.subr.bf16.mxu1 %v8299_v57 }
 0x947   :  { %v6437_v41 = vpack.c.bf16 %v3124_v39, %v3123_v18  ;;  %v6700_v20 = vadd.f32 %v8418_v9, %v3046_v11  ;;  %5654 = vmatprep.mubr.f32.mxu1 %v3123_v18 }
 0x948   :  { %v3126_v28 = vmax.f32 %v6698_v12, 0.0  ;;  %5655 = vmatmul.mubr.f32.gmra.mrb[98].mxu1 %v3124_v39 }
 0x949   :  { %v3125_v37 = vmax.f32 %v6700_v20, 0.0  ;;  %v5606_v24 = vpop.f32.mrb[86].mxu0  ;;  %6438 = vmatprep.subr.bf16.mxu0 %v6437_v41  ;;  %6472 = vmatpush3.bf16.msra.mxu1 %v8299_v57 }
 0x94a   :  { %v6702_v45 = vadd.f32 %v8418_v9, %v5606_v24  ;;  %v3056_v63 = vpop.f32.mrb[87].mxu0  ;;  %6440 = vmatpush3.bf16.msra.mxu0 %v6437_v41  ;;  %6474 = vmatprep.subr.bf16.mxu1 %v8304_v53 }
 0x94b   :  { %v6441_v35 = vpack.c.bf16 %v3126_v28, %v3125_v37  ;;  %v6704_v40 = vadd.f32 %v8418_v9, %v3056_v63  ;;  %5657 = vmatprep.mubr.f32.mxu1 %v3125_v37 }
 0x94c   :  { %v3128_v54 = vmax.f32 %v6702_v45, 0.0  ;;  %5658 = vmatmul.mubr.f32.gmra.mrb[100].mxu1 %v3126_v28 }
 0x94d   :  { %v3127_v3 = vmax.f32 %v6704_v40, 0.0  ;;  %v5609_v33 = vpop.f32.mrb[88].mxu0  ;;  %6442 = vmatprep.subr.bf16.mxu0 %v6441_v35  ;;  %6476 = vmatpush3.bf16.msra.mxu1 %v8304_v53 }
 0x94e   :  { %v6706_v25 = vadd.f32 %v8418_v9, %v5609_v33  ;;  %v3066_v57 = vpop.f32.mrb[89].mxu0  ;;  %6444 = vmatpush3.bf16.msra.mxu0 %v6441_v35  ;;  %6478 = vmatprep.subr.bf16.mxu1 %v8308_v58  ;;  %v3723_v33 = vld [vmem:[#allocation20 + $0x10] sm:$0xff] }
 0x94f   :  { %v6445_v61 = vpack.c.bf16 %v3128_v54, %v3127_v3  ;;  %v6708_v34 = vadd.f32 %v8418_v9, %v3066_v57  ;;  %5660 = vmatprep.mubr.f32.mxu1 %v3127_v3 }
 0x950   :  { %v3130_v55 = vmax.f32 %v6706_v25, 0.0  ;;  %5661 = vmatmul.mubr.f32.gmra.mrb[102].mxu1 %v3128_v54  ;;  %v3724_v25 = vld [vmem:[#allocation20 + $0x18] sm:$0xff] }
 0x951   :  { %v3129_v38 = vmax.f32 %v6708_v34, 0.0  ;;  %v5612_v8 = vpop.f32.mrb[90].mxu0  ;;  %6446 = vmatprep.subr.bf16.mxu0 %v6445_v61  ;;  %6480 = vmatpush3.bf16.msra.mxu1 %v8308_v58  ;;  %v6501_v57 = vpack.c.bf16 %v3724_v25, %v3723_v33  ;;  %v3726_v34 = vld [vmem:[#allocation20 + $0x28] sm:$0xff] }
 0x952   :  { %v6710_v19 = vadd.f32 %v8418_v9, %v5612_v8  ;;  %v3076_v53 = vpop.f32.mrb[91].mxu0  ;;  %6448 = vmatpush3.bf16.msra.mxu0 %v6445_v61  ;;  %6482 = vmatprep.subr.bf16.mxu1 %v8312_v1  ;;  %v3725_v61 = vld [vmem:[#allocation20 + $0x20] sm:$0xff]  ;;  %v3728_v8 = vld [vmem:[#allocation20 + $0x38] sm:$0xff] }
 0x953   :  { %v6449_v2 = vpack.c.bf16 %v3130_v55, %v3129_v38  ;;  %v6712_v39 = vadd.f32 %v8418_v9, %v3076_v53  ;;  %5663 = vmatprep.mubr.f32.mxu1 %v3129_v38  ;;  %v3727_v38 = vld [vmem:[#allocation20 + $0x30] sm:$0xff]  ;;  %v3729_v53 = vld [vmem:[#allocation20 + $0x40] sm:$0xff] }
 0x954   :  { %v3132_v18 = vmax.f32 %v6710_v19, 0.0  ;;  %5664 = vmatmul.mubr.f32.gmra.mrb[104].mxu1 %v3130_v55  ;;  %v6505_v55 = vpack.c.bf16 %v3726_v34, %v3725_v61  ;;  %v6509_v19 = vpack.c.bf16 %v3728_v8, %v3727_v38 }
 0x955   :  { %v3131_v62 = vmax.f32 %v6712_v39, 0.0  ;;  %v5615_v12 = vpop.f32.mrb[92].mxu0  ;;  %6450 = vmatprep.subr.bf16.mxu0 %v6449_v2  ;;  %6484 = vmatpush3.bf16.msra.mxu1 %v8312_v1 }
 0x956   :  { %v6714_v11 = vadd.f32 %v8418_v9, %v5615_v12  ;;  %v3086_v58 = vpop.f32.mrb[93].mxu0  ;;  %6452 = vmatpush3.bf16.msra.mxu0 %v6449_v2  ;;  %6486 = vmatprep.subr.bf16.mxu1 %v8316_v36  ;;  %v3730_v2 = vld [vmem:[#allocation20 + $0x48] sm:$0xff]  ;;  %v3732_v12 = vld [vmem:[#allocation20 + $0x58] sm:$0xff] }
 0x957   :  { %v6453_v41 = vpack.c.bf16 %v3132_v18, %v3131_v62  ;;  %v6716_v20 = vadd.f32 %v8418_v9, %v3086_v58  ;;  %5666 = vmatprep.mubr.f32.mxu1 %v3131_v62  ;;  %v6513_v39 = vpack.c.bf16 %v3730_v2, %v3729_v53  ;;  %v3731_v62 = vld [vmem:[#allocation20 + $0x50] sm:$0xff]  ;;  %v3733_v58 = vld [vmem:[#allocation20 + $0x60] sm:$0xff] }
 0x958   :  { %v3134_v28 = vmax.f32 %v6714_v11, 0.0  ;;  %5667 = vmatmul.mubr.f32.gmra.mrb[106].mxu1 %v3132_v18  ;;  %v7200_v18 = vmov 0.0   ;;  %v6517_v11 = vpack.c.bf16 %v3732_v12, %v3731_v62 }
 0x959   :  { %v3133_v37 = vmax.f32 %v6716_v20, 0.0  ;;  %v5618_v24 = vpop.f32.mrb[94].mxu0  ;;  %6454 = vmatprep.subr.bf16.mxu0 %v6453_v41  ;;  %6488 = vmatpush3.bf16.msra.mxu1 %v8316_v36  ;;  %3677 = vst [vmem:[#allocation3] sm:$0xff] %v7200_v18  ;;  %3678 = vst [vmem:[#allocation3 + $0x8] sm:$0xff] %v7200_v18 }
 0x95a   :  { %v6718_v45 = vadd.f32 %v8418_v9, %v5618_v24  ;;  %v3096_v1 = vpop.f32.mrb[95].mxu0  ;;  %6456 = vmatpush3.bf16.msra.mxu0 %v6453_v41  ;;  %6490 = vmatprep.subr.bf16.mxu1 %v8320_v30  ;;  %v3734_v41 = vld [vmem:[#allocation20 + $0x68] sm:$0xff] }
 0x95b   :  { %v6457_v63 = vpack.c.bf16 %v3134_v28, %v3133_v37  ;;  %v6720_v35 = vadd.f32 %v8418_v9, %v3096_v1  ;;  %5669 = vmatprep.mubr.f32.mxu1 %v3133_v37  ;;  %v3722_v9 = vld [vmem:[#allocation20 + $0x8] sm:$0xff]  ;;  %v6521_v20 = vpack.c.bf16 %v3734_v41, %v3733_v58  ;;  %v3736_v37 = vld [vmem:[#allocation20 + $0x78] sm:$0xff] }
 0x95c   :  { %v3136_v40 = vmax.f32 %v6718_v45, 0.0  ;;  %5670 = vmatmul.mubr.f32.gmra.mrb[108].mxu1 %v3134_v28  ;;  %v3735_v28 = vld [vmem:[#allocation20 + $0x70] sm:$0xff]  ;;  %v3825_v45 = vld [vmem:[#allocation23] sm:$0xff] }
 0x95d   :  { %v3135_v54 = vmax.f32 %v6720_v35, 0.0  ;;  %6458 = vmatprep.subr.bf16.mxu0 %v6457_v63  ;;  %6492 = vmatpush3.bf16.msra.mxu1 %v8320_v30  ;;  %v6525_v24 = vpack.c.bf16 %v3736_v37, %v3735_v28  ;;  %v3826_v1 = vld [vmem:[#allocation23 + $0x8] sm:$0xff] }
 0x95e   :  { %6460 = vmatpush3.bf16.msra.mxu0 %v6457_v63  ;;  %6494 = vmatprep.subr.bf16.mxu1 %v8413_v47  ;;  %v3827_v63 = vld [vmem:[#allocation23 + $0x10] sm:$0xff]  ;;  %v6529_v35 = vpack.c.bf16 %v3826_v1, %v3825_v45 }
 0x95f   :  { %v6461_v36 = vpack.c.bf16 %v3136_v40, %v3135_v54  ;;  %5672 = vmatprep.mubr.f32.mxu1 %v3135_v54 }
 0x960   :  { %5673 = vmatmul.mubr.f32.gmra.mrb[110].mxu1 %v3136_v40  ;;  %v3828_v40 = vld [vmem:[#allocation23 + $0x18] sm:$0xff] }
 0x961   :  { %6462 = vmatprep.subr.bf16.mxu0 %v6461_v36  ;;  %6496 = vmatpush3.bf16.msra.mxu1 %v8413_v47  ;;  %v3721_v47 = vld [vmem:[#allocation20] sm:$0xff]  ;;  %v6533_v54 = vpack.c.bf16 %v3828_v40, %v3827_v63 }
 0x962   :  { %6464 = vmatpush3.bf16.msra.mxu0 %v6461_v36  ;;  %v6497_v3 = vpack.c.bf16 %v3722_v9, %v3721_v47  ;;  %v3829_v36 = vld [vmem:[#allocation23 + $0x20] sm:$0xff]  ;;  %6530 = vmatprep.subr.bf16.mxu1 %v6529_v35 }
 0x964   :  { %6498 = vmatprep.subr.bf16.mxu0 %v6497_v3 }
 0x965   :  { %5708 = vmatmul.mubr.f32.vlgmr.msra.gmra.mrb[96].mxu0 %v8252_v13 }
 0x966   :  { %5710 = vmatprep.mubr.f32.mxu0 %v8254_v14  ;;  %6500 = vmatpush3.bf16.msra.mxu0 %v6497_v3 }
 0x967   :  { %6502 = vmatprep.subr.bf16.mxu0 %v6501_v57 }
 0x969   :  { %5711 = vmatmul.mubr.f32.gmra.mrb[98].mxu0 %v8258_v59 }
 0x96a   :  { %5713 = vmatprep.mubr.f32.mxu0 %v8260_v6  ;;  %6504 = vmatpush3.bf16.msra.mxu0 %v6501_v57 }
 0x96b   :  { %6506 = vmatprep.subr.bf16.mxu0 %v6505_v55 }
 0x96d   :  { %5714 = vmatmul.mubr.f32.gmra.mrb[100].mxu0 %v8264_v44 }
 0x96e   :  { %5716 = vmatprep.mubr.f32.mxu0 %v8266_v10  ;;  %6508 = vmatpush3.bf16.msra.mxu0 %v6505_v55 }
 0x96f   :  { %6510 = vmatprep.subr.bf16.mxu0 %v6509_v19 }
 0x971   :  { %5717 = vmatmul.mubr.f32.gmra.mrb[102].mxu0 %v8270_v51 }
 0x972   :  { %5719 = vmatprep.mubr.f32.mxu0 %v8272_v22  ;;  %6512 = vmatpush3.bf16.msra.mxu0 %v6509_v19 }
 0x973   :  { %6514 = vmatprep.subr.bf16.mxu0 %v6513_v39 }
 0x975   :  { %5720 = vmatmul.mubr.f32.gmra.mrb[104].mxu0 %v8276_v27 }
 0x976   :  { %5722 = vmatprep.mubr.f32.mxu0 %v8278_v29  ;;  %6516 = vmatpush3.bf16.msra.mxu0 %v6513_v39 }
 0x977   :  { %6518 = vmatprep.subr.bf16.mxu0 %v6517_v11 }
 0x979   :  { %5723 = vmatmul.mubr.f32.gmra.mrb[106].mxu0 %v8282_v31 }
 0x97a   :  { %5725 = vmatprep.mubr.f32.mxu0 %v8284_v0  ;;  %6520 = vmatpush3.bf16.msra.mxu0 %v6517_v11 }
 0x97b   :  { %6522 = vmatprep.subr.bf16.mxu0 %v6521_v20 }
 0x97d   :  { %5726 = vmatmul.mubr.f32.gmra.mrb[108].mxu0 %v8288_v26 }
 0x97e   :  { %5728 = vmatprep.mubr.f32.mxu0 %v8290_v17  ;;  %6524 = vmatpush3.bf16.msra.mxu0 %v6521_v20 }
 0x97f   :  { %6526 = vmatprep.subr.bf16.mxu0 %v6525_v24 }
 0x981   :  { %5729 = vmatmul.mubr.f32.gmra.mrb[110].mxu0 %v8294_v32 }
 0x982   :  { %6528 = vmatpush3.bf16.msra.mxu0 %v6525_v24 }
 0xa38   :  { %v5709_v13 = vpop.f32.mrb[96].mxu0 }
 0xa39   :  { %v3373_v14 = vpop.f32.mrb[97].mxu0 }
 0xa3a   :  { %5763 = vmatprep.mubr.f32.mxu1 %v3373_v14 }
 0xa3b   :  { %5764 = vmatmul.mubr.f32.vlgmr.msra.gmra.mrb[96].mxu1 %v5709_v13  ;;  %v3830_v13 = vld [vmem:[#allocation23 + $0x28] sm:$0xff] }
 0xa3c   :  { %v5712_v59 = vpop.f32.mrb[98].mxu0  ;;  %6532 = vmatpush3.bf16.msra.mxu1 %v6529_v35  ;;  %v6537_v14 = vpack.c.bf16 %v3830_v13, %v3829_v36 }
 0xa3d   :  { %v3383_v6 = vpop.f32.mrb[99].mxu0  ;;  %6534 = vmatprep.subr.bf16.mxu1 %v6533_v54 }
 0xa3e   :  { %5766 = vmatprep.mubr.f32.mxu1 %v3383_v6  ;;  %v3832_v6 = vld [vmem:[#allocation23 + $0x38] sm:$0xff] }
 0xa3f   :  { %5767 = vmatmul.mubr.f32.gmra.mrb[98].mxu1 %v5712_v59  ;;  %v3831_v59 = vld [vmem:[#allocation23 + $0x30] sm:$0xff] }
 0xa40   :  { %v5715_v44 = vpop.f32.mrb[100].mxu0  ;;  %6536 = vmatpush3.bf16.msra.mxu1 %v6533_v54 }
 0xa41   :  { %v3393_v10 = vpop.f32.mrb[101].mxu0  ;;  %6538 = vmatprep.subr.bf16.mxu1 %v6537_v14 }
 0xa42   :  { %5769 = vmatprep.mubr.f32.mxu1 %v3393_v10  ;;  %v3833_v10 = vld [vmem:[#allocation23 + $0x40] sm:$0xff] }
 0xa43   :  { %5770 = vmatmul.mubr.f32.gmra.mrb[100].mxu1 %v5715_v44  ;;  %v6541_v44 = vpack.c.bf16 %v3832_v6, %v3831_v59 }
 0xa44   :  { %v5718_v51 = vpop.f32.mrb[102].mxu0  ;;  %6540 = vmatpush3.bf16.msra.mxu1 %v6537_v14 }
 0xa45   :  { %v3403_v22 = vpop.f32.mrb[103].mxu0  ;;  %6542 = vmatprep.subr.bf16.mxu1 %v6541_v44 }
 0xa46   :  { %5772 = vmatprep.mubr.f32.mxu1 %v3403_v22 }
 0xa47   :  { %5773 = vmatmul.mubr.f32.gmra.mrb[102].mxu1 %v5718_v51  ;;  %v3834_v51 = vld [vmem:[#allocation23 + $0x48] sm:$0xff] }
 0xa48   :  { %v5721_v27 = vpop.f32.mrb[104].mxu0  ;;  %v6545_v22 = vpack.c.bf16 %v3834_v51, %v3833_v10  ;;  %6544 = vmatpush3.bf16.msra.mxu1 %v6541_v44 }
 0xa49   :  { %v3413_v29 = vpop.f32.mrb[105].mxu0 }
 0xa4a   :  { %5775 = vmatprep.mubr.f32.mxu1 %v3413_v29  ;;  %v3836_v29 = vld [vmem:[#allocation23 + $0x58] sm:$0xff]  ;;  %6546 = vmatprep.subr.bf16.mxu1 %v6545_v22 }
 0xa4b   :  { %5776 = vmatmul.mubr.f32.gmra.mrb[104].mxu1 %v5721_v27  ;;  %v3835_v27 = vld [vmem:[#allocation23 + $0x50] sm:$0xff] }
 0xa4c   :  { %v5724_v31 = vpop.f32.mrb[106].mxu0  ;;  %6548 = vmatpush3.bf16.msra.mxu1 %v6545_v22 }
 0xa4d   :  { %v3423_v0 = vpop.f32.mrb[107].mxu0 }
 0xa4e   :  { %5778 = vmatprep.mubr.f32.mxu1 %v3423_v0  ;;  %v3980_v0 = vld [vmem:[#allocation19 + $0x1] ss:$0 sm:$0xff] }
 0xa4f   :  { %5779 = vmatmul.mubr.f32.gmra.mrb[106].mxu1 %v5724_v31  ;;  %v6549_v31 = vpack.c.bf16 %v3836_v29, %v3835_v27 }
 0xa50   :  { %v5727_v26 = vpop.f32.mrb[108].mxu0 }
 0xa51   :  { %v3433_v17 = vpop.f32.mrb[109].mxu0  ;;  %6550 = vmatprep.subr.bf16.mxu1 %v6549_v31 }
 0xa52   :  { %5781 = vmatprep.mubr.f32.mxu1 %v3433_v17  ;;  %6552 = vmatpush3.bf16.msra.mxu1 %v6549_v31 }
 0xa53   :  { %5782 = vmatmul.mubr.f32.gmra.mrb[108].mxu1 %v5727_v26  ;;  %v8466_v26 = vadd.f32 %v3980_v0, %v3980_v0 }
 0xa54   :  { %v5730_v32 = vpop.f32.mrb[110].mxu0 }
 0xa55   :  { %v3443_v30 = vpop.f32.mrb[111].mxu0 }
 0xa56   :  { %5784 = vmatprep.mubr.f32.mxu1 %v3443_v30 }
 0xa57   :  { %5785 = vmatmul.mubr.f32.gmra.mrb[110].mxu1 %v5730_v32 }
 0xb0e   :  { %v5765_v17 = vpop.f32.mrb[96].mxu1 }
 0xb0f   :  { %v6722_v32 = vadd.f32 %v8466_v26, %v5765_v17  ;;  %v3518_v30 = vpop.f32.mrb[97].mxu1 }
 0xb10   :  { %v6724_v47 = vadd.f32 %v8466_v26, %v3518_v30 }
 0xb11   :  { %v3614_v9 = vmax.f32 %v6722_v32, 0.0 }
 0xb12   :  { %v3613_v3 = vmax.f32 %v6724_v47, 0.0  ;;  %v5768_v33 = vpop.f32.mrb[98].mxu1 }
 0xb13   :  { %v3646_v25 = vadd.f32 %v8342_v56, %v3614_v9  ;;  %v6726_v57 = vadd.f32 %v8466_v26, %v5768_v33  ;;  %v3528_v61 = vpop.f32.mrb[99].mxu1 }
 0xb14   :  { %v3645_v34 = vadd.f32 %v8345_v52, %v3613_v3  ;;  %v6728_v55 = vadd.f32 %v8466_v26, %v3528_v61 }
 0xb15   :  { %3662 = vst [vmem:[#allocation2 + $0x8] sm:$0xff] %v3646_v25  ;;  %v3616_v38 = vmax.f32 %v6726_v57, 0.0 }
 0xb16   :  { %3661 = vst [vmem:[#allocation2] sm:$0xff] %v3645_v34  ;;  %v3615_v8 = vmax.f32 %v6728_v55, 0.0  ;;  %v5771_v19 = vpop.f32.mrb[100].mxu1 }
 0xb17   :  { %v3648_v53 = vadd.f32 %v8352_v42, %v3616_v38  ;;  %v6730_v2 = vadd.f32 %v8466_v26, %v5771_v19  ;;  %v3538_v39 = vpop.f32.mrb[101].mxu1  ;;  %v3837_v38 = vld [vmem:[#allocation23 + $0x60] sm:$0xff] }
 0xb18   :  { %v3647_v18 = vadd.f32 %v8355_v23, %v3615_v8  ;;  %v6732_v56 = vadd.f32 %v8466_v26, %v3538_v39  ;;  %v3838_v8 = vld [vmem:[#allocation23 + $0x68] sm:$0xff] }
 0xb19   :  { %3664 = vst [vmem:[#allocation2 + $0x18] sm:$0xff] %v3648_v53  ;;  %v3618_v62 = vmax.f32 %v6730_v2, 0.0  ;;  %v6553_v19 = vpack.c.bf16 %v3838_v8, %v3837_v38  ;;  %v3839_v53 = vld [vmem:[#allocation23 + $0x70] sm:$0xff]  ;;  %v3840_v2 = vld [vmem:[#allocation23 + $0x78] sm:$0xff] }
 0xb1a   :  { %3663 = vst [vmem:[#allocation2 + $0x10] sm:$0xff] %v3647_v18  ;;  %v3617_v52 = vmax.f32 %v6732_v56, 0.0  ;;  %v5774_v12 = vpop.f32.mrb[102].mxu1  ;;  %v6557_v39 = vpack.c.bf16 %v3840_v2, %v3839_v53  ;;  %v3990_v18 = vld [vmem:[#allocation22] ss:$0 sm:$0xff] }
 0xb1b   :  { %v3650_v11 = vadd.f32 %v8362_v15, %v3618_v62  ;;  %v6734_v58 = vadd.f32 %v8466_v26, %v5774_v12  ;;  %v3548_v41 = vpop.f32.mrb[103].mxu1  ;;  %6554 = vmatprep.subr.bf16.mxu1 %v6553_v19 }
 0xb1c   :  { %v3649_v20 = vadd.f32 %v8365_v48, %v3617_v52  ;;  %v6736_v42 = vadd.f32 %v8466_v26, %v3548_v41  ;;  %6556 = vmatpush3.bf16.msra.mxu1 %v6553_v19 }
 0xb1d   :  { %3666 = vst [vmem:[#allocation2 + $0x28] sm:$0xff] %v3650_v11  ;;  %v3620_v28 = vmax.f32 %v6734_v58, 0.0  ;;  %6558 = vmatprep.subr.bf16.mxu1 %v6557_v39 }
 0xb1e   :  { %3665 = vst [vmem:[#allocation2 + $0x20] sm:$0xff] %v3649_v20  ;;  %v3619_v23 = vmax.f32 %v6736_v42, 0.0  ;;  %v5777_v37 = vpop.f32.mrb[104].mxu1 }
 0xb1f   :  { %v3652_v24 = vadd.f32 %v8372_v4, %v3620_v28  ;;  %v6738_v45 = vadd.f32 %v8466_v26, %v5777_v37  ;;  %v3558_v1 = vpop.f32.mrb[105].mxu1 }
 0xb20   :  { %v3651_v63 = vadd.f32 %v8375_v43, %v3619_v23  ;;  %v6740_v15 = vadd.f32 %v8466_v26, %v3558_v1  ;;  %6560 = vmatpush3.bf16.msra.mxu1 %v6557_v39 }
 0xb21   :  { %3668 = vst [vmem:[#allocation2 + $0x38] sm:$0xff] %v3652_v24  ;;  %v3622_v35 = vmax.f32 %v6738_v45, 0.0 }
 0xb22   :  { %3667 = vst [vmem:[#allocation2 + $0x30] sm:$0xff] %v3651_v63  ;;  %v3621_v48 = vmax.f32 %v6740_v15, 0.0  ;;  %v5780_v40 = vpop.f32.mrb[106].mxu1 }
 0xb23   :  { %v3654_v54 = vadd.f32 %v8382_v50, %v3622_v35  ;;  %v6742_v36 = vadd.f32 %v8466_v26, %v5780_v40  ;;  %v3568_v13 = vpop.f32.mrb[107].mxu1 }
 0xb24   :  { %v3653_v14 = vadd.f32 %v8385_v21, %v3621_v48  ;;  %v6744_v4 = vadd.f32 %v8466_v26, %v3568_v13 }
 0xb25   :  { %3670 = vst [vmem:[#allocation2 + $0x48] sm:$0xff] %v3654_v54  ;;  %v3624_v59 = vmax.f32 %v6742_v36, 0.0 }
 0xb26   :  { %3669 = vst [vmem:[#allocation2 + $0x40] sm:$0xff] %v3653_v14  ;;  %v3623_v43 = vmax.f32 %v6744_v4, 0.0  ;;  %v5783_v6 = vpop.f32.mrb[108].mxu1 }
 0xb27   :  { %v3656_v44 = vadd.f32 %v8392_v60, %v3624_v59  ;;  %v6746_v10 = vadd.f32 %v8466_v26, %v5783_v6  ;;  %v3578_v51 = vpop.f32.mrb[109].mxu1 }
 0xb28   :  { %v3655_v22 = vadd.f32 %v8395_v7, %v3623_v43  ;;  %v6748_v50 = vadd.f32 %v8466_v26, %v3578_v51 }
 0xb29   :  { %3672 = vst [vmem:[#allocation2 + $0x58] sm:$0xff] %v3656_v44  ;;  %v3626_v27 = vmax.f32 %v6746_v10, 0.0 }
 0xb2a   :  { %3671 = vst [vmem:[#allocation2 + $0x50] sm:$0xff] %v3655_v22  ;;  %v3625_v21 = vmax.f32 %v6748_v50, 0.0  ;;  %v5786_v29 = vpop.f32.mrb[110].mxu1 }
 0xb2b   :  { %v3658_v31 = vadd.f32 %v8402_v46, %v3626_v27  ;;  %v6750_v0 = vadd.f32 %v8466_v26, %v5786_v29  ;;  %v3588_v17 = vpop.f32.mrb[111].mxu1 }
 0xb2c   :  { %v3657_v32 = vadd.f32 %v8405_v49, %v3625_v21  ;;  %v6752_v60 = vadd.f32 %v8466_v26, %v3588_v17 }
 0xb2d   :  { %3674 = vst [vmem:[#allocation2 + $0x68] sm:$0xff] %v3658_v31  ;;  %v3628_v7 = vmax.f32 %v6750_v0, 0.0 }
 0xb2e   :  { %3673 = vst [vmem:[#allocation2 + $0x60] sm:$0xff] %v3657_v32  ;;  %v3627_v30 = vmax.f32 %v6752_v60, 0.0 }
 0xb2f   :  { %v3660_v47 = vadd.f32 %v8408_v16, %v3628_v7 }
 0xb30   :  { %v3659_v46 = vadd.f32 %v8410_v5, %v3627_v30 }
 0xb31   :  { %3676 = vst [vmem:[#allocation2 + $0x78] sm:$0xff] %v3660_v47 }
 0xb32   :  { %3675 = vst [vmem:[#allocation2 + $0x70] sm:$0xff] %v3659_v46 }
 0xb39   :  { %v3713_v49 = vld [vmem:[%s3712_s27] sm:$0x1] }
 0xb3a   :  { %v3717_v26 = vld [vmem:[%s3716_s7] sm:$0x1]  ;;  %3714 = vst [vmem:[#allocation3 + $0x8] sm:$0x1] %v3713_v49 }
 0xb3b   :  { %v3681_v9 = vld [vmem:[%s3680_s12] sm:$0x1]  ;;  %3718 = vst [vmem:[#allocation3 + $0x9] sm:$0x1] %v3717_v26 }
 0xb3c   :  { %3682 = vst [vmem:[#allocation3] sm:$0x1] %v3681_v9  ;;  %v3685_v16 = vld [vmem:[%s3684_s1] sm:$0x1] }
 0xb3d   :  { %v3689_v3 = vld [vmem:[%s3688_s16] sm:$0x1]  ;;  %3686 = vst [vmem:[#allocation3 + $0x1] sm:$0x1] %v3685_v16 }
 0xb3e   :  { %v3693_v5 = vld [vmem:[%s3692_s11] sm:$0x1]  ;;  %3690 = vst [vmem:[#allocation3 + $0x2] sm:$0x1] %v3689_v3 }
 0xb3f   :  { %3694 = vst [vmem:[#allocation3 + $0x3] sm:$0x1] %v3693_v5  ;;  %v3697_v33 = vld [vmem:[%s3696_s17] sm:$0x1] }
 0xb40   :  { %v3701_v25 = vld [vmem:[%s3700_s24] sm:$0x1]  ;;  %3698 = vst [vmem:[#allocation3 + $0x4] sm:$0x1] %v3697_v33 }
 0xb41   :  { %v3705_v57 = vld [vmem:[%s3704_s0] sm:$0x1]  ;;  %3702 = vst [vmem:[#allocation3 + $0x5] sm:$0x1] %v3701_v25 }
 0xb42   :  { %3706 = vst [vmem:[#allocation3 + $0x6] sm:$0x1] %v3705_v57  ;;  %v3709_v61 = vld [vmem:[%s3708_s4] sm:$0x1]  ;;  %v3720_v34 = vld [vmem:[#allocation3 + $0x8] sm:$0xff] }
 0xb43   :  { %3710 = vst [vmem:[#allocation3 + $0x7] sm:$0x1] %v3709_v61 }
 0xb4a   :  { %v3719_v55 = vld [vmem:[#allocation3] sm:$0xff] }
 0xb4b   :  { %5819 = vmatprep.mubr.f32.mxu0 %v3719_v55 }
 0xb4c   :  { %5820 = vmatmul.mubr.f32.vlgmr.msra.gmra.mrb[112].mxu0 %v3720_v34 }
 0xc1f   :  { %v5821_v56 = vpop.f32.mrb[112].mxu0 }
 0xc20   :  { %v3816_v62 = vadd.f32 %v5821_v56, %v3990_v18  ;;  %v3810_v52 = vpop.f32.mrb[113].mxu0 }
 0xc21   :  { %v3811_v12 = vadd.f32 %v3990_v18, %v3810_v52 }
 0xc22   :  { %v3822_v11 = vmul.f32 0.2, %v3816_v62  ;;  %vm3820_vm0 = vcmp.ge.f32.partialorder %v3816_v62, 0.0 }
 0xc23   :  { %v3821_v58 = vmul.f32 0.2, %v3811_v12  ;;  %vm3819_vm1 = vcmp.ge.f32.partialorder %v3811_v12, 0.0 }
 0xc24   :  { %v3824_v20 = vsel %vm3820_vm0, %v3816_v62, %v3822_v11 }
 0xc25   :  { %v3823_v41 = vsel %vm3819_vm1, %v3811_v12, %v3821_v58 }
 0xc26   :  { %5854 = vmatprep.mubr.f32.mxu1 %v3823_v41 }
 0xc27   :  { %5855 = vmatmul.mubr.f32.vlgmr.msra.gmra.mrb[112].mxu1 %v3824_v20 }
 0xcfa   :  { %v5856_v42 = vpop.f32.mrb[112].mxu1 }
 0xcfb   :  { %v3907_v28 = vpop.f32.mrb[113].mxu1  ;;  %v3917_v37 = vmul.f32 %v5856_v42, %v3824_v20 }
 0xcfc   :  { %v3916_v23 = vmul.f32 %v3907_v28, %v3823_v41 }
 0xcfe   :  { %3918 = vadd.xlane.f32.xlu0 %v3916_v23 }
 0xd02   :  { %3920 = vadd.xlane.f32.xlu0 %v3917_v37 }
 0xd8b   :  { %v3919_v24 = vpop.xlane.xlu0 %3918 }
 0xd8c   :  { %v3922_v45 = vsub.f32 0.0, %v3919_v24 }
 0xd8e   :  { %v3924_v1 = vmul.f32 1.442695, %v3922_v45 }
 0xd8f   :  { %v3921_v63 = vpop.xlane.xlu0 %3920 }
 0xd90   :  { %6867 = vpow2.f32 %v3924_v1  ;;  %v3923_v15 = vsub.f32 0.0, %v3921_v63 }
 0xd92   :  { %v3926_v35 = vmul.f32 1.442695, %v3923_v15 }
 0xd94   :  { %6869 = vpow2.f32 %v3926_v35 }
 0xd9a   :  { %v6868_v48 = vpop.eup %6867 }
 0xd9b   :  { %v3928_v40 = vadd.f32 1.0, %v6868_v48 }
 0xd9d   :  { %6871 = vrcp.f32 %v3928_v40 }
 0xd9e   :  { %v6870_v54 = vpop.eup %6869 }
 0xd9f   :  { %v3929_v36 = vadd.f32 1.0, %v6870_v54 }
 0xda1   :  { %6873 = vrcp.f32 %v3929_v36 }
 0xda7   :  { %v6872_v13 = vpop.eup %6871 }
 0xda8   :  { %3934 = vst [vmem:[%s8527_s18] sm:$0xff] %v6872_v13 }
 0xdab   :  { %v6874_v14 = vpop.eup %6873 }
 0xdac   :  { %3935 = vst [vmem:[%s8527_s18 + $0x8] sm:$0xff] %v6874_v14 }
 0xdad   :  { %3940 = vsyncpa [#allocation5], 1 }
 0xdae   :  { %3941 = vsyncpa [#allocation9], 1 }
 0xdaf   :  { %3942 = vsyncpa [#allocation12], 1 }
 0xdb0   :  { %3943 = vsyncpa [#allocation15], 1 }
 0xdb1   :  { %3944 = vsyncpa [#allocation18], 1 }
 0xdb2   :  { %3945 = vsyncpa [#allocation21], 1 }
 0xdb3   :  { %3946 = vsyncpa [#allocation24], 1 }
 0xdb4   :  { %3947 = vsyncpa [#allocation6], 1 }

</bundles_post_ra>
